<compile_context>
chip_gen: v7x
topology: tpu7x:2x2x1
jax: 0.10.0
libtpu: 0.0.40
codegen_flags: <defaults>
</compile_context>

<pallas_src>
import jax
import jax.numpy as jnp
from jax import lax
from jax.experimental import pallas as pl
from jax.experimental.pallas import tpu as pltpu

LEAKY_SLOPE = 0.01  # torch.nn.LeakyReLU default negative_slope
BN_EPS = 1e-5       # torch.nn.BatchNorm3d default eps
VMEM_LIMIT_BYTES = 48 * 1024 * 1024  # safe on v5e/v6e (128 MiB) and v7x (64 MiB)


# ----------------------------------------------------------------------------
# Pallas kernels
# ----------------------------------------------------------------------------
def _fused_skip_in_kernel(x_ref, ws_ref, ss_ref, bs_ref,
                          w1_ref, s1_ref, b1_ref, res_ref, h1_ref):
    """Fused skip_connection (1x1x1 conv + BN) and in_conv (1x1x1 conv + BN +
    LeakyReLU) computed from the same (tm, Cin) input tile (single HBM read)."""
    x = x_ref[...]
    r = jnp.dot(x, ws_ref[...], preferred_element_type=jnp.float32)
    res_ref[...] = (r * ss_ref[...] + bs_ref[...]).astype(res_ref.dtype)
    y = jnp.dot(x, w1_ref[...], preferred_element_type=jnp.float32)
    y = y * s1_ref[...] + b1_ref[...]
    h1_ref[...] = jnp.where(y >= 0, y, LEAKY_SLOPE * y).astype(h1_ref.dtype)


def _pointwise_res_kernel(x_ref, w_ref, s_ref, b_ref, r_ref, o_ref):
    """Fused out_conv (1x1x1 conv + BN) + residual add + final ReLU."""
    y = jnp.dot(x_ref[...], w_ref[...], preferred_element_type=jnp.float32)
    y = y * s_ref[...] + b_ref[...] + r_ref[...].astype(jnp.float32)
    o_ref[...] = jnp.maximum(y, 0.0).astype(o_ref.dtype)


def _conv3x3x3_kernel(x_ref, w_ref, s_ref, b_ref, o_ref, xpad_ref, col_ref):
    """3x3x3 conv (stride 1, pad 1) + BN + LeakyReLU for one whole (n, d) slab.

    x_ref   : (D, H, W, Cin)  full-depth volume of sample n (unpadded).
    w_ref   : (27*Cin, Cout)  im2col-ordered weights (kd, kh, kw, cin).
    o_ref   : (H*W, Cout)     output slab for depth d (lane-dense block).
    xpad_ref: VMEM scratch (3, H+2, W+2, Cin) zero-padded depth/spatial halo.
    col_ref : VMEM scratch (H, W, 27*Cin) im2col patch matrix.
    """
    d = pl.program_id(1)
    D, H, W, Cin = x_ref.shape
    HW, Cout = o_ref.shape

    # Build the zero-padded 3-depth halo window directly in VMEM: no jnp.pad
    # HBM roundtrip; out-of-range depth taps stay zero.
    xpad_ref[...] = jnp.zeros_like(xpad_ref)
    for kd in range(3):
        dz = d + kd - 1

        @pl.when(jnp.logical_and(dz >= 0, dz < D))
        def _fill(kd=kd, dz=jnp.clip(dz, 0, D - 1)):
            xpad_ref[kd, 1:H + 1, 1:W + 1, :] = x_ref[dz]

    # im2col: place each of the 27 shifted (H, W, Cin) taps at its channel slot.
    for kd in range(3):
        for kh in range(3):
            for kw in range(3):
                j = (kd * 3 + kh) * 3 + kw
                col_ref[:, :, j * Cin:(j + 1) * Cin] = (
                    xpad_ref[kd, kh:kh + H, kw:kw + W, :])

    # Single large MXU matmul over K = 27*Cin instead of 27 tiny matmuls.
    pmat = col_ref[...].reshape(HW, 27 * Cin)
    y = jnp.dot(pmat, w_ref[...], preferred_element_type=jnp.float32)
    y = y * s_ref[...] + b_ref[...]
    o_ref[...] = jnp.where(y >= 0, y, LEAKY_SLOPE * y).astype(o_ref.dtype)


# ----------------------------------------------------------------------------
# Wrappers around pallas_call
# ----------------------------------------------------------------------------
def fused_skip_in_conv(x_flat, w_skip, s_skip, b_skip, w1, s1, b1, tile_m=512):
    M, Cin = x_flat.shape
    Cskip = w_skip.shape[1]
    Cmid = w1.shape[1]
    tm = min(tile_m, M)
    assert M % tm == 0
    residual, h1 = pl.pallas_call(
        _fused_skip_in_kernel,
        out_shape=(jax.ShapeDtypeStruct((M, Cskip), x_flat.dtype),
                   jax.ShapeDtypeStruct((M, Cmid), x_flat.dtype)),
        grid_spec=pltpu.PrefetchScalarGridSpec(
            num_scalar_prefetch=0,
            grid=(M // tm,),
            in_specs=[
                pl.BlockSpec((tm, Cin), lambda i: (i, 0)),
                pl.BlockSpec((Cin, Cskip), lambda i: (0, 0)),
                pl.BlockSpec((1, Cskip), lambda i: (0, 0)),
                pl.BlockSpec((1, Cskip), lambda i: (0, 0)),
                pl.BlockSpec((Cin, Cmid), lambda i: (0, 0)),
                pl.BlockSpec((1, Cmid), lambda i: (0, 0)),
                pl.BlockSpec((1, Cmid), lambda i: (0, 0)),
            ],
            out_specs=(pl.BlockSpec((tm, Cskip), lambda i: (i, 0)),
                       pl.BlockSpec((tm, Cmid), lambda i: (i, 0))),
        ),
        compiler_params=pltpu.CompilerParams(
            dimension_semantics=("parallel",),
            vmem_limit_bytes=VMEM_LIMIT_BYTES),
    )(x_flat, w_skip, s_skip.reshape(1, Cskip), b_skip.reshape(1, Cskip),
      w1, s1.reshape(1, Cmid), b1.reshape(1, Cmid))
    return residual, h1


def pointwise_conv_bn_add_relu(x_flat, w, scale, bias, residual, tile_m=512):
    M, K = x_flat.shape
    Kw, Cout = w.shape
    assert K == Kw and residual.shape == (M, Cout)
    tm = min(tile_m, M)
    assert M % tm == 0
    return pl.pallas_call(
        _pointwise_res_kernel,
        out_shape=jax.ShapeDtypeStruct((M, Cout), x_flat.dtype),
        grid_spec=pltpu.PrefetchScalarGridSpec(
            num_scalar_prefetch=0,
            grid=(M // tm,),
            in_specs=[
                pl.BlockSpec((tm, K), lambda i: (i, 0)),
                pl.BlockSpec((K, Cout), lambda i: (0, 0)),
                pl.BlockSpec((1, Cout), lambda i: (0, 0)),
                pl.BlockSpec((1, Cout), lambda i: (0, 0)),
                pl.BlockSpec((tm, Cout), lambda i: (i, 0)),
            ],
            out_specs=pl.BlockSpec((tm, Cout), lambda i: (i, 0)),
        ),
        compiler_params=pltpu.CompilerParams(
            dimension_semantics=("parallel",),
            vmem_limit_bytes=VMEM_LIMIT_BYTES),
    )(x_flat, w, scale.reshape(1, Cout), bias.reshape(1, Cout), residual)


def conv3x3x3_bn_leaky(x_ndhwc, w_col, scale, bias):
    N, D, H, W, Cin = x_ndhwc.shape
    Cout = w_col.shape[-1]
    out = pl.pallas_call(
        _conv3x3x3_kernel,
        out_shape=jax.ShapeDtypeStruct((N, D, H * W, Cout), x_ndhwc.dtype),
        grid_spec=pltpu.PrefetchScalarGridSpec(
            num_scalar_prefetch=0,
            grid=(N, D),
            in_specs=[
                # Per-sample full-depth block (re-fetched only when n changes).
                pl.BlockSpec((None, D, H, W, Cin), lambda n, d: (n, 0, 0, 0, 0)),
                pl.BlockSpec((27 * Cin, Cout), lambda n, d: (0, 0)),
                pl.BlockSpec((1, Cout), lambda n, d: (0, 0)),
                pl.BlockSpec((1, Cout), lambda n, d: (0, 0)),
            ],
            out_specs=pl.BlockSpec((None, None, H * W, Cout),
                                   lambda n, d: (n, d, 0, 0)),
            scratch_shapes=[
                pltpu.VMEM((3, H + 2, W + 2, Cin), jnp.float32),
                pltpu.VMEM((H, W, 27 * Cin), jnp.float32),
            ],
        ),
        compiler_params=pltpu.CompilerParams(
            dimension_semantics=("parallel", "parallel"),
            vmem_limit_bytes=VMEM_LIMIT_BYTES),
    )(x_ndhwc, w_col, scale.reshape(1, Cout), bias.reshape(1, Cout))
    return out.reshape(N, D, H, W, Cout)


# ----------------------------------------------------------------------------
# BottleneckBlock forward (Pallas path)
# ----------------------------------------------------------------------------
def bottleneck_block_pallas(x_ncdhw, p):
    x = jnp.transpose(x_ncdhw, (0, 2, 3, 4, 1))  # NCDHW -> NDHWC
    N, D, H, W, Cin = x.shape
    Cmid = p["w1_mat"].shape[1]
    Cout = p["w3_mat"].shape[1]
    x_flat = x.reshape(-1, Cin)

    # skip_connection + in_conv fused: one pass over x, two outputs.
    residual, h1 = fused_skip_in_conv(
        x_flat, p["w_skip_mat"], p["s_skip"], p["b_skip"],
        p["w1_mat"], p["s1"], p["b1"])
    h1 = h1.reshape(N, D, H, W, Cmid)

    # mid_conv: 3x3x3 conv (stride 1, pad 1) + BN + LeakyReLU (im2col kernel).
    h2 = conv3x3x3_bn_leaky(h1, p["w2_col"], p["s2"], p["b2"])

    # out_conv + residual add + final ReLU (fused).
    out = pointwise_conv_bn_add_relu(h2.reshape(-1, Cmid), p["w3_mat"],
                                     p["s3"], p["b3"], residual)
    out = out.reshape(N, D, H, W, Cout)
    return jnp.transpose(out, (0, 4, 1, 2, 3))  # NDHWC -> NCDHW


# ----------------------------------------------------------------------------
# Deterministic parameter init (mirrors the nn.Module __init__ shapes)
# ----------------------------------------------------------------------------
def init_params(key, in_channels, mid_channels, width=1):
    mid = int(mid_channels * width)
    out_channels = 4 * mid_channels
    keys = jax.random.split(key, 8)

    def conv_w(k, cout, cin, ksz):
        fan_in = cin * ksz ** 3
        return (jax.random.normal(k, (cout, cin, ksz, ksz, ksz), jnp.float32)
                / jnp.sqrt(float(fan_in)))

    def bn_fold(k, c):
        k1, k2, k3, k4 = jax.random.split(k, 4)
        gamma = jax.random.uniform(k1, (c,), jnp.float32, 0.5, 1.5)
        beta = 0.1 * jax.random.normal(k2, (c,), jnp.float32)
        mean = 0.1 * jax.random.normal(k3, (c,), jnp.float32)
        var = jax.random.uniform(k4, (c,), jnp.float32, 0.5, 1.5)
        scale = gamma / jnp.sqrt(var + BN_EPS)
        bias = beta - mean * scale
        return scale, bias

    p = {}
    p["w_skip"] = conv_w(keys[0], out_channels, in_channels, 1)
    p["s_skip"], p["b_skip"] = bn_fold(keys[1], out_channels)
    p["w1"] = conv_w(keys[2], mid, in_channels, 1)
    p["s1"], p["b1"] = bn_fold(keys[3], mid)
    p["w2"] = conv_w(keys[4], mid, mid, 3)
    p["s2"], p["b2"] = bn_fold(keys[5], mid)
    p["w3"] = conv_w(keys[6], out_channels, mid, 1)
    p["s3"], p["b3"] = bn_fold(keys[7], out_channels)

    # kernel-layout weights (channels-last matmul form)
    p["w_skip_mat"] = p["w_skip"][:, :, 0, 0, 0].T          # (Cin, Cout)
    p["w1_mat"] = p["w1"][:, :, 0, 0, 0].T                  # (Cin, Cmid)
    # im2col weight layout: (kd, kh, kw, cin) rows -> (27*Cmid, Cmid)
    p["w2_col"] = jnp.transpose(p["w2"], (2, 3, 4, 1, 0)).reshape(27 * mid, mid)
    p["w3_mat"] = p["w3"][:, :, 0, 0, 0].T                  # (Cmid, Cout)
    return p


# ----------------------------------------------------------------------------
# Pure-JAX reference (inference-mode BN), NCDHW like the PyTorch module
# ----------------------------------------------------------------------------
def bottleneck_block_ref(x, p):
    def convbn(x, w, scale, bias, stride, pad, act):
        y = lax.conv_general_dilated(
            x, w, window_strides=(stride,) * 3, padding=[(pad, pad)] * 3,
            dimension_numbers=("NCDHW", "OIDHW", "NCDHW"),
            precision=lax.Precision.HIGHEST)
        y = y * scale[None, :, None, None, None] + bias[None, :, None, None, None]
        if act == "leaky":
            y = jnp.where(y >= 0, y, LEAKY_SLOPE * y)
        return y

    residual = convbn(x, p["w_skip"], p["s_skip"], p["b_skip"], 1, 0, None)
    h = convbn(x, p["w1"], p["s1"], p["b1"], 1, 0, "leaky")
    h = convbn(h, p["w2"], p["s2"], p["b2"], 1, 1, "leaky")
    h = convbn(h, p["w3"], p["s3"], p["b3"], 1, 0, None)
    return jnp.maximum(h + residual, 0.0)


if __name__ == "__main__":
    N, Cin, D, H, W = 2, 8, 8, 8, 8
    mid_channels = 8
    Cout = 4 * mid_channels

    key = jax.random.PRNGKey(0)
    params = init_params(key, Cin, mid_channels)
    x = jax.random.normal(jax.random.fold_in(key, 123),
                          (N, Cin, D, H, W), jnp.float32)

    fwd = jax.jit(lambda xx: bottleneck_block_pallas(xx, params))
    out = jax.block_until_ready(fwd(x))

    assert out.shape == (N, Cout, D, H, W), out.shape
    assert bool(jnp.isfinite(out).all())

    ref = bottleneck_block_ref(x, params)
    max_err = float(jnp.max(jnp.abs(out - ref)))
    assert max_err < 2e-2, f"mismatch vs reference: {max_err}"

    print("KERNEL_OK")
</pallas_src>

<mosaic_0001>
module attributes {stable_mosaic.version = 11 : i64} {
  func.func @_fused_skip_in_kernel(%arg0: i32, %arg1: memref<512x8xf32, #tpu.memory_space<vmem>>, %arg2: memref<8x32xf32, #tpu.memory_space<vmem>>, %arg3: memref<1x32xf32, #tpu.memory_space<vmem>>, %arg4: memref<1x32xf32, #tpu.memory_space<vmem>>, %arg5: memref<8x8xf32, #tpu.memory_space<vmem>>, %arg6: memref<1x8xf32, #tpu.memory_space<vmem>>, %arg7: memref<1x8xf32, #tpu.memory_space<vmem>>, %arg8: memref<512x32xf32, #tpu.memory_space<vmem>>, %arg9: memref<512x8xf32, #tpu.memory_space<vmem>>) attributes {dimension_semantics = [#tpu.dimension_semantics<parallel>], iteration_bounds = array<i64: 2>, scalar_prefetch = 0 : i64, scratch_operands = 0 : i64, tpu.core_type = #tpu.core_type<tc>, window_params = [{transform_indices = @transform_0, window_bounds = array<i64: 512, 8>}, {pipeline_mode = #tpu.pipeline_mode<synchronous>, transform_indices = @transform_1, window_bounds = array<i64: 8, 32>}, {pipeline_mode = #tpu.pipeline_mode<synchronous>, transform_indices = @transform_2, window_bounds = array<i64: 1, 32>}, {pipeline_mode = #tpu.pipeline_mode<synchronous>, transform_indices = @transform_3, window_bounds = array<i64: 1, 32>}, {pipeline_mode = #tpu.pipeline_mode<synchronous>, transform_indices = @transform_4, window_bounds = array<i64: 8, 8>}, {pipeline_mode = #tpu.pipeline_mode<synchronous>, transform_indices = @transform_5, window_bounds = array<i64: 1, 8>}, {pipeline_mode = #tpu.pipeline_mode<synchronous>, transform_indices = @transform_6, window_bounds = array<i64: 1, 8>}, {transform_indices = @transform_7, window_bounds = array<i64: 512, 32>}, {transform_indices = @transform_8, window_bounds = array<i64: 512, 8>}]} {
    %c0 = arith.constant 0 : index
    %c0_0 = arith.constant 0 : index
    %0 = vector.load %arg1[%c0, %c0_0] : memref<512x8xf32, #tpu.memory_space<vmem>>, vector<512x8xf32>
    %c0_1 = arith.constant 0 : index
    %c0_2 = arith.constant 0 : index
    %1 = vector.load %arg2[%c0_1, %c0_2] : memref<8x32xf32, #tpu.memory_space<vmem>>, vector<8x32xf32>
    %cst = arith.constant dense<0.000000e+00> : vector<512x32xf32>
    %2 = tpu.matmul %0, %1, %cst {dimension_numbers = #tpu.dot_dimension_numbers<[1], [0], [0], [1], [0, 0, 1, 1], [], []>} : vector<512x8xf32>, vector<8x32xf32>, vector<512x32xf32> -> vector<512x32xf32>
    %c0_3 = arith.constant 0 : index
    %c0_4 = arith.constant 0 : index
    %3 = vector.load %arg3[%c0_3, %c0_4] : memref<1x32xf32, #tpu.memory_space<vmem>>, vector<1x32xf32>
    %4 = vector.broadcast %3 : vector<1x32xf32> to vector<512x32xf32>
    %5 = arith.mulf %2, %4 : vector<512x32xf32>
    %c0_5 = arith.constant 0 : index
    %c0_6 = arith.constant 0 : index
    %6 = vector.load %arg4[%c0_5, %c0_6] : memref<1x32xf32, #tpu.memory_space<vmem>>, vector<1x32xf32>
    %7 = vector.broadcast %6 : vector<1x32xf32> to vector<512x32xf32>
    %8 = arith.addf %5, %7 : vector<512x32xf32>
    %c0_7 = arith.constant 0 : index
    %c0_8 = arith.constant 0 : index
    %9 = vector.load %arg8[%c0_7, %c0_8] : memref<512x32xf32, #tpu.memory_space<vmem>>, vector<512x32xf32>
    tpu.vector_store %arg8[%c0_7, %c0_8], %8 {strides = array<i32>} : memref<512x32xf32, #tpu.memory_space<vmem>>, vector<512x32xf32>,
    %c0_9 = arith.constant 0 : index
    %c0_10 = arith.constant 0 : index
    %10 = vector.load %arg5[%c0_9, %c0_10] : memref<8x8xf32, #tpu.memory_space<vmem>>, vector<8x8xf32>
    %cst_11 = arith.constant dense<0.000000e+00> : vector<512x8xf32>
    %11 = tpu.matmul %0, %10, %cst_11 {dimension_numbers = #tpu.dot_dimension_numbers<[1], [0], [0], [1], [0, 0, 1, 1], [], []>} : vector<512x8xf32>, vector<8x8xf32>, vector<512x8xf32> -> vector<512x8xf32>
    %c0_12 = arith.constant 0 : index
    %c0_13 = arith.constant 0 : index
    %12 = vector.load %arg6[%c0_12, %c0_13] : memref<1x8xf32, #tpu.memory_space<vmem>>, vector<1x8xf32>
    %13 = vector.broadcast %12 : vector<1x8xf32> to vector<512x8xf32>
    %14 = arith.mulf %11, %13 : vector<512x8xf32>
    %c0_14 = arith.constant 0 : index
    %c0_15 = arith.constant 0 : index
    %15 = vector.load %arg7[%c0_14, %c0_15] : memref<1x8xf32, #tpu.memory_space<vmem>>, vector<1x8xf32>
    %16 = vector.broadcast %15 : vector<1x8xf32> to vector<512x8xf32>
    %17 = arith.addf %14, %16 : vector<512x8xf32>
    %cst_16 = arith.constant 0.000000e+00 : f32
    %18 = vector.broadcast %cst_16 : f32 to vector<512x8xf32>
    %19 = arith.cmpf oge, %17, %18 : vector<512x8xf32>
    %cst_17 = arith.constant 0.00999999977 : f32
    %20 = vector.broadcast %cst_17 : f32 to vector<512x8xf32>
    %21 = arith.mulf %20, %17 : vector<512x8xf32>
    %22 = arith.select %19, %17, %21 : vector<512x8xi1>, vector<512x8xf32>
    %c0_18 = arith.constant 0 : index
    %c0_19 = arith.constant 0 : index
    %23 = vector.load %arg9[%c0_18, %c0_19] : memref<512x8xf32, #tpu.memory_space<vmem>>, vector<512x8xf32>
    tpu.vector_store %arg9[%c0_18, %c0_19], %22 {strides = array<i32>} : memref<512x8xf32, #tpu.memory_space<vmem>>, vector<512x8xf32>,
    return
  }
  func.func @transform_0(%arg0: i32) -> (i32, i32) {
    %c0_i32 = arith.constant 0 : i32
    %c0_i32_0 = arith.constant 0 : i32
    return %arg0, %c0_i32 : i32, i32
  }
  func.func @transform_1(%arg0: i32) -> (i32, i32) {
    %c0_i32 = arith.constant 0 : i32
    %c0_i32_0 = arith.constant 0 : i32
    %c0_i32_1 = arith.constant 0 : i32
    return %c0_i32, %c0_i32_0 : i32, i32
  }
  func.func @transform_2(%arg0: i32) -> (i32, i32) {
    %c0_i32 = arith.constant 0 : i32
    %c0_i32_0 = arith.constant 0 : i32
    %c0_i32_1 = arith.constant 0 : i32
    return %c0_i32, %c0_i32_0 : i32, i32
  }
  func.func @transform_3(%arg0: i32) -> (i32, i32) {
    %c0_i32 = arith.constant 0 : i32
    %c0_i32_0 = arith.constant 0 : i32
    %c0_i32_1 = arith.constant 0 : i32
    return %c0_i32, %c0_i32_0 : i32, i32
  }
  func.func @transform_4(%arg0: i32) -> (i32, i32) {
    %c0_i32 = arith.constant 0 : i32
    %c0_i32_0 = arith.constant 0 : i32
    %c0_i32_1 = arith.constant 0 : i32
    return %c0_i32, %c0_i32_0 : i32, i32
  }
  func.func @transform_5(%arg0: i32) -> (i32, i32) {
    %c0_i32 = arith.constant 0 : i32
    %c0_i32_0 = arith.constant 0 : i32
    %c0_i32_1 = arith.constant 0 : i32
    return %c0_i32, %c0_i32_0 : i32, i32
  }
  func.func @transform_6(%arg0: i32) -> (i32, i32) {
    %c0_i32 = arith.constant 0 : i32
    %c0_i32_0 = arith.constant 0 : i32
    %c0_i32_1 = arith.constant 0 : i32
    return %c0_i32, %c0_i32_0 : i32, i32
  }
  func.func @transform_7(%arg0: i32) -> (i32, i32) {
    %c0_i32 = arith.constant 0 : i32
    %c0_i32_0 = arith.constant 0 : i32
    return %arg0, %c0_i32 : i32, i32
  }
  func.func @transform_8(%arg0: i32) -> (i32, i32) {
    %c0_i32 = arith.constant 0 : i32
    %c0_i32_0 = arith.constant 0 : i32
    return %arg0, %c0_i32 : i32, i32
  }
}

module attributes {stable_mosaic.version = 11 : i64} {
  func.func @_conv3x3x3_kernel(%arg0: i32, %arg1: i32, %arg2: memref<1x8x8x8x8xf32, #tpu.memory_space<vmem>>, %arg3: memref<216x8xf32, #tpu.memory_space<vmem>>, %arg4: memref<1x8xf32, #tpu.memory_space<vmem>>, %arg5: memref<1x8xf32, #tpu.memory_space<vmem>>, %arg6: memref<1x1x64x8xf32, #tpu.memory_space<vmem>>, %arg7: memref<3x10x10x8xf32, #tpu.memory_space<vmem>>, %arg8: memref<8x8x216xf32, #tpu.memory_space<vmem>>) attributes {dimension_semantics = [#tpu.dimension_semantics<parallel>, #tpu.dimension_semantics<parallel>], iteration_bounds = array<i64: 2, 8>, scalar_prefetch = 0 : i64, scratch_operands = 2 : i64, tpu.core_type = #tpu.core_type<tc>, window_params = [{transform_indices = @transform_0, window_bounds = array<i64: 1, 8, 8, 8, 8>}, {pipeline_mode = #tpu.pipeline_mode<synchronous>, transform_indices = @transform_1, window_bounds = array<i64: 216, 8>}, {pipeline_mode = #tpu.pipeline_mode<synchronous>, transform_indices = @transform_2, window_bounds = array<i64: 1, 8>}, {pipeline_mode = #tpu.pipeline_mode<synchronous>, transform_indices = @transform_3, window_bounds = array<i64: 1, 8>}, {transform_indices = @transform_4, window_bounds = array<i64: 1, 1, 64, 8>}]} {
    %cst = arith.constant 0.000000e+00 : f32
    %0 = vector.broadcast %cst : f32 to vector<3x10x10x8xf32>
    %c0 = arith.constant 0 : index
    %c0_0 = arith.constant 0 : index
    %c0_1 = arith.constant 0 : index
    %c0_2 = arith.constant 0 : index
    %1 = vector.load %arg7[%c0, %c0_0, %c0_1, %c0_2] : memref<3x10x10x8xf32, #tpu.memory_space<vmem>>, vector<3x10x10x8xf32>
    tpu.vector_store %arg7[%c0, %c0_0, %c0_1, %c0_2], %0 {strides = array<i32>} : memref<3x10x10x8xf32, #tpu.memory_space<vmem>>, vector<3x10x10x8xf32>,
    %c0_i32 = arith.constant 0 : i32
    %2 = arith.addi %arg1, %c0_i32 : i32
    %c1_i32 = arith.constant 1 : i32
    %3 = arith.subi %2, %c1_i32 : i32
    %c0_i32_3 = arith.constant 0 : i32
    %4 = arith.cmpi sge, %3, %c0_i32_3 : i32
    %c8_i32 = arith.constant 8 : i32
    %5 = arith.cmpi slt, %3, %c8_i32 : i32
    %6 = arith.andi %4, %5 : i1
    %c0_i32_4 = arith.constant 0 : i32
    %c7_i32 = arith.constant 7 : i32
    %7 = arith.maxsi %c0_i32_4, %3 : i32
    %8 = arith.minsi %c7_i32, %7 : i32
    %9 = arith.extui %6 : i1 to i32
    %c0_i32_5 = arith.constant 0 : i32
    %10 = arith.cmpi ne, %9, %c0_i32_5 : i32
    scf.if %10 {
      %c0_196 = arith.constant 0 : index
      %128 = arith.index_cast %8 : i32 to index
      %c0_197 = arith.constant 0 : index
      %c0_198 = arith.constant 0 : index
      %c0_199 = arith.constant 0 : index
      %129 = vector.load %arg2[%c0_196, %128, %c0_197, %c0_198, %c0_199] : memref<1x8x8x8x8xf32, #tpu.memory_space<vmem>>, vector<1x1x8x8x8xf32>
      %130 = vector.shape_cast %129 : vector<1x1x8x8x8xf32> to vector<8x8x8xf32>
      %c0_200 = arith.constant 0 : index
      %c1_201 = arith.constant 1 : index
      %c1_202 = arith.constant 1 : index
      %c0_203 = arith.constant 0 : index
      %131 = vector.load %arg7[%c0_200, %c1_201, %c1_202, %c0_203] : memref<3x10x10x8xf32, #tpu.memory_space<vmem>>, vector<1x8x8x8xf32>
      %132 = vector.shape_cast %131 : vector<1x8x8x8xf32> to vector<8x8x8xf32>
      %133 = vector.shape_cast %130 : vector<8x8x8xf32> to vector<1x8x8x8xf32>
      tpu.vector_store %arg7[%c0_200, %c1_201, %c1_202, %c0_203], %133 {strides = array<i32>} : memref<3x10x10x8xf32, #tpu.memory_space<vmem>>, vector<1x8x8x8xf32>,
    } else {
    }
    %c1_i32_6 = arith.constant 1 : i32
    %11 = arith.addi %arg1, %c1_i32_6 : i32
    %c1_i32_7 = arith.constant 1 : i32
    %12 = arith.subi %11, %c1_i32_7 : i32
    %c0_i32_8 = arith.constant 0 : i32
    %13 = arith.cmpi sge, %12, %c0_i32_8 : i32
    %c8_i32_9 = arith.constant 8 : i32
    %14 = arith.cmpi slt, %12, %c8_i32_9 : i32
    %15 = arith.andi %13, %14 : i1
    %c0_i32_10 = arith.constant 0 : i32
    %c7_i32_11 = arith.constant 7 : i32
    %16 = arith.maxsi %c0_i32_10, %12 : i32
    %17 = arith.minsi %c7_i32_11, %16 : i32
    %18 = arith.extui %15 : i1 to i32
    %c0_i32_12 = arith.constant 0 : i32
    %19 = arith.cmpi ne, %18, %c0_i32_12 : i32
    scf.if %19 {
      %c0_196 = arith.constant 0 : index
      %128 = arith.index_cast %17 : i32 to index
      %c0_197 = arith.constant 0 : index
      %c0_198 = arith.constant 0 : index
      %c0_199 = arith.constant 0 : index
      %129 = vector.load %arg2[%c0_196, %128, %c0_197, %c0_198, %c0_199] : memref<1x8x8x8x8xf32, #tpu.memory_space<vmem>>, vector<1x1x8x8x8xf32>
      %130 = vector.shape_cast %129 : vector<1x1x8x8x8xf32> to vector<8x8x8xf32>
      %c1_200 = arith.constant 1 : index
      %c1_201 = arith.constant 1 : index
      %c1_202 = arith.constant 1 : index
      %c0_203 = arith.constant 0 : index
      %131 = vector.load %arg7[%c1_200, %c1_201, %c1_202, %c0_203] : memref<3x10x10x8xf32, #tpu.memory_space<vmem>>, vector<1x8x8x8xf32>
      %132 = vector.shape_cast %131 : vector<1x8x8x8xf32> to vector<8x8x8xf32>
      %133 = vector.shape_cast %130 : vector<8x8x8xf32> to vector<1x8x8x8xf32>
      tpu.vector_store %arg7[%c1_200, %c1_201, %c1_202, %c0_203], %133 {strides = array<i32>} : memref<3x10x10x8xf32, #tpu.memory_space<vmem>>, vector<1x8x8x8xf32>,
    } else {
    }
    %c2_i32 = arith.constant 2 : i32
    %20 = arith.addi %arg1, %c2_i32 : i32
    %c1_i32_13 = arith.constant 1 : i32
    %21 = arith.subi %20, %c1_i32_13 : i32
    %c0_i32_14 = arith.constant 0 : i32
    %22 = arith.cmpi sge, %21, %c0_i32_14 : i32
    %c8_i32_15 = arith.constant 8 : i32
    %23 = arith.cmpi slt, %21, %c8_i32_15 : i32
    %24 = arith.andi %22, %23 : i1
    %c0_i32_16 = arith.constant 0 : i32
    %c7_i32_17 = arith.constant 7 : i32
    %25 = arith.maxsi %c0_i32_16, %21 : i32
    %26 = arith.minsi %c7_i32_17, %25 : i32
    %27 = arith.extui %24 : i1 to i32
    %c0_i32_18 = arith.constant 0 : i32
    %28 = arith.cmpi ne, %27, %c0_i32_18 : i32
    scf.if %28 {
      %c0_196 = arith.constant 0 : index
      %128 = arith.index_cast %26 : i32 to index
      %c0_197 = arith.constant 0 : index
      %c0_198 = arith.constant 0 : index
      %c0_199 = arith.constant 0 : index
      %129 = vector.load %arg2[%c0_196, %128, %c0_197, %c0_198, %c0_199] : memref<1x8x8x8x8xf32, #tpu.memory_space<vmem>>, vector<1x1x8x8x8xf32>
      %130 = vector.shape_cast %129 : vector<1x1x8x8x8xf32> to vector<8x8x8xf32>
      %c2_200 = arith.constant 2 : index
      %c1_201 = arith.constant 1 : index
      %c1_202 = arith.constant 1 : index
      %c0_203 = arith.constant 0 : index
      %131 = vector.load %arg7[%c2_200, %c1_201, %c1_202, %c0_203] : memref<3x10x10x8xf32, #tpu.memory_space<vmem>>, vector<1x8x8x8xf32>
      %132 = vector.shape_cast %131 : vector<1x8x8x8xf32> to vector<8x8x8xf32>
      %133 = vector.shape_cast %130 : vector<8x8x8xf32> to vector<1x8x8x8xf32>
      tpu.vector_store %arg7[%c2_200, %c1_201, %c1_202, %c0_203], %133 {strides = array<i32>} : memref<3x10x10x8xf32, #tpu.memory_space<vmem>>, vector<1x8x8x8xf32>,
    } else {
    }
    %c0_19 = arith.constant 0 : index
    %c0_20 = arith.constant 0 : index
    %c0_21 = arith.constant 0 : index
    %c0_22 = arith.constant 0 : index
    %29 = vector.load %arg7[%c0_19, %c0_20, %c0_21, %c0_22] : memref<3x10x10x8xf32, #tpu.memory_space<vmem>>, vector<1x8x8x8xf32>
    %30 = vector.shape_cast %29 : vector<1x8x8x8xf32> to vector<8x8x8xf32>
    %c0_23 = arith.constant 0 : index
    %c0_24 = arith.constant 0 : index
    %c0_25 = arith.constant 0 : index
    %31 = vector.load %arg8[%c0_23, %c0_24, %c0_25] : memref<8x8x216xf32, #tpu.memory_space<vmem>>, vector<8x8x8xf32>
    tpu.vector_store %arg8[%c0_23, %c0_24, %c0_25], %30 {strides = array<i32>} : memref<8x8x216xf32, #tpu.memory_space<vmem>>, vector<8x8x8xf32>,
    %c0_26 = arith.constant 0 : index
    %c0_27 = arith.constant 0 : index
    %c1 = arith.constant 1 : index
    %c0_28 = arith.constant 0 : index
    %32 = vector.load %arg7[%c0_26, %c0_27, %c1, %c0_28] : memref<3x10x10x8xf32, #tpu.memory_space<vmem>>, vector<1x8x8x8xf32>
    %33 = vector.shape_cast %32 : vector<1x8x8x8xf32> to vector<8x8x8xf32>
    %c0_29 = arith.constant 0 : index
    %c0_30 = arith.constant 0 : index
    %c8 = arith.constant 8 : index
    %34 = vector.load %arg8[%c0_29, %c0_30, %c8] : memref<8x8x216xf32, #tpu.memory_space<vmem>>, vector<8x8x8xf32>
    tpu.vector_store %arg8[%c0_29, %c0_30, %c8], %33 {strides = array<i32>} : memref<8x8x216xf32, #tpu.memory_space<vmem>>, vector<8x8x8xf32>,
    %c0_31 = arith.constant 0 : index
    %c0_32 = arith.constant 0 : index
    %c2 = arith.constant 2 : index
    %c0_33 = arith.constant 0 : index
    %35 = vector.load %arg7[%c0_31, %c0_32, %c2, %c0_33] : memref<3x10x10x8xf32, #tpu.memory_space<vmem>>, vector<1x8x8x8xf32>
    %36 = vector.shape_cast %35 : vector<1x8x8x8xf32> to vector<8x8x8xf32>
    %c0_34 = arith.constant 0 : index
    %c0_35 = arith.constant 0 : index
    %c16 = arith.constant 16 : index
    %37 = vector.load %arg8[%c0_34, %c0_35, %c16] : memref<8x8x216xf32, #tpu.memory_space<vmem>>, vector<8x8x8xf32>
    tpu.vector_store %arg8[%c0_34, %c0_35, %c16], %36 {strides = array<i32>} : memref<8x8x216xf32, #tpu.memory_space<vmem>>, vector<8x8x8xf32>,
    %c0_36 = arith.constant 0 : index
    %c1_37 = arith.constant 1 : index
    %c0_38 = arith.constant 0 : index
    %c0_39 = arith.constant 0 : index
    %38 = vector.load %arg7[%c0_36, %c1_37, %c0_38, %c0_39] : memref<3x10x10x8xf32, #tpu.memory_space<vmem>>, vector<1x8x8x8xf32>
    %39 = vector.shape_cast %38 : vector<1x8x8x8xf32> to vector<8x8x8xf32>
    %c0_40 = arith.constant 0 : index
    %c0_41 = arith.constant 0 : index
    %c24 = arith.constant 24 : index
    %40 = vector.load %arg8[%c0_40, %c0_41, %c24] : memref<8x8x216xf32, #tpu.memory_space<vmem>>, vector<8x8x8xf32>
    tpu.vector_store %arg8[%c0_40, %c0_41, %c24], %39 {strides = array<i32>} : memref<8x8x216xf32, #tpu.memory_space<vmem>>, vector<8x8x8xf32>,
    %c0_42 = arith.constant 0 : index
    %c1_43 = arith.constant 1 : index
    %c1_44 = arith.constant 1 : index
    %c0_45 = arith.constant 0 : index
    %41 = vector.load %arg7[%c0_42, %c1_43, %c1_44, %c0_45] : memref<3x10x10x8xf32, #tpu.memory_space<vmem>>, vector<1x8x8x8xf32>
    %42 = vector.shape_cast %41 : vector<1x8x8x8xf32> to vector<8x8x8xf32>
    %c0_46 = arith.constant 0 : index
    %c0_47 = arith.constant 0 : index
    %c32 = arith.constant 32 : index
    %43 = vector.load %arg8[%c0_46, %c0_47, %c32] : memref<8x8x216xf32, #tpu.memory_space<vmem>>, vector<8x8x8xf32>
    tpu.vector_store %arg8[%c0_46, %c0_47, %c32], %42 {strides = array<i32>} : memref<8x8x216xf32, #tpu.memory_space<vmem>>, vector<8x8x8xf32>,
    %c0_48 = arith.constant 0 : index
    %c1_49 = arith.constant 1 : index
    %c2_50 = arith.constant 2 : index
    %c0_51 = arith.constant 0 : index
    %44 = vector.load %arg7[%c0_48, %c1_49, %c2_50, %c0_51] : memref<3x10x10x8xf32, #tpu.memory_space<vmem>>, vector<1x8x8x8xf32>
    %45 = vector.shape_cast %44 : vector<1x8x8x8xf32> to vector<8x8x8xf32>
    %c0_52 = arith.constant 0 : index
    %c0_53 = arith.constant 0 : index
    %c40 = arith.constant 40 : index
    %46 = vector.load %arg8[%c0_52, %c0_53, %c40] : memref<8x8x216xf32, #tpu.memory_space<vmem>>, vector<8x8x8xf32>
    tpu.vector_store %arg8[%c0_52, %c0_53, %c40], %45 {strides = array<i32>} : memref<8x8x216xf32, #tpu.memory_space<vmem>>, vector<8x8x8xf32>,
    %c0_54 = arith.constant 0 : index
    %c2_55 = arith.constant 2 : index
    %c0_56 = arith.constant 0 : index
    %c0_57 = arith.constant 0 : index
    %47 = vector.load %arg7[%c0_54, %c2_55, %c0_56, %c0_57] : memref<3x10x10x8xf32, #tpu.memory_space<vmem>>, vector<1x8x8x8xf32>
    %48 = vector.shape_cast %47 : vector<1x8x8x8xf32> to vector<8x8x8xf32>
    %c0_58 = arith.constant 0 : index
    %c0_59 = arith.constant 0 : index
    %c48 = arith.constant 48 : index
    %49 = vector.load %arg8[%c0_58, %c0_59, %c48] : memref<8x8x216xf32, #tpu.memory_space<vmem>>, vector<8x8x8xf32>
    tpu.vector_store %arg8[%c0_58, %c0_59, %c48], %48 {strides = array<i32>} : memref<8x8x216xf32, #tpu.memory_space<vmem>>, vector<8x8x8xf32>,
    %c0_60 = arith.constant 0 : index
    %c2_61 = arith.constant 2 : index
    %c1_62 = arith.constant 1 : index
    %c0_63 = arith.constant 0 : index
    %50 = vector.load %arg7[%c0_60, %c2_61, %c1_62, %c0_63] : memref<3x10x10x8xf32, #tpu.memory_space<vmem>>, vector<1x8x8x8xf32>
    %51 = vector.shape_cast %50 : vector<1x8x8x8xf32> to vector<8x8x8xf32>
    %c0_64 = arith.constant 0 : index
    %c0_65 = arith.constant 0 : index
    %c56 = arith.constant 56 : index
    %52 = vector.load %arg8[%c0_64, %c0_65, %c56] : memref<8x8x216xf32, #tpu.memory_space<vmem>>, vector<8x8x8xf32>
    tpu.vector_store %arg8[%c0_64, %c0_65, %c56], %51 {strides = array<i32>} : memref<8x8x216xf32, #tpu.memory_space<vmem>>, vector<8x8x8xf32>,
    %c0_66 = arith.constant 0 : index
    %c2_67 = arith.constant 2 : index
    %c2_68 = arith.constant 2 : index
    %c0_69 = arith.constant 0 : index
    %53 = vector.load %arg7[%c0_66, %c2_67, %c2_68, %c0_69] : memref<3x10x10x8xf32, #tpu.memory_space<vmem>>, vector<1x8x8x8xf32>
    %54 = vector.shape_cast %53 : vector<1x8x8x8xf32> to vector<8x8x8xf32>
    %c0_70 = arith.constant 0 : index
    %c0_71 = arith.constant 0 : index
    %c64 = arith.constant 64 : index
    %55 = vector.load %arg8[%c0_70, %c0_71, %c64] : memref<8x8x216xf32, #tpu.memory_space<vmem>>, vector<8x8x8xf32>
    tpu.vector_store %arg8[%c0_70, %c0_71, %c64], %54 {strides = array<i32>} : memref<8x8x216xf32, #tpu.memory_space<vmem>>, vector<8x8x8xf32>,
    %c1_72 = arith.constant 1 : index
    %c0_73 = arith.constant 0 : index
    %c0_74 = arith.constant 0 : index
    %c0_75 = arith.constant 0 : index
    %56 = vector.load %arg7[%c1_72, %c0_73, %c0_74, %c0_75] : memref<3x10x10x8xf32, #tpu.memory_space<vmem>>, vector<1x8x8x8xf32>
    %57 = vector.shape_cast %56 : vector<1x8x8x8xf32> to vector<8x8x8xf32>
    %c0_76 = arith.constant 0 : index
    %c0_77 = arith.constant 0 : index
    %c72 = arith.constant 72 : index
    %58 = vector.load %arg8[%c0_76, %c0_77, %c72] : memref<8x8x216xf32, #tpu.memory_space<vmem>>, vector<8x8x8xf32>
    tpu.vector_store %arg8[%c0_76, %c0_77, %c72], %57 {strides = array<i32>} : memref<8x8x216xf32, #tpu.memory_space<vmem>>, vector<8x8x8xf32>,
    %c1_78 = arith.constant 1 : index
    %c0_79 = arith.constant 0 : index
    %c1_80 = arith.constant 1 : index
    %c0_81 = arith.constant 0 : index
    %59 = vector.load %arg7[%c1_78, %c0_79, %c1_80, %c0_81] : memref<3x10x10x8xf32, #tpu.memory_space<vmem>>, vector<1x8x8x8xf32>
    %60 = vector.shape_cast %59 : vector<1x8x8x8xf32> to vector<8x8x8xf32>
    %c0_82 = arith.constant 0 : index
    %c0_83 = arith.constant 0 : index
    %c80 = arith.constant 80 : index
    %61 = vector.load %arg8[%c0_82, %c0_83, %c80] : memref<8x8x216xf32, #tpu.memory_space<vmem>>, vector<8x8x8xf32>
    tpu.vector_store %arg8[%c0_82, %c0_83, %c80], %60 {strides = array<i32>} : memref<8x8x216xf32, #tpu.memory_space<vmem>>, vector<8x8x8xf32>,
    %c1_84 = arith.constant 1 : index
    %c0_85 = arith.constant 0 : index
    %c2_86 = arith.constant 2 : index
    %c0_87 = arith.constant 0 : index
    %62 = vector.load %arg7[%c1_84, %c0_85, %c2_86, %c0_87] : memref<3x10x10x8xf32, #tpu.memory_space<vmem>>, vector<1x8x8x8xf32>
    %63 = vector.shape_cast %62 : vector<1x8x8x8xf32> to vector<8x8x8xf32>
    %c0_88 = arith.constant 0 : index
    %c0_89 = arith.constant 0 : index
    %c88 = arith.constant 88 : index
    %64 = vector.load %arg8[%c0_88, %c0_89, %c88] : memref<8x8x216xf32, #tpu.memory_space<vmem>>, vector<8x8x8xf32>
    tpu.vector_store %arg8[%c0_88, %c0_89, %c88], %63 {strides = array<i32>} : memref<8x8x216xf32, #tpu.memory_space<vmem>>, vector<8x8x8xf32>,
    %c1_90 = arith.constant 1 : index
    %c1_91 = arith.constant 1 : index
    %c0_92 = arith.constant 0 : index
    %c0_93 = arith.constant 0 : index
    %65 = vector.load %arg7[%c1_90, %c1_91, %c0_92, %c0_93] : memref<3x10x10x8xf32, #tpu.memory_space<vmem>>, vector<1x8x8x8xf32>
    %66 = vector.shape_cast %65 : vector<1x8x8x8xf32> to vector<8x8x8xf32>
    %c0_94 = arith.constant 0 : index
    %c0_95 = arith.constant 0 : index
    %c96 = arith.constant 96 : index
    %67 = vector.load %arg8[%c0_94, %c0_95, %c96] : memref<8x8x216xf32, #tpu.memory_space<vmem>>, vector<8x8x8xf32>
    tpu.vector_store %arg8[%c0_94, %c0_95, %c96], %66 {strides = array<i32>} : memref<8x8x216xf32, #tpu.memory_space<vmem>>, vector<8x8x8xf32>,
    %c1_96 = arith.constant 1 : index
    %c1_97 = arith.constant 1 : index
    %c1_98 = arith.constant 1 : index
    %c0_99 = arith.constant 0 : index
    %68 = vector.load %arg7[%c1_96, %c1_97, %c1_98, %c0_99] : memref<3x10x10x8xf32, #tpu.memory_space<vmem>>, vector<1x8x8x8xf32>
    %69 = vector.shape_cast %68 : vector<1x8x8x8xf32> to vector<8x8x8xf32>
    %c0_100 = arith.constant 0 : index
    %c0_101 = arith.constant 0 : index
    %c104 = arith.constant 104 : index
    %70 = vector.load %arg8[%c0_100, %c0_101, %c104] : memref<8x8x216xf32, #tpu.memory_space<vmem>>, vector<8x8x8xf32>
    tpu.vector_store %arg8[%c0_100, %c0_101, %c104], %69 {strides = array<i32>} : memref<8x8x216xf32, #tpu.memory_space<vmem>>, vector<8x8x8xf32>,
    %c1_102 = arith.constant 1 : index
    %c1_103 = arith.constant 1 : index
    %c2_104 = arith.constant 2 : index
    %c0_105 = arith.constant 0 : index
    %71 = vector.load %arg7[%c1_102, %c1_103, %c2_104, %c0_105] : memref<3x10x10x8xf32, #tpu.memory_space<vmem>>, vector<1x8x8x8xf32>
    %72 = vector.shape_cast %71 : vector<1x8x8x8xf32> to vector<8x8x8xf32>
    %c0_106 = arith.constant 0 : index
    %c0_107 = arith.constant 0 : index
    %c112 = arith.constant 112 : index
    %73 = vector.load %arg8[%c0_106, %c0_107, %c112] : memref<8x8x216xf32, #tpu.memory_space<vmem>>, vector<8x8x8xf32>
    tpu.vector_store %arg8[%c0_106, %c0_107, %c112], %72 {strides = array<i32>} : memref<8x8x216xf32, #tpu.memory_space<vmem>>, vector<8x8x8xf32>,
    %c1_108 = arith.constant 1 : index
    %c2_109 = arith.constant 2 : index
    %c0_110 = arith.constant 0 : index
    %c0_111 = arith.constant 0 : index
    %74 = vector.load %arg7[%c1_108, %c2_109, %c0_110, %c0_111] : memref<3x10x10x8xf32, #tpu.memory_space<vmem>>, vector<1x8x8x8xf32>
    %75 = vector.shape_cast %74 : vector<1x8x8x8xf32> to vector<8x8x8xf32>
    %c0_112 = arith.constant 0 : index
    %c0_113 = arith.constant 0 : index
    %c120 = arith.constant 120 : index
    %76 = vector.load %arg8[%c0_112, %c0_113, %c120] : memref<8x8x216xf32, #tpu.memory_space<vmem>>, vector<8x8x8xf32>
    tpu.vector_store %arg8[%c0_112, %c0_113, %c120], %75 {strides = array<i32>} : memref<8x8x216xf32, #tpu.memory_space<vmem>>, vector<8x8x8xf32>,
    %c1_114 = arith.constant 1 : index
    %c2_115 = arith.constant 2 : index
    %c1_116 = arith.constant 1 : index
    %c0_117 = arith.constant 0 : index
    %77 = vector.load %arg7[%c1_114, %c2_115, %c1_116, %c0_117] : memref<3x10x10x8xf32, #tpu.memory_space<vmem>>, vector<1x8x8x8xf32>
    %78 = vector.shape_cast %77 : vector<1x8x8x8xf32> to vector<8x8x8xf32>
    %c0_118 = arith.constant 0 : index
    %c0_119 = arith.constant 0 : index
    %c128 = arith.constant 128 : index
    %79 = vector.load %arg8[%c0_118, %c0_119, %c128] : memref<8x8x216xf32, #tpu.memory_space<vmem>>, vector<8x8x8xf32>
    tpu.vector_store %arg8[%c0_118, %c0_119, %c128], %78 {strides = array<i32>} : memref<8x8x216xf32, #tpu.memory_space<vmem>>, vector<8x8x8xf32>,
    %c1_120 = arith.constant 1 : index
    %c2_121 = arith.constant 2 : index
    %c2_122 = arith.constant 2 : index
    %c0_123 = arith.constant 0 : index
    %80 = vector.load %arg7[%c1_120, %c2_121, %c2_122, %c0_123] : memref<3x10x10x8xf32, #tpu.memory_space<vmem>>, vector<1x8x8x8xf32>
    %81 = vector.shape_cast %80 : vector<1x8x8x8xf32> to vector<8x8x8xf32>
    %c0_124 = arith.constant 0 : index
    %c0_125 = arith.constant 0 : index
    %c136 = arith.constant 136 : index
    %82 = vector.load %arg8[%c0_124, %c0_125, %c136] : memref<8x8x216xf32, #tpu.memory_space<vmem>>, vector<8x8x8xf32>
    tpu.vector_store %arg8[%c0_124, %c0_125, %c136], %81 {strides = array<i32>} : memref<8x8x216xf32, #tpu.memory_space<vmem>>, vector<8x8x8xf32>,
    %c2_126 = arith.constant 2 : index
    %c0_127 = arith.constant 0 : index
    %c0_128 = arith.constant 0 : index
    %c0_129 = arith.constant 0 : index
    %83 = vector.load %arg7[%c2_126, %c0_127, %c0_128, %c0_129] : memref<3x10x10x8xf32, #tpu.memory_space<vmem>>, vector<1x8x8x8xf32>
    %84 = vector.shape_cast %83 : vector<1x8x8x8xf32> to vector<8x8x8xf32>
    %c0_130 = arith.constant 0 : index
    %c0_131 = arith.constant 0 : index
    %c144 = arith.constant 144 : index
    %85 = vector.load %arg8[%c0_130, %c0_131, %c144] : memref<8x8x216xf32, #tpu.memory_space<vmem>>, vector<8x8x8xf32>
    tpu.vector_store %arg8[%c0_130, %c0_131, %c144], %84 {strides = array<i32>} : memref<8x8x216xf32, #tpu.memory_space<vmem>>, vector<8x8x8xf32>,
    %c2_132 = arith.constant 2 : index
    %c0_133 = arith.constant 0 : index
    %c1_134 = arith.constant 1 : index
    %c0_135 = arith.constant 0 : index
    %86 = vector.load %arg7[%c2_132, %c0_133, %c1_134, %c0_135] : memref<3x10x10x8xf32, #tpu.memory_space<vmem>>, vector<1x8x8x8xf32>
    %87 = vector.shape_cast %86 : vector<1x8x8x8xf32> to vector<8x8x8xf32>
    %c0_136 = arith.constant 0 : index
    %c0_137 = arith.constant 0 : index
    %c152 = arith.constant 152 : index
    %88 = vector.load %arg8[%c0_136, %c0_137, %c152] : memref<8x8x216xf32, #tpu.memory_space<vmem>>, vector<8x8x8xf32>
    tpu.vector_store %arg8[%c0_136, %c0_137, %c152], %87 {strides = array<i32>} : memref<8x8x216xf32, #tpu.memory_space<vmem>>, vector<8x8x8xf32>,
    %c2_138 = arith.constant 2 : index
    %c0_139 = arith.constant 0 : index
    %c2_140 = arith.constant 2 : index
    %c0_141 = arith.constant 0 : index
    %89 = vector.load %arg7[%c2_138, %c0_139, %c2_140, %c0_141] : memref<3x10x10x8xf32, #tpu.memory_space<vmem>>, vector<1x8x8x8xf32>
    %90 = vector.shape_cast %89 : vector<1x8x8x8xf32> to vector<8x8x8xf32>
    %c0_142 = arith.constant 0 : index
    %c0_143 = arith.constant 0 : index
    %c160 = arith.constant 160 : index
    %91 = vector.load %arg8[%c0_142, %c0_143, %c160] : memref<8x8x216xf32, #tpu.memory_space<vmem>>, vector<8x8x8xf32>
    tpu.vector_store %arg8[%c0_142, %c0_143, %c160], %90 {strides = array<i32>} : memref<8x8x216xf32, #tpu.memory_space<vmem>>, vector<8x8x8xf32>,
    %c2_144 = arith.constant 2 : index
    %c1_145 = arith.constant 1 : index
    %c0_146 = arith.constant 0 : index
    %c0_147 = arith.constant 0 : index
    %92 = vector.load %arg7[%c2_144, %c1_145, %c0_146, %c0_147] : memref<3x10x10x8xf32, #tpu.memory_space<vmem>>, vector<1x8x8x8xf32>
    %93 = vector.shape_cast %92 : vector<1x8x8x8xf32> to vector<8x8x8xf32>
    %c0_148 = arith.constant 0 : index
    %c0_149 = arith.constant 0 : index
    %c168 = arith.constant 168 : index
    %94 = vector.load %arg8[%c0_148, %c0_149, %c168] : memref<8x8x216xf32, #tpu.memory_space<vmem>>, vector<8x8x8xf32>
    tpu.vector_store %arg8[%c0_148, %c0_149, %c168], %93 {strides = array<i32>} : memref<8x8x216xf32, #tpu.memory_space<vmem>>, vector<8x8x8xf32>,
    %c2_150 = arith.constant 2 : index
    %c1_151 = arith.constant 1 : index
    %c1_152 = arith.constant 1 : index
    %c0_153 = arith.constant 0 : index
    %95 = vector.load %arg7[%c2_150, %c1_151, %c1_152, %c0_153] : memref<3x10x10x8xf32, #tpu.memory_space<vmem>>, vector<1x8x8x8xf32>
    %96 = vector.shape_cast %95 : vector<1x8x8x8xf32> to vector<8x8x8xf32>
    %c0_154 = arith.constant 0 : index
    %c0_155 = arith.constant 0 : index
    %c176 = arith.constant 176 : index
    %97 = vector.load %arg8[%c0_154, %c0_155, %c176] : memref<8x8x216xf32, #tpu.memory_space<vmem>>, vector<8x8x8xf32>
    tpu.vector_store %arg8[%c0_154, %c0_155, %c176], %96 {strides = array<i32>} : memref<8x8x216xf32, #tpu.memory_space<vmem>>, vector<8x8x8xf32>,
    %c2_156 = arith.constant 2 : index
    %c1_157 = arith.constant 1 : index
    %c2_158 = arith.constant 2 : index
    %c0_159 = arith.constant 0 : index
    %98 = vector.load %arg7[%c2_156, %c1_157, %c2_158, %c0_159] : memref<3x10x10x8xf32, #tpu.memory_space<vmem>>, vector<1x8x8x8xf32>
    %99 = vector.shape_cast %98 : vector<1x8x8x8xf32> to vector<8x8x8xf32>
    %c0_160 = arith.constant 0 : index
    %c0_161 = arith.constant 0 : index
    %c184 = arith.constant 184 : index
    %100 = vector.load %arg8[%c0_160, %c0_161, %c184] : memref<8x8x216xf32, #tpu.memory_space<vmem>>, vector<8x8x8xf32>
    tpu.vector_store %arg8[%c0_160, %c0_161, %c184], %99 {strides = array<i32>} : memref<8x8x216xf32, #tpu.memory_space<vmem>>, vector<8x8x8xf32>,
    %c2_162 = arith.constant 2 : index
    %c2_163 = arith.constant 2 : index
    %c0_164 = arith.constant 0 : index
    %c0_165 = arith.constant 0 : index
    %101 = vector.load %arg7[%c2_162, %c2_163, %c0_164, %c0_165] : memref<3x10x10x8xf32, #tpu.memory_space<vmem>>, vector<1x8x8x8xf32>
    %102 = vector.shape_cast %101 : vector<1x8x8x8xf32> to vector<8x8x8xf32>
    %c0_166 = arith.constant 0 : index
    %c0_167 = arith.constant 0 : index
    %c192 = arith.constant 192 : index
    %103 = vector.load %arg8[%c0_166, %c0_167, %c192] : memref<8x8x216xf32, #tpu.memory_space<vmem>>, vector<8x8x8xf32>
    tpu.vector_store %arg8[%c0_166, %c0_167, %c192], %102 {strides = array<i32>} : memref<8x8x216xf32, #tpu.memory_space<vmem>>, vector<8x8x8xf32>,
    %c2_168 = arith.constant 2 : index
    %c2_169 = arith.constant 2 : index
    %c1_170 = arith.constant 1 : index
    %c0_171 = arith.constant 0 : index
    %104 = vector.load %arg7[%c2_168, %c2_169, %c1_170, %c0_171] : memref<3x10x10x8xf32, #tpu.memory_space<vmem>>, vector<1x8x8x8xf32>
    %105 = vector.shape_cast %104 : vector<1x8x8x8xf32> to vector<8x8x8xf32>
    %c0_172 = arith.constant 0 : index
    %c0_173 = arith.constant 0 : index
    %c200 = arith.constant 200 : index
    %106 = vector.load %arg8[%c0_172, %c0_173, %c200] : memref<8x8x216xf32, #tpu.memory_space<vmem>>, vector<8x8x8xf32>
    tpu.vector_store %arg8[%c0_172, %c0_173, %c200], %105 {strides = array<i32>} : memref<8x8x216xf32, #tpu.memory_space<vmem>>, vector<8x8x8xf32>,
    %c2_174 = arith.constant 2 : index
    %c2_175 = arith.constant 2 : index
    %c2_176 = arith.constant 2 : index
    %c0_177 = arith.constant 0 : index
    %107 = vector.load %arg7[%c2_174, %c2_175, %c2_176, %c0_177] : memref<3x10x10x8xf32, #tpu.memory_space<vmem>>, vector<1x8x8x8xf32>
    %108 = vector.shape_cast %107 : vector<1x8x8x8xf32> to vector<8x8x8xf32>
    %c0_178 = arith.constant 0 : index
    %c0_179 = arith.constant 0 : index
    %c208 = arith.constant 208 : index
    %109 = vector.load %arg8[%c0_178, %c0_179, %c208] : memref<8x8x216xf32, #tpu.memory_space<vmem>>, vector<8x8x8xf32>
    tpu.vector_store %arg8[%c0_178, %c0_179, %c208], %108 {strides = array<i32>} : memref<8x8x216xf32, #tpu.memory_space<vmem>>, vector<8x8x8xf32>,
    %c0_180 = arith.constant 0 : index
    %c0_181 = arith.constant 0 : index
    %c0_182 = arith.constant 0 : index
    %110 = vector.load %arg8[%c0_180, %c0_181, %c0_182] : memref<8x8x216xf32, #tpu.memory_space<vmem>>, vector<8x8x216xf32>
    %111 = vector.shape_cast %110 : vector<8x8x216xf32> to vector<64x216xf32>
    %c0_183 = arith.constant 0 : index
    %c0_184 = arith.constant 0 : index
    %112 = vector.load %arg3[%c0_183, %c0_184] : memref<216x8xf32, #tpu.memory_space<vmem>>, vector<216x8xf32>
    %cst_185 = arith.constant dense<0.000000e+00> : vector<64x8xf32>
    %113 = tpu.matmul %111, %112, %cst_185 {dimension_numbers = #tpu.dot_dimension_numbers<[1], [0], [0], [1], [0, 0, 1, 1], [], []>} : vector<64x216xf32>, vector<216x8xf32>, vector<64x8xf32> -> vector<64x8xf32>
    %c0_186 = arith.constant 0 : index
    %c0_187 = arith.constant 0 : index
    %114 = vector.load %arg4[%c0_186, %c0_187] : memref<1x8xf32, #tpu.memory_space<vmem>>, vector<1x8xf32>
    %115 = vector.broadcast %114 : vector<1x8xf32> to vector<64x8xf32>
    %116 = arith.mulf %113, %115 : vector<64x8xf32>
    %c0_188 = arith.constant 0 : index
    %c0_189 = arith.constant 0 : index
    %117 = vector.load %arg5[%c0_188, %c0_189] : memref<1x8xf32, #tpu.memory_space<vmem>>, vector<1x8xf32>
    %118 = vector.broadcast %117 : vector<1x8xf32> to vector<64x8xf32>
    %119 = arith.addf %116, %118 : vector<64x8xf32>
    %cst_190 = arith.constant 0.000000e+00 : f32
    %120 = vector.broadcast %cst_190 : f32 to vector<64x8xf32>
    %121 = arith.cmpf oge, %119, %120 : vector<64x8xf32>
    %cst_191 = arith.constant 0.00999999977 : f32
    %122 = vector.broadcast %cst_191 : f32 to vector<64x8xf32>
    %123 = arith.mulf %122, %119 : vector<64x8xf32>
    %124 = arith.select %121, %119, %123 : vector<64x8xi1>, vector<64x8xf32>
    %c0_192 = arith.constant 0 : index
    %c0_193 = arith.constant 0 : index
    %c0_194 = arith.constant 0 : index
    %c0_195 = arith.constant 0 : index
    %125 = vector.load %arg6[%c0_192, %c0_193, %c0_194, %c0_195] : memref<1x1x64x8xf32, #tpu.memory_space<vmem>>, vector<1x1x64x8xf32>
    %126 = vector.shape_cast %125 : vector<1x1x64x8xf32> to vector<64x8xf32>
    %127 = vector.shape_cast %124 : vector<64x8xf32> to vector<1x1x64x8xf32>
    tpu.vector_store %arg6[%c0_192, %c0_193, %c0_194, %c0_195], %127 {strides = array<i32>} : memref<1x1x64x8xf32, #tpu.memory_space<vmem>>, vector<1x1x64x8xf32>,
    return
  }
  func.func @transform_0(%arg0: i32, %arg1: i32) -> (i32, i32, i32, i32, i32) {
    %c0_i32 = arith.constant 0 : i32
    %c0_i32_0 = arith.constant 0 : i32
    %c0_i32_1 = arith.constant 0 : i32
    %c0_i32_2 = arith.constant 0 : i32
    %c0_i32_3 = arith.constant 0 : i32
    return %arg0, %c0_i32, %c0_i32_0, %c0_i32_1, %c0_i32_2 : i32, i32, i32, i32, i32
  }
  func.func @transform_1(%arg0: i32, %arg1: i32) -> (i32, i32) {
    %c0_i32 = arith.constant 0 : i32
    %c0_i32_0 = arith.constant 0 : i32
    %c0_i32_1 = arith.constant 0 : i32
    return %c0_i32, %c0_i32_0 : i32, i32
  }
  func.func @transform_2(%arg0: i32, %arg1: i32) -> (i32, i32) {
    %c0_i32 = arith.constant 0 : i32
    %c0_i32_0 = arith.constant 0 : i32
    %c0_i32_1 = arith.constant 0 : i32
    return %c0_i32, %c0_i32_0 : i32, i32
  }
  func.func @transform_3(%arg0: i32, %arg1: i32) -> (i32, i32) {
    %c0_i32 = arith.constant 0 : i32
    %c0_i32_0 = arith.constant 0 : i32
    %c0_i32_1 = arith.constant 0 : i32
    return %c0_i32, %c0_i32_0 : i32, i32
  }
  func.func @transform_4(%arg0: i32, %arg1: i32) -> (i32, i32, i32, i32) {
    %c0_i32 = arith.constant 0 : i32
    %c0_i32_0 = arith.constant 0 : i32
    %c0_i32_1 = arith.constant 0 : i32
    return %arg0, %arg1, %c0_i32, %c0_i32_0 : i32, i32, i32, i32
  }
}

module attributes {stable_mosaic.version = 11 : i64} {
  func.func @_pointwise_res_kernel(%arg0: i32, %arg1: memref<512x8xf32, #tpu.memory_space<vmem>>, %arg2: memref<8x32xf32, #tpu.memory_space<vmem>>, %arg3: memref<1x32xf32, #tpu.memory_space<vmem>>, %arg4: memref<1x32xf32, #tpu.memory_space<vmem>>, %arg5: memref<512x32xf32, #tpu.memory_space<vmem>>, %arg6: memref<512x32xf32, #tpu.memory_space<vmem>>) attributes {dimension_semantics = [#tpu.dimension_semantics<parallel>], iteration_bounds = array<i64: 2>, scalar_prefetch = 0 : i64, scratch_operands = 0 : i64, tpu.core_type = #tpu.core_type<tc>, window_params = [{transform_indices = @transform_0, window_bounds = array<i64: 512, 8>}, {pipeline_mode = #tpu.pipeline_mode<synchronous>, transform_indices = @transform_1, window_bounds = array<i64: 8, 32>}, {pipeline_mode = #tpu.pipeline_mode<synchronous>, transform_indices = @transform_2, window_bounds = array<i64: 1, 32>}, {pipeline_mode = #tpu.pipeline_mode<synchronous>, transform_indices = @transform_3, window_bounds = array<i64: 1, 32>}, {transform_indices = @transform_4, window_bounds = array<i64: 512, 32>}, {transform_indices = @transform_5, window_bounds = array<i64: 512, 32>}]} {
    %c0 = arith.constant 0 : index
    %c0_0 = arith.constant 0 : index
    %0 = vector.load %arg1[%c0, %c0_0] : memref<512x8xf32, #tpu.memory_space<vmem>>, vector<512x8xf32>
    %c0_1 = arith.constant 0 : index
    %c0_2 = arith.constant 0 : index
    %1 = vector.load %arg2[%c0_1, %c0_2] : memref<8x32xf32, #tpu.memory_space<vmem>>, vector<8x32xf32>
    %cst = arith.constant dense<0.000000e+00> : vector<512x32xf32>
    %2 = tpu.matmul %0, %1, %cst {dimension_numbers = #tpu.dot_dimension_numbers<[1], [0], [0], [1], [0, 0, 1, 1], [], []>} : vector<512x8xf32>, vector<8x32xf32>, vector<512x32xf32> -> vector<512x32xf32>
    %c0_3 = arith.constant 0 : index
    %c0_4 = arith.constant 0 : index
    %3 = vector.load %arg3[%c0_3, %c0_4] : memref<1x32xf32, #tpu.memory_space<vmem>>, vector<1x32xf32>
    %4 = vector.broadcast %3 : vector<1x32xf32> to vector<512x32xf32>
    %5 = arith.mulf %2, %4 : vector<512x32xf32>
    %c0_5 = arith.constant 0 : index
    %c0_6 = arith.constant 0 : index
    %6 = vector.load %arg4[%c0_5, %c0_6] : memref<1x32xf32, #tpu.memory_space<vmem>>, vector<1x32xf32>
    %7 = vector.broadcast %6 : vector<1x32xf32> to vector<512x32xf32>
    %8 = arith.addf %5, %7 : vector<512x32xf32>
    %c0_7 = arith.constant 0 : index
    %c0_8 = arith.constant 0 : index
    %9 = vector.load %arg5[%c0_7, %c0_8] : memref<512x32xf32, #tpu.memory_space<vmem>>, vector<512x32xf32>
    %10 = arith.addf %8, %9 : vector<512x32xf32>
    %cst_9 = arith.constant 0.000000e+00 : f32
    %11 = vector.broadcast %cst_9 : f32 to vector<512x32xf32>
    %12 = arith.maximumf %10, %11 : vector<512x32xf32>
    %c0_10 = arith.constant 0 : index
    %c0_11 = arith.constant 0 : index
    %13 = vector.load %arg6[%c0_10, %c0_11] : memref<512x32xf32, #tpu.memory_space<vmem>>, vector<512x32xf32>
    tpu.vector_store %arg6[%c0_10, %c0_11], %12 {strides = array<i32>} : memref<512x32xf32, #tpu.memory_space<vmem>>, vector<512x32xf32>,
    return
  }
  func.func @transform_0(%arg0: i32) -> (i32, i32) {
    %c0_i32 = arith.constant 0 : i32
    %c0_i32_0 = arith.constant 0 : i32
    return %arg0, %c0_i32 : i32, i32
  }
  func.func @transform_1(%arg0: i32) -> (i32, i32) {
    %c0_i32 = arith.constant 0 : i32
    %c0_i32_0 = arith.constant 0 : i32
    %c0_i32_1 = arith.constant 0 : i32
    return %c0_i32, %c0_i32_0 : i32, i32
  }
  func.func @transform_2(%arg0: i32) -> (i32, i32) {
    %c0_i32 = arith.constant 0 : i32
    %c0_i32_0 = arith.constant 0 : i32
    %c0_i32_1 = arith.constant 0 : i32
    return %c0_i32, %c0_i32_0 : i32, i32
  }
  func.func @transform_3(%arg0: i32) -> (i32, i32) {
    %c0_i32 = arith.constant 0 : i32
    %c0_i32_0 = arith.constant 0 : i32
    %c0_i32_1 = arith.constant 0 : i32
    return %c0_i32, %c0_i32_0 : i32, i32
  }
  func.func @transform_4(%arg0: i32) -> (i32, i32) {
    %c0_i32 = arith.constant 0 : i32
    %c0_i32_0 = arith.constant 0 : i32
    return %arg0, %c0_i32 : i32, i32
  }
  func.func @transform_5(%arg0: i32) -> (i32, i32) {
    %c0_i32 = arith.constant 0 : i32
    %c0_i32_0 = arith.constant 0 : i32
    return %arg0, %c0_i32 : i32, i32
  }
}

</mosaic_0001>

<bundles_post_ra>
// kernel: _lambda_.5
= control target key start
LH: loop header
LB: loop body
LE: loop exit
PB: predicated region body
PF: predicated region fallthrough
CT: control target
= control target key end

     0   :  { %10 = vsyncpa [#allocation3], 0  ;;  %s2349_s0 = inlined_call_operand.vmem [shape: f32[1024,8], index: 0, kind: input, shape index: {}]   ;;  %s2350_s1 = inlined_call_operand.vmem [shape: f32[8,32], index: 1, kind: input, shape index: {}]   ;;  %s2351_s2 = inlined_call_operand.vmem [shape: f32[1,32], index: 2, kind: input, shape index: {}]   ;;  %s2352_s3 = inlined_call_operand.vmem [shape: f32[1,32], index: 3, kind: input, shape index: {}]   ;;  %s2353_s4 = inlined_call_operand.vmem [shape: f32[1024,32], index: 4, kind: input, shape index: {}]   ;;  %s2354_s5 = inlined_call_operand.hbm [shape: f32[1024,32], index: 5, kind: output, shape index: {}]  }
   0x1   :  { %12 = vsyncpa [#allocation3 + $0x1], 0  ;;  %s1762_s18 = smov 0   ;;  %s1764_s19 = smov 0  }
   0x2   :  { %s1766_s20 = smov 0   ;;  %s1768_s21 = smov 0  }
   0x3 LB: > { %s1783_s22 = sadd.s32 4294967295, %s1727_s21   ;;  %s1378_s23 = sadd.s32 4294967294, %s1727_s21   ;;  %s1727_s21 = sphi %s1768_s21, %s2360_s21   ;;  %s1723_s20 = sphi %s1766_s20, %s2359_s20   ;;  %s1719_s19 = sphi %s1764_s19, %s2358_s19   ;;  %s1715_s18 = sphi %s1762_s18, %s2357_s18  }
   0x4   : > { %s1787_s24 = sadd.s32 1, %s1727_s21   ;;  %s140_s25 = sadd.s32 1, %s1723_s20 }
   0x5   : > { %s137_s26 = ssub.s32 %s1727_s21, %s1787_s24  ;;  %p150_p0 = scmp.ne.s32.totalorder %s1723_s20, %s1719_s19 }
   0x6   : > { %p138_p1 = scmp.eq.s32.totalorder %s137_s26, 0  ;;  %p151_p2 = scmp.eq.s32.totalorder %s1783_s22, 1 }
   0x7   : > { %p156_p3 = scmp.ne.s32.totalorder %s1719_s19, %s1715_s18  ;;  %p157_p4 = scmp.eq.s32.totalorder %s1378_s23, 1 }
   0x8   : > { %s1798_s27 = scalar_select %p138_p1, %s1723_s20, %s140_s25  }
   0x9   : > { %p1800_p5 = por %p151_p2, %p150_p0  ;;  %p1804_p6 = por %p157_p4, %p156_p3 }
   0xa   : > { %p1381_p7 = scmp.ge.s32.totalorder %s1727_s21, 1  ;;  %p202_p8 = scmp.lt.s32.totalorder %s1727_s21, 3 }
   0xc   : > { %p203_p9 = pnand %p1381_p7, %p202_p8 }
   0xd   : > { %v312_v0 = vld [vmem:[%s2350_s1] sm:$0xff] (!%p203_p9)  ;;  %s1383_s7 = sshll.u32 (!%p203_p9), %s1783_s22, 6  ;;  %vm313_vm0 = vcmask (!%p203_p9), 64512   ;;  %s232_s17 = sand.u32 (!%p203_p9), 1, %s1719_s19   ;;  %vm1225_vm1 = vcmask (!%p203_p9), 261120  }
   0xe   : > { %206 = sbr.rel (%p203_p9) target bundleno = 329 (0x149), region = 40  ;;  %1524 = vmatprep.subr.mxu0 (!%p203_p9), %v312_v0  ;;  %1622 = vmatprep.subr.mxu1 (!%p203_p9), %v312_v0  ;;  %p236_p10 = scmp.lt.s32.totalorder (!%p203_p9), %s1383_s7, 127 }
   0xf   : > { %1525 = vmatpush3.msra.mxu0 (!%p203_p9), %v312_v0  ;;  %1623 = vmatpush3.msra.mxu1 (!%p203_p9), %v312_v0  ;;  %s1978_s26 = sshll.u32 (!%p203_p9), %s232_s17, 9  ;;  %s1458_s6 = sshll.u32 (!%p203_p9), %s1783_s22, 13 }
  0x10   : > { %s1999_s30 = scalar_lea.vmem (!%p203_p9), [#allocation2], %s1978_s26  ;;  %s2294_s9 = scalar_lea.hbm (!%p203_p9), %s2354_s5, %s1458_s6 }
  0x11   : > { %s2308_s10 = scalar_lea.sflag (!%p203_p9), [#allocation3], %s232_s17  ;;  %s1729_s12 = smov (!%p203_p9), [#allocation2]  }
  0x12   : > { %s1669_s13 = sshll.u32 (!%p203_p9), %s1729_s12, 4  ;;  %s1670_s13 = int_to_ptr.vmem [resolvable:$false] %s1669_s13 }
  0x13   : > { %s1671_s14 = scalar_lea.vmem (!%p203_p9), %s1670_s13, 16384 }
  0x15   : > { %s2362_s7 = smov (!%p236_p10, %s1383_s7), 127 }
  0x16   : > { %s1384_s8 = sshll.u32 %s2362_s7, 3  ;;  %s1304_s7 = sshll.u32 %s1999_s30, 4  ;;  %s2296_s7 = int_to_ptr.vmem [resolvable:$true] %s1304_s7 }
  0x17   : > { %s1822_s11 = scalar_lea.vmem %s2349_s0, %s1384_s8  ;;  %s1962_s16 = scalar_lea.vmem %s2353_s4, %s1384_s8 }
  0x18   : > { %v248_v1 = vld [vmem:[%s1822_s11] sm:$0xff]  ;;  %v249_v3 = vld [vmem:[%s1822_s11 + $0x8] sm:$0xff]  ;;  %v250_v5 = vld [vmem:[%s1822_s11 + $0x10] sm:$0xff]  ;;  %p1672_p0 = scmp.lt.s32.totalorder %s2296_s7, %s1670_s13 }
  0x19   : > { %v280_v2 = vld [vmem:[%s1822_s11 + $0x100] sm:$0xff]  ;;  %1526 = vmatprep.mubr.msk.f32.mxu0 %vm313_vm0, %v248_v1  ;;  %v281_v4 = vld [vmem:[%s1822_s11 + $0x108] sm:$0xff]  ;;  %v282_v6 = vld [vmem:[%s1822_s11 + $0x110] sm:$0xff] }
  0x1a   : > { %1574 = vmatprep.mubr.msk.f32.mxu1 %vm313_vm0, %v280_v2  ;;  %1527 = vmatmul.mubr.msk.f32.vlgmr.msra.gmra.mrb[0].mxu0 %vm313_vm0, %v249_v3  ;;  %v251_v7 = vld [vmem:[%s1822_s11 + $0x18] sm:$0xff]  ;;  %v252_v9 = vld [vmem:[%s1822_s11 + $0x20] sm:$0xff]  ;;  %v253_v11 = vld [vmem:[%s1822_s11 + $0x28] sm:$0xff] }
  0x1b   : > { %1575 = vmatmul.mubr.msk.f32.vlgmr.msra.gmra.mrb[0].mxu1 %vm313_vm0, %v281_v4  ;;  %1529 = vmatprep.mubr.msk.f32.mxu0 %vm313_vm0, %v250_v5  ;;  %v283_v8 = vld [vmem:[%s1822_s11 + $0x118] sm:$0xff]  ;;  %v284_v10 = vld [vmem:[%s1822_s11 + $0x120] sm:$0xff]  ;;  %v285_v12 = vld [vmem:[%s1822_s11 + $0x128] sm:$0xff] }
  0x1c   : > { %1577 = vmatprep.mubr.msk.f32.mxu1 %vm313_vm0, %v282_v6  ;;  %v254_v13 = vld [vmem:[%s1822_s11 + $0x30] sm:$0xff]  ;;  %v255_v15 = vld [vmem:[%s1822_s11 + $0x38] sm:$0xff]  ;;  %v256_v17 = vld [vmem:[%s1822_s11 + $0x40] sm:$0xff] }
  0x1d   : > { %v286_v14 = vld [vmem:[%s1822_s11 + $0x130] sm:$0xff]  ;;  %v287_v16 = vld [vmem:[%s1822_s11 + $0x138] sm:$0xff]  ;;  %v288_v18 = vld [vmem:[%s1822_s11 + $0x140] sm:$0xff] }
  0x1e   : > { %1530 = vmatmul.mubr.msk.f32.gmra.mrb[2].mxu0 %vm313_vm0, %v251_v7  ;;  %v257_v19 = vld [vmem:[%s1822_s11 + $0x48] sm:$0xff]  ;;  %v258_v21 = vld [vmem:[%s1822_s11 + $0x50] sm:$0xff]  ;;  %v259_v23 = vld [vmem:[%s1822_s11 + $0x58] sm:$0xff] }
  0x1f   : > { %1578 = vmatmul.mubr.msk.f32.gmra.mrb[2].mxu1 %vm313_vm0, %v283_v8  ;;  %1532 = vmatprep.mubr.msk.f32.mxu0 %vm313_vm0, %v252_v9  ;;  %v289_v20 = vld [vmem:[%s1822_s11 + $0x148] sm:$0xff]  ;;  %v290_v22 = vld [vmem:[%s1822_s11 + $0x150] sm:$0xff]  ;;  %v291_v24 = vld [vmem:[%s1822_s11 + $0x158] sm:$0xff] }
  0x20   : > { %1580 = vmatprep.mubr.msk.f32.mxu1 %vm313_vm0, %v284_v10  ;;  %v260_v25 = vld [vmem:[%s1822_s11 + $0x60] sm:$0xff]  ;;  %v261_v27 = vld [vmem:[%s1822_s11 + $0x68] sm:$0xff]  ;;  %v262_v29 = vld [vmem:[%s1822_s11 + $0x70] sm:$0xff] }
  0x21   : > { %v292_v26 = vld [vmem:[%s1822_s11 + $0x160] sm:$0xff]  ;;  %v293_v28 = vld [vmem:[%s1822_s11 + $0x168] sm:$0xff]  ;;  %v294_v30 = vld [vmem:[%s1822_s11 + $0x170] sm:$0xff] }
  0x22   : > { %1533 = vmatmul.mubr.msk.f32.gmra.mrb[4].mxu0 %vm313_vm0, %v253_v11  ;;  %v263_v31 = vld [vmem:[%s1822_s11 + $0x78] sm:$0xff]  ;;  %v264_v33 = vld [vmem:[%s1822_s11 + $0x80] sm:$0xff]  ;;  %v265_v35 = vld [vmem:[%s1822_s11 + $0x88] sm:$0xff] }
  0x23   : > { %1581 = vmatmul.mubr.msk.f32.gmra.mrb[4].mxu1 %vm313_vm0, %v285_v12  ;;  %1535 = vmatprep.mubr.msk.f32.mxu0 %vm313_vm0, %v254_v13  ;;  %v295_v32 = vld [vmem:[%s1822_s11 + $0x178] sm:$0xff]  ;;  %v296_v34 = vld [vmem:[%s1822_s11 + $0x180] sm:$0xff]  ;;  %v297_v36 = vld [vmem:[%s1822_s11 + $0x188] sm:$0xff] }
  0x24   : > { %1583 = vmatprep.mubr.msk.f32.mxu1 %vm313_vm0, %v286_v14  ;;  %v266_v37 = vld [vmem:[%s1822_s11 + $0x90] sm:$0xff]  ;;  %v267_v39 = vld [vmem:[%s1822_s11 + $0x98] sm:$0xff]  ;;  %v268_v41 = vld [vmem:[%s1822_s11 + $0xa0] sm:$0xff] }
  0x25   : > { %v298_v38 = vld [vmem:[%s1822_s11 + $0x190] sm:$0xff]  ;;  %v299_v40 = vld [vmem:[%s1822_s11 + $0x198] sm:$0xff]  ;;  %v300_v42 = vld [vmem:[%s1822_s11 + $0x1a0] sm:$0xff] }
  0x26   : > { %1536 = vmatmul.mubr.msk.f32.gmra.mrb[6].mxu0 %vm313_vm0, %v255_v15  ;;  %v269_v43 = vld [vmem:[%s1822_s11 + $0xa8] sm:$0xff]  ;;  %v270_v45 = vld [vmem:[%s1822_s11 + $0xb0] sm:$0xff]  ;;  %v271_v47 = vld [vmem:[%s1822_s11 + $0xb8] sm:$0xff] }
  0x27   : > { %1584 = vmatmul.mubr.msk.f32.gmra.mrb[6].mxu1 %vm313_vm0, %v287_v16  ;;  %1538 = vmatprep.mubr.msk.f32.mxu0 %vm313_vm0, %v256_v17  ;;  %v301_v44 = vld [vmem:[%s1822_s11 + $0x1a8] sm:$0xff]  ;;  %v302_v46 = vld [vmem:[%s1822_s11 + $0x1b0] sm:$0xff]  ;;  %v303_v48 = vld [vmem:[%s1822_s11 + $0x1b8] sm:$0xff] }
  0x28   : > { %1586 = vmatprep.mubr.msk.f32.mxu1 %vm313_vm0, %v288_v18  ;;  %v272_v49 = vld [vmem:[%s1822_s11 + $0xc0] sm:$0xff]  ;;  %v273_v51 = vld [vmem:[%s1822_s11 + $0xc8] sm:$0xff]  ;;  %v274_v53 = vld [vmem:[%s1822_s11 + $0xd0] sm:$0xff] }
  0x29   : > { %v304_v50 = vld [vmem:[%s1822_s11 + $0x1c0] sm:$0xff]  ;;  %v305_v52 = vld [vmem:[%s1822_s11 + $0x1c8] sm:$0xff]  ;;  %v306_v54 = vld [vmem:[%s1822_s11 + $0x1d0] sm:$0xff] }
  0x2a   : > { %1539 = vmatmul.mubr.msk.f32.gmra.mrb[8].mxu0 %vm313_vm0, %v257_v19  ;;  %v275_v55 = vld [vmem:[%s1822_s11 + $0xd8] sm:$0xff]  ;;  %v276_v57 = vld [vmem:[%s1822_s11 + $0xe0] sm:$0xff]  ;;  %v277_v59 = vld [vmem:[%s1822_s11 + $0xe8] sm:$0xff] }
  0x2b   : > { %1587 = vmatmul.mubr.msk.f32.gmra.mrb[8].mxu1 %vm313_vm0, %v289_v20  ;;  %1541 = vmatprep.mubr.msk.f32.mxu0 %vm313_vm0, %v258_v21  ;;  %v307_v56 = vld [vmem:[%s1822_s11 + $0x1d8] sm:$0xff]  ;;  %v308_v58 = vld [vmem:[%s1822_s11 + $0x1e0] sm:$0xff]  ;;  %v309_v60 = vld [vmem:[%s1822_s11 + $0x1e8] sm:$0xff] }
  0x2c   : > { %1589 = vmatprep.mubr.msk.f32.mxu1 %vm313_vm0, %v290_v22  ;;  %v278_v61 = vld [vmem:[%s1822_s11 + $0xf0] sm:$0xff]  ;;  %v279_v63 = vld [vmem:[%s1822_s11 + $0xf8] sm:$0xff]  ;;  %v1955_v1 = vld [vmem:[%s2351_s2] ss:$0 sm:$0xff] }
  0x2d   : > { %v310_v62 = vld [vmem:[%s1822_s11 + $0x1f0] sm:$0xff]  ;;  %v311_v0 = vld [vmem:[%s1822_s11 + $0x1f8] sm:$0xff]  ;;  %v1968_v3 = vld [vmem:[%s2352_s3] ss:$0 sm:$0xff]  ;;  %s1665_s11 = scalar_lea.vmem %s2296_s7, 8192 }
  0x2e   : > { %1542 = vmatmul.mubr.msk.f32.gmra.mrb[10].mxu0 %vm313_vm0, %v259_v23  ;;  %v1034_v9 = vld [vmem:[%s1962_s16 + $0x8] sm:$0xff]  ;;  %v1033_v15 = vld [vmem:[%s1962_s16] sm:$0xff]  ;;  %p1666_p11 = scmp.ne.s32.totalorder %s2296_s7, %s1665_s11  ;;  %p1673_p1 = scmp.lt.s32.totalorder %s1671_s14, %s1665_s11 }
  0x2f   : > { %1590 = vmatmul.mubr.msk.f32.gmra.mrb[10].mxu1 %vm313_vm0, %v291_v24  ;;  %1544 = vmatprep.mubr.msk.f32.mxu0 %vm313_vm0, %v260_v25  ;;  %v1066_v10 = vld [vmem:[%s1962_s16 + $0x108] sm:$0xff]  ;;  %v1065_v16 = vld [vmem:[%s1962_s16 + $0x100] sm:$0xff] }
  0x30   : > { %1592 = vmatprep.mubr.msk.f32.mxu1 %vm313_vm0, %v292_v26  ;;  %p1667_p12 = pnand %p1666_p11, %p1800_p5  ;;  %p1674_p2 = por %p1673_p1, %p1672_p0 }
  0x32   : > { %1545 = vmatmul.mubr.msk.f32.gmra.mrb[12].mxu0 %vm313_vm0, %v261_v27  ;;  %p1668_p13 = pneg %p1667_p12 }
  0x33   : > { %1593 = vmatmul.mubr.msk.f32.gmra.mrb[12].mxu1 %vm313_vm0, %v293_v28  ;;  %1547 = vmatprep.mubr.msk.f32.mxu0 %vm313_vm0, %v262_v29  ;;  %v1036_v29 = vld [vmem:[%s1962_s16 + $0x18] sm:$0xff] }
  0x34   : > { %1595 = vmatprep.mubr.msk.f32.mxu1 %vm313_vm0, %v294_v30  ;;  %v1068_v30 = vld [vmem:[%s1962_s16 + $0x118] sm:$0xff]  ;;  %p1675_p3 = pnand %p1674_p2, %p1668_p13 }
  0x36   : > { %1548 = vmatmul.mubr.msk.f32.gmra.mrb[14].mxu0 %vm313_vm0, %v263_v31 }
  0x37   : > { %1596 = vmatmul.mubr.msk.f32.gmra.mrb[14].mxu1 %vm313_vm0, %v295_v32  ;;  %1550 = vmatprep.mubr.msk.f32.mxu0 %vm313_vm0, %v264_v33 }
  0x38   : > { %1598 = vmatprep.mubr.msk.f32.mxu1 %vm313_vm0, %v296_v34 }
  0x3a   : > { %1551 = vmatmul.mubr.msk.f32.gmra.mrb[16].mxu0 %vm313_vm0, %v265_v35 }
  0x3b   : > { %1599 = vmatmul.mubr.msk.f32.gmra.mrb[16].mxu1 %vm313_vm0, %v297_v36  ;;  %1553 = vmatprep.mubr.msk.f32.mxu0 %vm313_vm0, %v266_v37  ;;  %v1035_v37 = vld [vmem:[%s1962_s16 + $0x10] sm:$0xff] }
  0x3c   : > { %1601 = vmatprep.mubr.msk.f32.mxu1 %vm313_vm0, %v298_v38  ;;  %v1067_v38 = vld [vmem:[%s1962_s16 + $0x110] sm:$0xff] }
  0x3e   : > { %1554 = vmatmul.mubr.msk.f32.gmra.mrb[18].mxu0 %vm313_vm0, %v267_v39 }
  0x3f   : > { %1602 = vmatmul.mubr.msk.f32.gmra.mrb[18].mxu1 %vm313_vm0, %v299_v40  ;;  %1556 = vmatprep.mubr.msk.f32.mxu0 %vm313_vm0, %v268_v41 }
  0x40   : > { %1604 = vmatprep.mubr.msk.f32.mxu1 %vm313_vm0, %v300_v42 }
  0x42   : > { %1557 = vmatmul.mubr.msk.f32.gmra.mrb[20].mxu0 %vm313_vm0, %v269_v43 }
  0x43   : > { %1605 = vmatmul.mubr.msk.f32.gmra.mrb[20].mxu1 %vm313_vm0, %v301_v44  ;;  %1559 = vmatprep.mubr.msk.f32.mxu0 %vm313_vm0, %v270_v45 }
  0x44   : > { %1607 = vmatprep.mubr.msk.f32.mxu1 %vm313_vm0, %v302_v46 }
  0x46   : > { %1560 = vmatmul.mubr.msk.f32.gmra.mrb[22].mxu0 %vm313_vm0, %v271_v47 }
  0x47   : > { %1608 = vmatmul.mubr.msk.f32.gmra.mrb[22].mxu1 %vm313_vm0, %v303_v48  ;;  %1562 = vmatprep.mubr.msk.f32.mxu0 %vm313_vm0, %v272_v49 }
  0x48   : > { %1610 = vmatprep.mubr.msk.f32.mxu1 %vm313_vm0, %v304_v50 }
  0x4a   : > { %1563 = vmatmul.mubr.msk.f32.gmra.mrb[24].mxu0 %vm313_vm0, %v273_v51 }
  0x4b   : > { %1611 = vmatmul.mubr.msk.f32.gmra.mrb[24].mxu1 %vm313_vm0, %v305_v52  ;;  %1565 = vmatprep.mubr.msk.f32.mxu0 %vm313_vm0, %v274_v53  ;;  %v1038_v53 = vld [vmem:[%s1962_s16 + $0x28] sm:$0xff] }
  0x4c   : > { %1613 = vmatprep.mubr.msk.f32.mxu1 %vm313_vm0, %v306_v54  ;;  %v1070_v54 = vld [vmem:[%s1962_s16 + $0x128] sm:$0xff] }
  0x4e   : > { %1566 = vmatmul.mubr.msk.f32.gmra.mrb[26].mxu0 %vm313_vm0, %v275_v55 }
  0x4f   : > { %1614 = vmatmul.mubr.msk.f32.gmra.mrb[26].mxu1 %vm313_vm0, %v307_v56  ;;  %1568 = vmatprep.mubr.msk.f32.mxu0 %vm313_vm0, %v276_v57 }
  0x50   : > { %1616 = vmatprep.mubr.msk.f32.mxu1 %vm313_vm0, %v308_v58 }
  0x52   : > { %1569 = vmatmul.mubr.msk.f32.gmra.mrb[28].mxu0 %vm313_vm0, %v277_v59 }
  0x53   : > { %1617 = vmatmul.mubr.msk.f32.gmra.mrb[28].mxu1 %vm313_vm0, %v309_v60  ;;  %1571 = vmatprep.mubr.msk.f32.mxu0 %vm313_vm0, %v278_v61  ;;  %v1037_v61 = vld [vmem:[%s1962_s16 + $0x20] sm:$0xff] }
  0x54   : > { %1619 = vmatprep.mubr.msk.f32.mxu1 %vm313_vm0, %v310_v62  ;;  %v1069_v62 = vld [vmem:[%s1962_s16 + $0x120] sm:$0xff] }
  0x56   : > { %1572 = vmatmul.mubr.msk.f32.gmra.mrb[30].mxu0 %vm313_vm0, %v279_v63 }
  0x57   : > { %1620 = vmatmul.mubr.msk.f32.gmra.mrb[30].mxu1 %vm313_vm0, %v311_v0 }
  0xed   : > { %v1528_v2 = vpop.f32.mrb[0].mxu0 }
  0xee   : > { %v1576_v4 = vpop.f32.mrb[0].mxu1  ;;  %v899_v5 = vmul.f32 %v1528_v2, %v1955_v1  ;;  %v572_v7 = vpop.f32.mrb[1].mxu0 }
  0xef   : > { %v931_v6 = vmul.f32 %v1576_v4, %v1955_v1  ;;  %v732_v8 = vpop.f32.mrb[1].mxu1  ;;  %v898_v11 = vmul.f32 %v1955_v1, %v572_v7 }
  0xf0   : > { %v930_v12 = vmul.f32 %v1955_v1, %v732_v8  ;;  %v970_v13 = vadd.f32 %v1968_v3, %v899_v5 }
  0xf1   : > { %v1002_v14 = vadd.f32 %v1968_v3, %v931_v6  ;;  %v969_v17 = vadd.f32 %v1968_v3, %v898_v11  ;;  %v1531_v19 = vpop.f32.mrb[2].mxu0 }
  0xf2   : > { %v1001_v18 = vadd.f32 %v1968_v3, %v930_v12  ;;  %v1579_v20 = vpop.f32.mrb[2].mxu1  ;;  %v1098_v21 = vadd.f32 %v1034_v9, %v970_v13  ;;  %v901_v23 = vmul.f32 %v1531_v19, %v1955_v1  ;;  %v582_v25 = vpop.f32.mrb[3].mxu0 }
  0xf3   : > { %v1130_v22 = vadd.f32 %v1066_v10, %v1002_v14  ;;  %v933_v24 = vmul.f32 %v1579_v20, %v1955_v1  ;;  %v742_v26 = vpop.f32.mrb[3].mxu1  ;;  %v1097_v27 = vadd.f32 %v1033_v15, %v969_v17  ;;  %v900_v31 = vmul.f32 %v1955_v1, %v582_v25  ;;  %v1040_v15 = vld [vmem:[%s1962_s16 + $0x38] sm:$0xff] }
  0xf4   : > { %v1129_v28 = vadd.f32 %v1065_v16, %v1001_v18  ;;  %v932_v32 = vmul.f32 %v1955_v1, %v742_v26  ;;  %v1162_v33 = vmax.f32 %v1098_v21, 0.0  ;;  %v972_v35 = vadd.f32 %v1968_v3, %v901_v23  ;;  %v1072_v16 = vld [vmem:[%s1962_s16 + $0x138] sm:$0xff]  ;;  %v1039_v23 = vld [vmem:[%s1962_s16 + $0x30] sm:$0xff] }
  0xf5   : > { %v1194_v34 = vmax.f32 %v1130_v22, 0.0  ;;  %v1004_v36 = vadd.f32 %v1968_v3, %v933_v24  ;;  %v1161_v39 = vmax.f32 %v1097_v27, 0.0  ;;  %v971_v41 = vadd.f32 %v1968_v3, %v900_v31  ;;  %v1534_v43 = vpop.f32.mrb[4].mxu0  ;;  %v1071_v24 = vld [vmem:[%s1962_s16 + $0x130] sm:$0xff] }
  0xf6   : > { %v1193_v40 = vmax.f32 %v1129_v28, 0.0  ;;  %v1003_v42 = vadd.f32 %v1968_v3, %v932_v32  ;;  %v1582_v44 = vpop.f32.mrb[4].mxu1  ;;  %1227 = vst.msk [vmem:[%s1999_s30 + $0x8] sm:$0xff] %vm1225_vm1, %v1162_v33  ;;  %v1100_v45 = vadd.f32 %v1036_v29, %v972_v35  ;;  %v903_v47 = vmul.f32 %v1534_v43, %v1955_v1  ;;  %v592_v49 = vpop.f32.mrb[5].mxu0 }
  0xf7   : > { %1259 = vst.msk [vmem:[%s1999_s30 + $0x108] sm:$0xff] %vm1225_vm1, %v1194_v34  ;;  %v1132_v46 = vadd.f32 %v1068_v30, %v1004_v36  ;;  %v935_v48 = vmul.f32 %v1582_v44, %v1955_v1  ;;  %v752_v50 = vpop.f32.mrb[5].mxu1  ;;  %1226 = vst.msk [vmem:[%s1999_s30] sm:$0xff] %vm1225_vm1, %v1161_v39  ;;  %v1099_v51 = vadd.f32 %v1035_v37, %v971_v41  ;;  %v1042_v39 = vld [vmem:[%s1962_s16 + $0x48] sm:$0xff] }
  0xf8   : > { %1258 = vst.msk [vmem:[%s1999_s30 + $0x100] sm:$0xff] %vm1225_vm1, %v1193_v40  ;;  %v1131_v52 = vadd.f32 %v1067_v38, %v1003_v42  ;;  %v902_v55 = vmul.f32 %v1955_v1, %v592_v49  ;;  %v934_v56 = vmul.f32 %v1955_v1, %v752_v50  ;;  %v1164_v57 = vmax.f32 %v1100_v45, 0.0  ;;  %v1074_v40 = vld [vmem:[%s1962_s16 + $0x148] sm:$0xff] }
  0xf9   : > { %v1196_v58 = vmax.f32 %v1132_v46, 0.0  ;;  %v974_v59 = vadd.f32 %v1968_v3, %v903_v47  ;;  %v1006_v60 = vadd.f32 %v1968_v3, %v935_v48  ;;  %v1163_v63 = vmax.f32 %v1099_v51, 0.0  ;;  %v1537_v5 = vpop.f32.mrb[6].mxu0  ;;  %v1041_v47 = vld [vmem:[%s1962_s16 + $0x40] sm:$0xff] }
  0xfa   : > { %v1195_v0 = vmax.f32 %v1131_v52, 0.0  ;;  %v973_v2 = vadd.f32 %v1968_v3, %v902_v55  ;;  %v1005_v4 = vadd.f32 %v1968_v3, %v934_v56  ;;  %v1585_v6 = vpop.f32.mrb[6].mxu1  ;;  %1229 = vst.msk [vmem:[%s1999_s30 + $0x18] sm:$0xff] %vm1225_vm1, %v1164_v57  ;;  %v905_v9 = vmul.f32 %v1537_v5, %v1955_v1  ;;  %v602_v11 = vpop.f32.mrb[7].mxu0  ;;  %v1073_v48 = vld [vmem:[%s1962_s16 + $0x140] sm:$0xff] }
  0xfb   : > { %1261 = vst.msk [vmem:[%s1999_s30 + $0x118] sm:$0xff] %vm1225_vm1, %v1196_v58  ;;  %v1102_v7 = vadd.f32 %v1038_v53, %v974_v59  ;;  %v1134_v8 = vadd.f32 %v1070_v54, %v1006_v60  ;;  %v937_v10 = vmul.f32 %v1585_v6, %v1955_v1  ;;  %v762_v12 = vpop.f32.mrb[7].mxu1  ;;  %1228 = vst.msk [vmem:[%s1999_s30 + $0x10] sm:$0xff] %vm1225_vm1, %v1163_v63  ;;  %v1044_v63 = vld [vmem:[%s1962_s16 + $0x58] sm:$0xff] }
  0xfc   : > { %1260 = vst.msk [vmem:[%s1999_s30 + $0x110] sm:$0xff] %vm1225_vm1, %v1195_v0  ;;  %v1101_v13 = vadd.f32 %v1037_v61, %v973_v2  ;;  %v1133_v14 = vadd.f32 %v1069_v62, %v1005_v4  ;;  %v904_v17 = vmul.f32 %v1955_v1, %v602_v11  ;;  %v936_v18 = vmul.f32 %v1955_v1, %v762_v12  ;;  %v1076_v0 = vld [vmem:[%s1962_s16 + $0x158] sm:$0xff] }
  0xfd   : > { %v1166_v19 = vmax.f32 %v1102_v7, 0.0  ;;  %v1198_v20 = vmax.f32 %v1134_v8, 0.0  ;;  %v976_v21 = vadd.f32 %v1968_v3, %v905_v9  ;;  %v1008_v22 = vadd.f32 %v1968_v3, %v937_v10  ;;  %v1540_v29 = vpop.f32.mrb[8].mxu0  ;;  %v1043_v9 = vld [vmem:[%s1962_s16 + $0x50] sm:$0xff] }
  0xfe   : > { %v1165_v25 = vmax.f32 %v1101_v13, 0.0  ;;  %v1197_v26 = vmax.f32 %v1133_v14, 0.0  ;;  %v975_v27 = vadd.f32 %v1968_v3, %v904_v17  ;;  %v1007_v28 = vadd.f32 %v1968_v3, %v936_v18  ;;  %v1588_v30 = vpop.f32.mrb[8].mxu1  ;;  %v612_v35 = vpop.f32.mrb[9].mxu0  ;;  %v1075_v10 = vld [vmem:[%s1962_s16 + $0x150] sm:$0xff] }
  0xff   : > { %1231 = vst.msk [vmem:[%s1999_s30 + $0x28] sm:$0xff] %vm1225_vm1, %v1166_v19  ;;  %1263 = vst.msk [vmem:[%s1999_s30 + $0x128] sm:$0xff] %vm1225_vm1, %v1198_v20  ;;  %v1104_v31 = vadd.f32 %v1040_v15, %v976_v21  ;;  %v1136_v32 = vadd.f32 %v1072_v16, %v1008_v22  ;;  %v907_v33 = vmul.f32 %v1540_v29, %v1955_v1  ;;  %v772_v36 = vpop.f32.mrb[9].mxu1 }
 0x100   : > { %v939_v34 = vmul.f32 %v1588_v30, %v1955_v1  ;;  %1230 = vst.msk [vmem:[%s1999_s30 + $0x20] sm:$0xff] %vm1225_vm1, %v1165_v25  ;;  %1262 = vst.msk [vmem:[%s1999_s30 + $0x120] sm:$0xff] %vm1225_vm1, %v1197_v26  ;;  %v1103_v37 = vadd.f32 %v1039_v23, %v975_v27  ;;  %v1135_v38 = vadd.f32 %v1071_v24, %v1007_v28  ;;  %v1046_v25 = vld [vmem:[%s1962_s16 + $0x68] sm:$0xff] }
 0x101   : > { %v906_v41 = vmul.f32 %v1955_v1, %v612_v35  ;;  %v938_v42 = vmul.f32 %v1955_v1, %v772_v36  ;;  %v1168_v43 = vmax.f32 %v1104_v31, 0.0  ;;  %v1200_v44 = vmax.f32 %v1136_v32, 0.0  ;;  %v1543_v53 = vpop.f32.mrb[10].mxu0  ;;  %v1078_v26 = vld [vmem:[%s1962_s16 + $0x168] sm:$0xff] }
 0x102   : > { %v978_v45 = vadd.f32 %v1968_v3, %v907_v33  ;;  %v1010_v46 = vadd.f32 %v1968_v3, %v939_v34  ;;  %v1167_v49 = vmax.f32 %v1103_v37, 0.0  ;;  %v1199_v50 = vmax.f32 %v1135_v38, 0.0  ;;  %v1591_v54 = vpop.f32.mrb[10].mxu1  ;;  %v622_v59 = vpop.f32.mrb[11].mxu0  ;;  %v1045_v33 = vld [vmem:[%s1962_s16 + $0x60] sm:$0xff] }
 0x103   : > { %v977_v51 = vadd.f32 %v1968_v3, %v906_v41  ;;  %v1009_v52 = vadd.f32 %v1968_v3, %v938_v42  ;;  %1233 = vst.msk [vmem:[%s1999_s30 + $0x38] sm:$0xff] %vm1225_vm1, %v1168_v43  ;;  %1265 = vst.msk [vmem:[%s1999_s30 + $0x138] sm:$0xff] %vm1225_vm1, %v1200_v44  ;;  %v909_v57 = vmul.f32 %v1543_v53, %v1955_v1  ;;  %v782_v60 = vpop.f32.mrb[11].mxu1  ;;  %v1077_v34 = vld [vmem:[%s1962_s16 + $0x160] sm:$0xff] }
 0x104   : > { %v1106_v55 = vadd.f32 %v1042_v39, %v978_v45  ;;  %v1138_v56 = vadd.f32 %v1074_v40, %v1010_v46  ;;  %v941_v58 = vmul.f32 %v1591_v54, %v1955_v1  ;;  %1232 = vst.msk [vmem:[%s1999_s30 + $0x30] sm:$0xff] %vm1225_vm1, %v1167_v49  ;;  %1264 = vst.msk [vmem:[%s1999_s30 + $0x130] sm:$0xff] %vm1225_vm1, %v1199_v50  ;;  %v1048_v49 = vld [vmem:[%s1962_s16 + $0x78] sm:$0xff] }
 0x105   : > { %v1105_v61 = vadd.f32 %v1041_v47, %v977_v51  ;;  %v1137_v62 = vadd.f32 %v1073_v48, %v1009_v52  ;;  %v908_v2 = vmul.f32 %v1955_v1, %v622_v59  ;;  %v940_v4 = vmul.f32 %v1955_v1, %v782_v60  ;;  %v1546_v15 = vpop.f32.mrb[12].mxu0  ;;  %v1080_v50 = vld [vmem:[%s1962_s16 + $0x178] sm:$0xff] }
 0x106   : > { %v1170_v5 = vmax.f32 %v1106_v55, 0.0  ;;  %v1202_v6 = vmax.f32 %v1138_v56, 0.0  ;;  %v980_v7 = vadd.f32 %v1968_v3, %v909_v57  ;;  %v1012_v8 = vadd.f32 %v1968_v3, %v941_v58  ;;  %v1594_v16 = vpop.f32.mrb[12].mxu1  ;;  %v632_v21 = vpop.f32.mrb[13].mxu0  ;;  %v1047_v57 = vld [vmem:[%s1962_s16 + $0x70] sm:$0xff] }
 0x107   : > { %v1169_v11 = vmax.f32 %v1105_v61, 0.0  ;;  %v1201_v12 = vmax.f32 %v1137_v62, 0.0  ;;  %v979_v13 = vadd.f32 %v1968_v3, %v908_v2  ;;  %v1011_v14 = vadd.f32 %v1968_v3, %v940_v4  ;;  %v792_v22 = vpop.f32.mrb[13].mxu1  ;;  %v1079_v58 = vld [vmem:[%s1962_s16 + $0x170] sm:$0xff] }
 0x108   : > { %1235 = vst.msk [vmem:[%s1999_s30 + $0x48] sm:$0xff] %vm1225_vm1, %v1170_v5  ;;  %1267 = vst.msk [vmem:[%s1999_s30 + $0x148] sm:$0xff] %vm1225_vm1, %v1202_v6  ;;  %v1108_v17 = vadd.f32 %v1044_v63, %v980_v7  ;;  %v1140_v18 = vadd.f32 %v1076_v0, %v1012_v8  ;;  %v911_v19 = vmul.f32 %v1546_v15, %v1955_v1 }
 0x109   : > { %v943_v20 = vmul.f32 %v1594_v16, %v1955_v1  ;;  %1234 = vst.msk [vmem:[%s1999_s30 + $0x40] sm:$0xff] %vm1225_vm1, %v1169_v11  ;;  %1266 = vst.msk [vmem:[%s1999_s30 + $0x140] sm:$0xff] %vm1225_vm1, %v1201_v12  ;;  %v1107_v23 = vadd.f32 %v1043_v9, %v979_v13  ;;  %v1139_v24 = vadd.f32 %v1075_v10, %v1011_v14  ;;  %v1549_v39 = vpop.f32.mrb[14].mxu0  ;;  %v1050_v11 = vld [vmem:[%s1962_s16 + $0x88] sm:$0xff] }
 0x10a   : > { %v910_v27 = vmul.f32 %v1955_v1, %v632_v21  ;;  %v942_v28 = vmul.f32 %v1955_v1, %v792_v22  ;;  %v1172_v29 = vmax.f32 %v1108_v17, 0.0  ;;  %v1204_v30 = vmax.f32 %v1140_v18, 0.0  ;;  %v1597_v40 = vpop.f32.mrb[14].mxu1  ;;  %v642_v45 = vpop.f32.mrb[15].mxu0  ;;  %v1082_v12 = vld [vmem:[%s1962_s16 + $0x188] sm:$0xff] }
 0x10b   : > { %v982_v31 = vadd.f32 %v1968_v3, %v911_v19  ;;  %v1014_v32 = vadd.f32 %v1968_v3, %v943_v20  ;;  %v1171_v35 = vmax.f32 %v1107_v23, 0.0  ;;  %v1203_v36 = vmax.f32 %v1139_v24, 0.0  ;;  %v802_v46 = vpop.f32.mrb[15].mxu1  ;;  %v1049_v19 = vld [vmem:[%s1962_s16 + $0x80] sm:$0xff] }
 0x10c   : > { %v981_v37 = vadd.f32 %v1968_v3, %v910_v27  ;;  %v1013_v38 = vadd.f32 %v1968_v3, %v942_v28  ;;  %1237 = vst.msk [vmem:[%s1999_s30 + $0x58] sm:$0xff] %vm1225_vm1, %v1172_v29  ;;  %1269 = vst.msk [vmem:[%s1999_s30 + $0x158] sm:$0xff] %vm1225_vm1, %v1204_v30  ;;  %v913_v43 = vmul.f32 %v1549_v39, %v1955_v1  ;;  %v1081_v20 = vld [vmem:[%s1962_s16 + $0x180] sm:$0xff] }
 0x10d   : > { %v1110_v41 = vadd.f32 %v1046_v25, %v982_v31  ;;  %v1142_v42 = vadd.f32 %v1078_v26, %v1014_v32  ;;  %v945_v44 = vmul.f32 %v1597_v40, %v1955_v1  ;;  %1236 = vst.msk [vmem:[%s1999_s30 + $0x50] sm:$0xff] %vm1225_vm1, %v1171_v35  ;;  %1268 = vst.msk [vmem:[%s1999_s30 + $0x150] sm:$0xff] %vm1225_vm1, %v1203_v36  ;;  %v1552_v63 = vpop.f32.mrb[16].mxu0  ;;  %v1052_v35 = vld [vmem:[%s1962_s16 + $0x98] sm:$0xff] }
 0x10e   : > { %v1109_v47 = vadd.f32 %v1045_v33, %v981_v37  ;;  %v1141_v48 = vadd.f32 %v1077_v34, %v1013_v38  ;;  %v912_v51 = vmul.f32 %v1955_v1, %v642_v45  ;;  %v944_v52 = vmul.f32 %v1955_v1, %v802_v46  ;;  %v1600_v0 = vpop.f32.mrb[16].mxu1  ;;  %v652_v7 = vpop.f32.mrb[17].mxu0  ;;  %v1084_v36 = vld [vmem:[%s1962_s16 + $0x198] sm:$0xff] }
 0x10f   : > { %v1174_v53 = vmax.f32 %v1110_v41, 0.0  ;;  %v1206_v54 = vmax.f32 %v1142_v42, 0.0  ;;  %v984_v55 = vadd.f32 %v1968_v3, %v913_v43  ;;  %v1016_v56 = vadd.f32 %v1968_v3, %v945_v44  ;;  %v812_v8 = vpop.f32.mrb[17].mxu1  ;;  %v1051_v43 = vld [vmem:[%s1962_s16 + $0x90] sm:$0xff] }
 0x110   : > { %v1173_v59 = vmax.f32 %v1109_v47, 0.0  ;;  %v1205_v60 = vmax.f32 %v1141_v48, 0.0  ;;  %v983_v61 = vadd.f32 %v1968_v3, %v912_v51  ;;  %v1015_v62 = vadd.f32 %v1968_v3, %v944_v52  ;;  %v1083_v44 = vld [vmem:[%s1962_s16 + $0x190] sm:$0xff] }
 0x111   : > { %1239 = vst.msk [vmem:[%s1999_s30 + $0x68] sm:$0xff] %vm1225_vm1, %v1174_v53  ;;  %1271 = vst.msk [vmem:[%s1999_s30 + $0x168] sm:$0xff] %vm1225_vm1, %v1206_v54  ;;  %v1112_v2 = vadd.f32 %v1048_v49, %v984_v55  ;;  %v1144_v4 = vadd.f32 %v1080_v50, %v1016_v56  ;;  %v915_v5 = vmul.f32 %v1552_v63, %v1955_v1  ;;  %v1555_v25 = vpop.f32.mrb[18].mxu0 }
 0x112   : > { %v947_v6 = vmul.f32 %v1600_v0, %v1955_v1  ;;  %1238 = vst.msk [vmem:[%s1999_s30 + $0x60] sm:$0xff] %vm1225_vm1, %v1173_v59  ;;  %1270 = vst.msk [vmem:[%s1999_s30 + $0x160] sm:$0xff] %vm1225_vm1, %v1205_v60  ;;  %v1111_v9 = vadd.f32 %v1047_v57, %v983_v61  ;;  %v1143_v10 = vadd.f32 %v1079_v58, %v1015_v62  ;;  %v1603_v26 = vpop.f32.mrb[18].mxu1  ;;  %v662_v31 = vpop.f32.mrb[19].mxu0  ;;  %v1054_v59 = vld [vmem:[%s1962_s16 + $0xa8] sm:$0xff] }
 0x113   : > { %v914_v13 = vmul.f32 %v1955_v1, %v652_v7  ;;  %v946_v14 = vmul.f32 %v1955_v1, %v812_v8  ;;  %v1176_v15 = vmax.f32 %v1112_v2, 0.0  ;;  %v1208_v16 = vmax.f32 %v1144_v4, 0.0  ;;  %v822_v32 = vpop.f32.mrb[19].mxu1  ;;  %v1086_v60 = vld [vmem:[%s1962_s16 + $0x1a8] sm:$0xff] }
 0x114   : > { %v986_v17 = vadd.f32 %v1968_v3, %v915_v5  ;;  %v1018_v18 = vadd.f32 %v1968_v3, %v947_v6  ;;  %v1175_v21 = vmax.f32 %v1111_v9, 0.0  ;;  %v1207_v22 = vmax.f32 %v1143_v10, 0.0  ;;  %v1053_v5 = vld [vmem:[%s1962_s16 + $0xa0] sm:$0xff] }
 0x115   : > { %v985_v23 = vadd.f32 %v1968_v3, %v914_v13  ;;  %v1017_v24 = vadd.f32 %v1968_v3, %v946_v14  ;;  %1241 = vst.msk [vmem:[%s1999_s30 + $0x78] sm:$0xff] %vm1225_vm1, %v1176_v15  ;;  %1273 = vst.msk [vmem:[%s1999_s30 + $0x178] sm:$0xff] %vm1225_vm1, %v1208_v16  ;;  %v917_v29 = vmul.f32 %v1555_v25, %v1955_v1  ;;  %v1558_v49 = vpop.f32.mrb[20].mxu0  ;;  %v1085_v6 = vld [vmem:[%s1962_s16 + $0x1a0] sm:$0xff] }
 0x116   : > { %v1114_v27 = vadd.f32 %v1050_v11, %v986_v17  ;;  %v1146_v28 = vadd.f32 %v1082_v12, %v1018_v18  ;;  %v949_v30 = vmul.f32 %v1603_v26, %v1955_v1  ;;  %1240 = vst.msk [vmem:[%s1999_s30 + $0x70] sm:$0xff] %vm1225_vm1, %v1175_v21  ;;  %1272 = vst.msk [vmem:[%s1999_s30 + $0x170] sm:$0xff] %vm1225_vm1, %v1207_v22  ;;  %v1606_v50 = vpop.f32.mrb[20].mxu1  ;;  %v672_v55 = vpop.f32.mrb[21].mxu0  ;;  %v1056_v21 = vld [vmem:[%s1962_s16 + $0xb8] sm:$0xff] }
 0x117   : > { %v1113_v33 = vadd.f32 %v1049_v19, %v985_v23  ;;  %v1145_v34 = vadd.f32 %v1081_v20, %v1017_v24  ;;  %v916_v37 = vmul.f32 %v1955_v1, %v662_v31  ;;  %v948_v38 = vmul.f32 %v1955_v1, %v822_v32  ;;  %v832_v56 = vpop.f32.mrb[21].mxu1  ;;  %v1088_v22 = vld [vmem:[%s1962_s16 + $0x1b8] sm:$0xff] }
 0x118   : > { %v1178_v39 = vmax.f32 %v1114_v27, 0.0  ;;  %v1210_v40 = vmax.f32 %v1146_v28, 0.0  ;;  %v988_v41 = vadd.f32 %v1968_v3, %v917_v29  ;;  %v1020_v42 = vadd.f32 %v1968_v3, %v949_v30  ;;  %v1055_v29 = vld [vmem:[%s1962_s16 + $0xb0] sm:$0xff] }
 0x119   : > { %v1177_v45 = vmax.f32 %v1113_v33, 0.0  ;;  %v1209_v46 = vmax.f32 %v1145_v34, 0.0  ;;  %v987_v47 = vadd.f32 %v1968_v3, %v916_v37  ;;  %v1019_v48 = vadd.f32 %v1968_v3, %v948_v38  ;;  %v1561_v11 = vpop.f32.mrb[22].mxu0  ;;  %v1087_v30 = vld [vmem:[%s1962_s16 + $0x1b0] sm:$0xff] }
 0x11a   : > { %1243 = vst.msk [vmem:[%s1999_s30 + $0x88] sm:$0xff] %vm1225_vm1, %v1178_v39  ;;  %1275 = vst.msk [vmem:[%s1999_s30 + $0x188] sm:$0xff] %vm1225_vm1, %v1210_v40  ;;  %v1116_v51 = vadd.f32 %v1052_v35, %v988_v41  ;;  %v1148_v52 = vadd.f32 %v1084_v36, %v1020_v42  ;;  %v919_v53 = vmul.f32 %v1558_v49, %v1955_v1  ;;  %v1609_v12 = vpop.f32.mrb[22].mxu1  ;;  %v682_v17 = vpop.f32.mrb[23].mxu0 }
 0x11b   : > { %v951_v54 = vmul.f32 %v1606_v50, %v1955_v1  ;;  %1242 = vst.msk [vmem:[%s1999_s30 + $0x80] sm:$0xff] %vm1225_vm1, %v1177_v45  ;;  %1274 = vst.msk [vmem:[%s1999_s30 + $0x180] sm:$0xff] %vm1225_vm1, %v1209_v46  ;;  %v1115_v57 = vadd.f32 %v1051_v43, %v987_v47  ;;  %v1147_v58 = vadd.f32 %v1083_v44, %v1019_v48  ;;  %v842_v18 = vpop.f32.mrb[23].mxu1  ;;  %v1058_v45 = vld [vmem:[%s1962_s16 + $0xc8] sm:$0xff] }
 0x11c   : > { %v918_v61 = vmul.f32 %v1955_v1, %v672_v55  ;;  %v950_v62 = vmul.f32 %v1955_v1, %v832_v56  ;;  %v1180_v63 = vmax.f32 %v1116_v51, 0.0  ;;  %v1212_v0 = vmax.f32 %v1148_v52, 0.0  ;;  %v1090_v46 = vld [vmem:[%s1962_s16 + $0x1c8] sm:$0xff] }
 0x11d   : > { %v990_v2 = vadd.f32 %v1968_v3, %v919_v53  ;;  %v1022_v4 = vadd.f32 %v1968_v3, %v951_v54  ;;  %v1179_v7 = vmax.f32 %v1115_v57, 0.0  ;;  %v1211_v8 = vmax.f32 %v1147_v58, 0.0  ;;  %v1564_v35 = vpop.f32.mrb[24].mxu0  ;;  %v1057_v53 = vld [vmem:[%s1962_s16 + $0xc0] sm:$0xff] }
 0x11e   : > { %v989_v9 = vadd.f32 %v1968_v3, %v918_v61  ;;  %v1021_v10 = vadd.f32 %v1968_v3, %v950_v62  ;;  %1245 = vst.msk [vmem:[%s1999_s30 + $0x98] sm:$0xff] %vm1225_vm1, %v1180_v63  ;;  %1277 = vst.msk [vmem:[%s1999_s30 + $0x198] sm:$0xff] %vm1225_vm1, %v1212_v0  ;;  %v921_v15 = vmul.f32 %v1561_v11, %v1955_v1  ;;  %v1612_v36 = vpop.f32.mrb[24].mxu1  ;;  %v692_v41 = vpop.f32.mrb[25].mxu0  ;;  %v1089_v54 = vld [vmem:[%s1962_s16 + $0x1c0] sm:$0xff] }
 0x11f   : > { %v1118_v13 = vadd.f32 %v1054_v59, %v990_v2  ;;  %v1150_v14 = vadd.f32 %v1086_v60, %v1022_v4  ;;  %v953_v16 = vmul.f32 %v1609_v12, %v1955_v1  ;;  %1244 = vst.msk [vmem:[%s1999_s30 + $0x90] sm:$0xff] %vm1225_vm1, %v1179_v7  ;;  %1276 = vst.msk [vmem:[%s1999_s30 + $0x190] sm:$0xff] %vm1225_vm1, %v1211_v8  ;;  %v852_v42 = vpop.f32.mrb[25].mxu1  ;;  %v1060_v7 = vld [vmem:[%s1962_s16 + $0xd8] sm:$0xff] }
 0x120   : > { %v1117_v19 = vadd.f32 %v1053_v5, %v989_v9  ;;  %v1149_v20 = vadd.f32 %v1085_v6, %v1021_v10  ;;  %v920_v23 = vmul.f32 %v1955_v1, %v682_v17  ;;  %v952_v24 = vmul.f32 %v1955_v1, %v842_v18  ;;  %v1092_v8 = vld [vmem:[%s1962_s16 + $0x1d8] sm:$0xff] }
 0x121   : > { %v1182_v25 = vmax.f32 %v1118_v13, 0.0  ;;  %v1214_v26 = vmax.f32 %v1150_v14, 0.0  ;;  %v992_v27 = vadd.f32 %v1968_v3, %v921_v15  ;;  %v1024_v28 = vadd.f32 %v1968_v3, %v953_v16  ;;  %v1567_v59 = vpop.f32.mrb[26].mxu0  ;;  %v1059_v15 = vld [vmem:[%s1962_s16 + $0xd0] sm:$0xff] }
 0x122   : > { %v1181_v31 = vmax.f32 %v1117_v19, 0.0  ;;  %v1213_v32 = vmax.f32 %v1149_v20, 0.0  ;;  %v991_v33 = vadd.f32 %v1968_v3, %v920_v23  ;;  %v1023_v34 = vadd.f32 %v1968_v3, %v952_v24  ;;  %v1615_v60 = vpop.f32.mrb[26].mxu1  ;;  %v702_v2 = vpop.f32.mrb[27].mxu0  ;;  %v1091_v16 = vld [vmem:[%s1962_s16 + $0x1d0] sm:$0xff] }
 0x123   : > { %1247 = vst.msk [vmem:[%s1999_s30 + $0xa8] sm:$0xff] %vm1225_vm1, %v1182_v25  ;;  %1279 = vst.msk [vmem:[%s1999_s30 + $0x1a8] sm:$0xff] %vm1225_vm1, %v1214_v26  ;;  %v1120_v37 = vadd.f32 %v1056_v21, %v992_v27  ;;  %v1152_v38 = vadd.f32 %v1088_v22, %v1024_v28  ;;  %v923_v39 = vmul.f32 %v1564_v35, %v1955_v1  ;;  %v862_v4 = vpop.f32.mrb[27].mxu1 }
 0x124   : > { %v955_v40 = vmul.f32 %v1612_v36, %v1955_v1  ;;  %1246 = vst.msk [vmem:[%s1999_s30 + $0xa0] sm:$0xff] %vm1225_vm1, %v1181_v31  ;;  %1278 = vst.msk [vmem:[%s1999_s30 + $0x1a0] sm:$0xff] %vm1225_vm1, %v1213_v32  ;;  %v1119_v43 = vadd.f32 %v1055_v29, %v991_v33  ;;  %v1151_v44 = vadd.f32 %v1087_v30, %v1023_v34  ;;  %v1062_v31 = vld [vmem:[%s1962_s16 + $0xe8] sm:$0xff] }
 0x125   : > { %v922_v47 = vmul.f32 %v1955_v1, %v692_v41  ;;  %v954_v48 = vmul.f32 %v1955_v1, %v852_v42  ;;  %v1184_v49 = vmax.f32 %v1120_v37, 0.0  ;;  %v1216_v50 = vmax.f32 %v1152_v38, 0.0  ;;  %v1570_v21 = vpop.f32.mrb[28].mxu0  ;;  %v1094_v32 = vld [vmem:[%s1962_s16 + $0x1e8] sm:$0xff] }
 0x126   : > { %v994_v51 = vadd.f32 %v1968_v3, %v923_v39  ;;  %v1026_v52 = vadd.f32 %v1968_v3, %v955_v40  ;;  %v1183_v55 = vmax.f32 %v1119_v43, 0.0  ;;  %v1215_v56 = vmax.f32 %v1151_v44, 0.0  ;;  %v1618_v22 = vpop.f32.mrb[28].mxu1  ;;  %v712_v27 = vpop.f32.mrb[29].mxu0  ;;  %v1061_v39 = vld [vmem:[%s1962_s16 + $0xe0] sm:$0xff] }
 0x127   : > { %v993_v57 = vadd.f32 %v1968_v3, %v922_v47  ;;  %v1025_v58 = vadd.f32 %v1968_v3, %v954_v48  ;;  %1249 = vst.msk [vmem:[%s1999_s30 + $0xb8] sm:$0xff] %vm1225_vm1, %v1184_v49  ;;  %1281 = vst.msk [vmem:[%s1999_s30 + $0x1b8] sm:$0xff] %vm1225_vm1, %v1216_v50  ;;  %v925_v63 = vmul.f32 %v1567_v59, %v1955_v1  ;;  %v872_v28 = vpop.f32.mrb[29].mxu1  ;;  %v1093_v40 = vld [vmem:[%s1962_s16 + $0x1e0] sm:$0xff] }
 0x128   : > { %v1122_v61 = vadd.f32 %v1058_v45, %v994_v51  ;;  %v1154_v62 = vadd.f32 %v1090_v46, %v1026_v52  ;;  %v957_v0 = vmul.f32 %v1615_v60, %v1955_v1  ;;  %1248 = vst.msk [vmem:[%s1999_s30 + $0xb0] sm:$0xff] %vm1225_vm1, %v1183_v55  ;;  %1280 = vst.msk [vmem:[%s1999_s30 + $0x1b0] sm:$0xff] %vm1225_vm1, %v1215_v56  ;;  %v1064_v55 = vld [vmem:[%s1962_s16 + $0xf8] sm:$0xff] }
 0x129   : > { %v1121_v5 = vadd.f32 %v1057_v53, %v993_v57  ;;  %v1153_v6 = vadd.f32 %v1089_v54, %v1025_v58  ;;  %v924_v9 = vmul.f32 %v1955_v1, %v702_v2  ;;  %v956_v10 = vmul.f32 %v1955_v1, %v862_v4  ;;  %v1573_v45 = vpop.f32.mrb[30].mxu0  ;;  %v1096_v56 = vld [vmem:[%s1962_s16 + $0x1f8] sm:$0xff] }
 0x12a   : > { %v1186_v11 = vmax.f32 %v1122_v61, 0.0  ;;  %v1218_v12 = vmax.f32 %v1154_v62, 0.0  ;;  %v996_v13 = vadd.f32 %v1968_v3, %v925_v63  ;;  %v1028_v14 = vadd.f32 %v1968_v3, %v957_v0  ;;  %v1621_v46 = vpop.f32.mrb[30].mxu1  ;;  %v722_v51 = vpop.f32.mrb[31].mxu0  ;;  %v1063_v63 = vld [vmem:[%s1962_s16 + $0xf0] sm:$0xff] }
 0x12b   : > { %v1185_v17 = vmax.f32 %v1121_v5, 0.0  ;;  %v1217_v18 = vmax.f32 %v1153_v6, 0.0  ;;  %v995_v19 = vadd.f32 %v1968_v3, %v924_v9  ;;  %v1027_v20 = vadd.f32 %v1968_v3, %v956_v10  ;;  %v882_v52 = vpop.f32.mrb[31].mxu1  ;;  %v1095_v0 = vld [vmem:[%s1962_s16 + $0x1f0] sm:$0xff] }
 0x12c   : > { %1251 = vst.msk [vmem:[%s1999_s30 + $0xc8] sm:$0xff] %vm1225_vm1, %v1186_v11  ;;  %1283 = vst.msk [vmem:[%s1999_s30 + $0x1c8] sm:$0xff] %vm1225_vm1, %v1218_v12  ;;  %v1124_v23 = vadd.f32 %v1060_v7, %v996_v13  ;;  %v1156_v24 = vadd.f32 %v1092_v8, %v1028_v14  ;;  %v927_v25 = vmul.f32 %v1570_v21, %v1955_v1 }
 0x12d   : > { %v959_v26 = vmul.f32 %v1618_v22, %v1955_v1  ;;  %1250 = vst.msk [vmem:[%s1999_s30 + $0xc0] sm:$0xff] %vm1225_vm1, %v1185_v17  ;;  %1282 = vst.msk [vmem:[%s1999_s30 + $0x1c0] sm:$0xff] %vm1225_vm1, %v1217_v18  ;;  %v1123_v29 = vadd.f32 %v1059_v15, %v995_v19  ;;  %v1155_v30 = vadd.f32 %v1091_v16, %v1027_v20 }
 0x12e   : > { %v926_v33 = vmul.f32 %v1955_v1, %v712_v27  ;;  %v958_v34 = vmul.f32 %v1955_v1, %v872_v28  ;;  %v1188_v35 = vmax.f32 %v1124_v23, 0.0  ;;  %v1220_v36 = vmax.f32 %v1156_v24, 0.0 }
 0x12f   : > { %v998_v37 = vadd.f32 %v1968_v3, %v927_v25  ;;  %v1030_v38 = vadd.f32 %v1968_v3, %v959_v26  ;;  %v1187_v41 = vmax.f32 %v1123_v29, 0.0  ;;  %v1219_v42 = vmax.f32 %v1155_v30, 0.0 }
 0x130   : > { %v997_v43 = vadd.f32 %v1968_v3, %v926_v33  ;;  %v1029_v44 = vadd.f32 %v1968_v3, %v958_v34  ;;  %1253 = vst.msk [vmem:[%s1999_s30 + $0xd8] sm:$0xff] %vm1225_vm1, %v1188_v35  ;;  %1285 = vst.msk [vmem:[%s1999_s30 + $0x1d8] sm:$0xff] %vm1225_vm1, %v1220_v36  ;;  %v929_v49 = vmul.f32 %v1573_v45, %v1955_v1 }
 0x131   : > { %v1126_v47 = vadd.f32 %v1062_v31, %v998_v37  ;;  %v1158_v48 = vadd.f32 %v1094_v32, %v1030_v38  ;;  %v961_v50 = vmul.f32 %v1621_v46, %v1955_v1  ;;  %1252 = vst.msk [vmem:[%s1999_s30 + $0xd0] sm:$0xff] %vm1225_vm1, %v1187_v41  ;;  %1284 = vst.msk [vmem:[%s1999_s30 + $0x1d0] sm:$0xff] %vm1225_vm1, %v1219_v42 }
 0x132   : > { %v1125_v53 = vadd.f32 %v1061_v39, %v997_v43  ;;  %v1157_v54 = vadd.f32 %v1093_v40, %v1029_v44  ;;  %v928_v57 = vmul.f32 %v1955_v1, %v722_v51  ;;  %v960_v58 = vmul.f32 %v1955_v1, %v882_v52 }
 0x133   : > { %v1190_v59 = vmax.f32 %v1126_v47, 0.0  ;;  %v1222_v60 = vmax.f32 %v1158_v48, 0.0  ;;  %v1000_v61 = vadd.f32 %v1968_v3, %v929_v49  ;;  %v1032_v62 = vadd.f32 %v1968_v3, %v961_v50 }
 0x134   : > { %v1189_v2 = vmax.f32 %v1125_v53, 0.0  ;;  %v1221_v4 = vmax.f32 %v1157_v54, 0.0  ;;  %v999_v5 = vadd.f32 %v1968_v3, %v928_v57  ;;  %v1031_v6 = vadd.f32 %v1968_v3, %v960_v58 }
 0x135   : > { %1255 = vst.msk [vmem:[%s1999_s30 + $0xe8] sm:$0xff] %vm1225_vm1, %v1190_v59  ;;  %1287 = vst.msk [vmem:[%s1999_s30 + $0x1e8] sm:$0xff] %vm1225_vm1, %v1222_v60  ;;  %v1128_v1 = vadd.f32 %v1064_v55, %v1000_v61  ;;  %v1160_v7 = vadd.f32 %v1096_v56, %v1032_v62 }
 0x136   : > { %1254 = vst.msk [vmem:[%s1999_s30 + $0xe0] sm:$0xff] %vm1225_vm1, %v1189_v2  ;;  %1286 = vst.msk [vmem:[%s1999_s30 + $0x1e0] sm:$0xff] %vm1225_vm1, %v1221_v4  ;;  %v1127_v8 = vadd.f32 %v1063_v63, %v999_v5  ;;  %v1159_v3 = vadd.f32 %v1095_v0, %v1031_v6 }
 0x137   : > { %v1192_v9 = vmax.f32 %v1128_v1, 0.0  ;;  %v1224_v10 = vmax.f32 %v1160_v7, 0.0 }
 0x138   : > { %v1191_v11 = vmax.f32 %v1127_v8, 0.0  ;;  %v1223_v12 = vmax.f32 %v1159_v3, 0.0 }
 0x139   : > { %1257 = vst.msk [vmem:[%s1999_s30 + $0xf8] sm:$0xff] %vm1225_vm1, %v1192_v9  ;;  %1289 = vst.msk [vmem:[%s1999_s30 + $0x1f8] sm:$0xff] %vm1225_vm1, %v1224_v10 }
 0x13a   : > { %1256 = vst.msk [vmem:[%s1999_s30 + $0xf0] sm:$0xff] %vm1225_vm1, %v1191_v11  ;;  %1288 = vst.msk [vmem:[%s1999_s30 + $0x1f0] sm:$0xff] %vm1225_vm1, %v1223_v12 }
 0x13b   : > { %1678 = shalt.err (!%p1675_p3)
}
 0x13c   : > { %s1679_s15 = scalar_lea.hbm %s2294_s9, 8192  ;;  %s1683_s23 = scalar_lea.hbm %s2354_s5, 16384 }
 0x13d   : > { %p1680_p4 = scmp.ne.s32.totalorder %s2294_s9, %s1679_s15  ;;  %p1684_p9 = scmp.lt.u32.totalorder %s2294_s9, %s2354_s5 }
 0x13e   : > { %p1685_p10 = scmp.lt.u32.totalorder %s1683_s23, %s1679_s15  ;;  %p1687_p12 = scmp.lt.u32.totalorder %s1679_s15, %s2294_s9 }
 0x13f   : > { %p1681_p7 = pnand %p1680_p4, %p1800_p5 }
 0x140   : > { %p1686_p11 = por %p1685_p10, %p1684_p9 }
 0x141   : > { %p1682_p8 = pneg %p1681_p7 }
 0x142   : > { %p1688_p13 = por %p1687_p12, %p1686_p11 }
 0x144   : > { %p1689_p0 = pnand %p1688_p13, %p1682_p8 }
 0x146   : > { %1692 = shalt.err (!%p1689_p0)
}
 0x147   : > { %s1730_s30 = smov 128   ;;  %s1731_s6 = smov 8  }
 0x148   : > { %1624 = dma.vmem_to_hbm [thread:$0]  (%p1800_p5), %s2296_s7, 8192, %s2294_s9, %s2308_s10, %s1730_s30, %s1730_s30, %s1731_s6  }
 0x149 PF: > { %p1630_p1 = scmp.ge.s32.totalorder %s1727_s21, 2  ;;  %s1319_s22 = sand.u32 1, %s1715_s18  }
 0x14a   : > { %s1320_s8 = scalar_lea.sflag [#allocation3], %s1319_s22 }
 0x14b   : > { %p1627_p2 = pnand %p1630_p1, %p1804_p6 }
 0x14d   : > { %1710 = dma.done.wait (!%p1627_p2), %s1320_s8, 8192  }
 0x14e   : > { %1712 = vsyncadd (!%p1627_p2), %s1320_s8, 4294959104  ;;  %p15_p3 = scmp.ge.s32.totalorder %s1787_s24, 4   ;;  %s2357_s18 = smov %s1719_s19 }
 0x14f   : > { %s2358_s19 = smov %s1723_s20  ;;  %s2359_s20 = smov %s1798_s27 }
 0x150   : > { %s2360_s21 = smov %s1787_s24  ;;  %17 = sbr.rel (!%p15_p3) target bundleno = 3 (0x3), region = 78 }
 0x157   :  { %1325 = vsyncpa [#allocation3], 1 }
 0x158   :  { %1327 = vsyncpa [#allocation3 + $0x1], 1 }

// kernel: _lambda_.3
= control target key start
LH: loop header
LB: loop body
LE: loop exit
PB: predicated region body
PF: predicated region fallthrough
CT: control target
= control target key end

     0   :  { %s2583_s27 = smov 0   ;;  %s3364_s0 = inlined_call_operand.vmem [shape: f32[1024,8], index: 0, kind: input, shape index: {}]   ;;  %s3365_s1 = inlined_call_operand.vmem [shape: f32[8,32], index: 1, kind: input, shape index: {}]   ;;  %s3366_s2 = inlined_call_operand.vmem [shape: f32[1,32], index: 2, kind: input, shape index: {}]   ;;  %s3367_s3 = inlined_call_operand.vmem [shape: f32[1,32], index: 3, kind: input, shape index: {}]   ;;  %s3368_s4 = inlined_call_operand.vmem [shape: f32[8,8], index: 4, kind: input, shape index: {}]   ;;  %s3369_s5 = inlined_call_operand.vmem [shape: f32[1,8], index: 5, kind: input, shape index: {}]   ;;  %s3370_s6 = inlined_call_operand.vmem [shape: f32[1,8], index: 6, kind: input, shape index: {}]   ;;  %s3371_s7 = inlined_call_operand.vmem [shape: f32[1024,32], index: 7, kind: output, shape index: {0}]   ;;  %s3372_s8 = inlined_call_operand.vmem [shape: f32[1024,8], index: 8, kind: output, shape index: {1}]  }
   0x1 LB: > { %s2047_s28 = sadd.s32 4294967295, %s2536_s27   ;;  %p2051_p0 = scmp.ge.s32.totalorder %s2536_s27, 1  ;;  %s2536_s27 = sphi %s2583_s27, %s19_s27  }
   0x2   : > { %p266_p1 = scmp.lt.s32.totalorder %s2536_s27, 3 }
   0x4   : > { %p267_p2 = pnand %p2051_p0, %p266_p1 }
   0x5   : > { %v1173_v0 = vld [vmem:[%s3368_s4] sm:$0xff] (!%p267_p2)  ;;  %s2052_s9 = sshll.u32 (!%p267_p2), %s2047_s28, 6  ;;  %vm388_vm0 = vcmask (!%p267_p2), 64512   ;;  %vm1108_vm1 = vcmask (!%p267_p2), 261120  }
   0x6   : > { %270 = sbr.rel (%p267_p2) target bundleno = 363 (0x16b), region = 48  ;;  %v387_v1 = vld [vmem:[%s3365_s1] sm:$0xff] (!%p267_p2)  ;;  %2420 = vmatprep.subr.mxu1 (!%p267_p2), %v1173_v0  ;;  %p306_p3 = scmp.lt.s32.totalorder (!%p267_p2), %s2052_s9, 127 }
   0x7   : > { %2322 = vmatprep.subr.mxu0 (!%p267_p2), %v387_v1  ;;  %2421 = vmatpush3.msra.mxu1 (!%p267_p2), %v1173_v0 }
   0x8   : > { %2323 = vmatpush3.msra.mxu0 (!%p267_p2), %v387_v1 }
   0xd   : > { %s3374_s9 = smov (!%p306_p3, %s2052_s9), 127 }
   0xe   : > { %s2597_s12 = sshll.u32 %s3374_s9, 3 }
   0xf   : > { %s2603_s15 = scalar_lea.vmem %s3364_s0, %s2597_s12  ;;  %s2824_s26 = scalar_lea.vmem %s3371_s7, %s2597_s12 }
  0x10   : > { %v323_v2 = vld [vmem:[%s2603_s15] sm:$0xff]  ;;  %v324_v3 = vld [vmem:[%s2603_s15 + $0x8] sm:$0xff]  ;;  %v325_v4 = vld [vmem:[%s2603_s15 + $0x10] sm:$0xff]  ;;  %s2835_s30 = scalar_lea.vmem %s3372_s8, %s2597_s12 }
  0x11   : > { %2422 = vmatprep.mubr.msk.f32.mxu1 %vm388_vm0, %v323_v2  ;;  %2324 = vmatprep.mubr.msk.f32.mxu0 %vm388_vm0, %v323_v2  ;;  %v326_v5 = vld [vmem:[%s2603_s15 + $0x18] sm:$0xff]  ;;  %v327_v6 = vld [vmem:[%s2603_s15 + $0x20] sm:$0xff]  ;;  %v328_v7 = vld [vmem:[%s2603_s15 + $0x28] sm:$0xff] }
  0x12   : > { %2423 = vmatmul.mubr.msk.f32.vlgmr.msra.gmra.mrb[0].mxu1 %vm388_vm0, %v324_v3  ;;  %2325 = vmatmul.mubr.msk.f32.vlgmr.msra.gmra.mrb[0].mxu0 %vm388_vm0, %v324_v3  ;;  %v329_v8 = vld [vmem:[%s2603_s15 + $0x30] sm:$0xff]  ;;  %v330_v9 = vld [vmem:[%s2603_s15 + $0x38] sm:$0xff]  ;;  %v331_v10 = vld [vmem:[%s2603_s15 + $0x40] sm:$0xff] }
  0x13   : > { %2425 = vmatprep.mubr.msk.f32.mxu1 %vm388_vm0, %v325_v4  ;;  %2327 = vmatprep.mubr.msk.f32.mxu0 %vm388_vm0, %v325_v4  ;;  %v332_v11 = vld [vmem:[%s2603_s15 + $0x48] sm:$0xff]  ;;  %v333_v12 = vld [vmem:[%s2603_s15 + $0x50] sm:$0xff]  ;;  %v334_v13 = vld [vmem:[%s2603_s15 + $0x58] sm:$0xff] }
  0x14   : > { %v335_v14 = vld [vmem:[%s2603_s15 + $0x60] sm:$0xff]  ;;  %v336_v15 = vld [vmem:[%s2603_s15 + $0x68] sm:$0xff]  ;;  %v337_v16 = vld [vmem:[%s2603_s15 + $0x70] sm:$0xff] }
  0x15   : > { %v338_v17 = vld [vmem:[%s2603_s15 + $0x78] sm:$0xff]  ;;  %v339_v18 = vld [vmem:[%s2603_s15 + $0x80] sm:$0xff]  ;;  %v340_v19 = vld [vmem:[%s2603_s15 + $0x88] sm:$0xff] }
  0x16   : > { %2426 = vmatmul.mubr.msk.f32.gmra.mrb[2].mxu1 %vm388_vm0, %v326_v5  ;;  %2328 = vmatmul.mubr.msk.f32.gmra.mrb[2].mxu0 %vm388_vm0, %v326_v5  ;;  %v341_v20 = vld [vmem:[%s2603_s15 + $0x90] sm:$0xff]  ;;  %v342_v21 = vld [vmem:[%s2603_s15 + $0x98] sm:$0xff]  ;;  %v343_v22 = vld [vmem:[%s2603_s15 + $0xa0] sm:$0xff] }
  0x17   : > { %2428 = vmatprep.mubr.msk.f32.mxu1 %vm388_vm0, %v327_v6  ;;  %2330 = vmatprep.mubr.msk.f32.mxu0 %vm388_vm0, %v327_v6  ;;  %v344_v23 = vld [vmem:[%s2603_s15 + $0xa8] sm:$0xff]  ;;  %v345_v24 = vld [vmem:[%s2603_s15 + $0xb0] sm:$0xff]  ;;  %v346_v25 = vld [vmem:[%s2603_s15 + $0xb8] sm:$0xff] }
  0x18   : > { %v347_v26 = vld [vmem:[%s2603_s15 + $0xc0] sm:$0xff]  ;;  %v348_v27 = vld [vmem:[%s2603_s15 + $0xc8] sm:$0xff]  ;;  %v349_v28 = vld [vmem:[%s2603_s15 + $0xd0] sm:$0xff] }
  0x19   : > { %v350_v29 = vld [vmem:[%s2603_s15 + $0xd8] sm:$0xff]  ;;  %v351_v30 = vld [vmem:[%s2603_s15 + $0xe0] sm:$0xff]  ;;  %v352_v31 = vld [vmem:[%s2603_s15 + $0xe8] sm:$0xff] }
  0x1a   : > { %2429 = vmatmul.mubr.msk.f32.gmra.mrb[4].mxu1 %vm388_vm0, %v328_v7  ;;  %2331 = vmatmul.mubr.msk.f32.gmra.mrb[4].mxu0 %vm388_vm0, %v328_v7  ;;  %v353_v32 = vld [vmem:[%s2603_s15 + $0xf0] sm:$0xff]  ;;  %v354_v33 = vld [vmem:[%s2603_s15 + $0xf8] sm:$0xff]  ;;  %v355_v34 = vld [vmem:[%s2603_s15 + $0x100] sm:$0xff] }
  0x1b   : > { %2431 = vmatprep.mubr.msk.f32.mxu1 %vm388_vm0, %v329_v8  ;;  %2333 = vmatprep.mubr.msk.f32.mxu0 %vm388_vm0, %v329_v8  ;;  %v356_v35 = vld [vmem:[%s2603_s15 + $0x108] sm:$0xff]  ;;  %v357_v36 = vld [vmem:[%s2603_s15 + $0x110] sm:$0xff]  ;;  %v358_v37 = vld [vmem:[%s2603_s15 + $0x118] sm:$0xff] }
  0x1c   : > { %v359_v38 = vld [vmem:[%s2603_s15 + $0x120] sm:$0xff]  ;;  %v360_v39 = vld [vmem:[%s2603_s15 + $0x128] sm:$0xff]  ;;  %v361_v40 = vld [vmem:[%s2603_s15 + $0x130] sm:$0xff] }
  0x1d   : > { %v362_v41 = vld [vmem:[%s2603_s15 + $0x138] sm:$0xff]  ;;  %v363_v42 = vld [vmem:[%s2603_s15 + $0x140] sm:$0xff]  ;;  %v364_v43 = vld [vmem:[%s2603_s15 + $0x148] sm:$0xff] }
  0x1e   : > { %2432 = vmatmul.mubr.msk.f32.gmra.mrb[6].mxu1 %vm388_vm0, %v330_v9  ;;  %2334 = vmatmul.mubr.msk.f32.gmra.mrb[6].mxu0 %vm388_vm0, %v330_v9  ;;  %v365_v44 = vld [vmem:[%s2603_s15 + $0x150] sm:$0xff]  ;;  %v366_v45 = vld [vmem:[%s2603_s15 + $0x158] sm:$0xff]  ;;  %v367_v46 = vld [vmem:[%s2603_s15 + $0x160] sm:$0xff] }
  0x1f   : > { %2434 = vmatprep.mubr.msk.f32.mxu1 %vm388_vm0, %v331_v10  ;;  %2336 = vmatprep.mubr.msk.f32.mxu0 %vm388_vm0, %v331_v10  ;;  %v368_v47 = vld [vmem:[%s2603_s15 + $0x168] sm:$0xff]  ;;  %v369_v48 = vld [vmem:[%s2603_s15 + $0x170] sm:$0xff]  ;;  %v370_v49 = vld [vmem:[%s2603_s15 + $0x178] sm:$0xff] }
  0x20   : > { %v371_v50 = vld [vmem:[%s2603_s15 + $0x180] sm:$0xff]  ;;  %v372_v51 = vld [vmem:[%s2603_s15 + $0x188] sm:$0xff]  ;;  %v373_v52 = vld [vmem:[%s2603_s15 + $0x190] sm:$0xff] }
  0x21   : > { %v374_v53 = vld [vmem:[%s2603_s15 + $0x198] sm:$0xff]  ;;  %v375_v54 = vld [vmem:[%s2603_s15 + $0x1a0] sm:$0xff]  ;;  %v376_v55 = vld [vmem:[%s2603_s15 + $0x1a8] sm:$0xff] }
  0x22   : > { %2435 = vmatmul.mubr.msk.f32.gmra.mrb[8].mxu1 %vm388_vm0, %v332_v11  ;;  %2337 = vmatmul.mubr.msk.f32.gmra.mrb[8].mxu0 %vm388_vm0, %v332_v11  ;;  %v377_v56 = vld [vmem:[%s2603_s15 + $0x1b0] sm:$0xff]  ;;  %v378_v57 = vld [vmem:[%s2603_s15 + $0x1b8] sm:$0xff]  ;;  %v379_v58 = vld [vmem:[%s2603_s15 + $0x1c0] sm:$0xff] }
  0x23   : > { %2437 = vmatprep.mubr.msk.f32.mxu1 %vm388_vm0, %v333_v12  ;;  %2339 = vmatprep.mubr.msk.f32.mxu0 %vm388_vm0, %v333_v12  ;;  %v380_v59 = vld [vmem:[%s2603_s15 + $0x1c8] sm:$0xff]  ;;  %v381_v60 = vld [vmem:[%s2603_s15 + $0x1d0] sm:$0xff]  ;;  %v382_v61 = vld [vmem:[%s2603_s15 + $0x1d8] sm:$0xff] }
  0x24   : > { %v383_v62 = vld [vmem:[%s2603_s15 + $0x1e0] sm:$0xff]  ;;  %v384_v63 = vld [vmem:[%s2603_s15 + $0x1e8] sm:$0xff]  ;;  %v385_v0 = vld [vmem:[%s2603_s15 + $0x1f0] sm:$0xff] }
  0x25   : > { %v386_v1 = vld [vmem:[%s2603_s15 + $0x1f8] sm:$0xff]  ;;  %v2800_v2 = vld [vmem:[%s3369_s5] ss:$0 sm:$0xff] }
  0x26   : > { %2438 = vmatmul.mubr.msk.f32.gmra.mrb[10].mxu1 %vm388_vm0, %v334_v13  ;;  %2340 = vmatmul.mubr.msk.f32.gmra.mrb[10].mxu0 %vm388_vm0, %v334_v13  ;;  %v2805_v3 = vld [vmem:[%s3366_s2] ss:$0 sm:$0xff] }
  0x27   : > { %2440 = vmatprep.mubr.msk.f32.mxu1 %vm388_vm0, %v335_v14  ;;  %2342 = vmatprep.mubr.msk.f32.mxu0 %vm388_vm0, %v335_v14  ;;  %v2810_v5 = vld [vmem:[%s3370_s6] ss:$0 sm:$0xff] }
  0x28   : > { %v2815_v7 = vld [vmem:[%s3367_s3] ss:$0 sm:$0xff] }
  0x2a   : > { %2441 = vmatmul.mubr.msk.f32.gmra.mrb[12].mxu1 %vm388_vm0, %v336_v15  ;;  %2343 = vmatmul.mubr.msk.f32.gmra.mrb[12].mxu0 %vm388_vm0, %v336_v15 }
  0x2b   : > { %2443 = vmatprep.mubr.msk.f32.mxu1 %vm388_vm0, %v337_v16  ;;  %2345 = vmatprep.mubr.msk.f32.mxu0 %vm388_vm0, %v337_v16 }
  0x2e   : > { %2444 = vmatmul.mubr.msk.f32.gmra.mrb[14].mxu1 %vm388_vm0, %v338_v17  ;;  %2346 = vmatmul.mubr.msk.f32.gmra.mrb[14].mxu0 %vm388_vm0, %v338_v17 }
  0x2f   : > { %2446 = vmatprep.mubr.msk.f32.mxu1 %vm388_vm0, %v339_v18  ;;  %2348 = vmatprep.mubr.msk.f32.mxu0 %vm388_vm0, %v339_v18 }
  0x32   : > { %2447 = vmatmul.mubr.msk.f32.gmra.mrb[16].mxu1 %vm388_vm0, %v340_v19  ;;  %2349 = vmatmul.mubr.msk.f32.gmra.mrb[16].mxu0 %vm388_vm0, %v340_v19 }
  0x33   : > { %2449 = vmatprep.mubr.msk.f32.mxu1 %vm388_vm0, %v341_v20  ;;  %2351 = vmatprep.mubr.msk.f32.mxu0 %vm388_vm0, %v341_v20 }
  0x36   : > { %2450 = vmatmul.mubr.msk.f32.gmra.mrb[18].mxu1 %vm388_vm0, %v342_v21  ;;  %2352 = vmatmul.mubr.msk.f32.gmra.mrb[18].mxu0 %vm388_vm0, %v342_v21 }
  0x37   : > { %2452 = vmatprep.mubr.msk.f32.mxu1 %vm388_vm0, %v343_v22  ;;  %2354 = vmatprep.mubr.msk.f32.mxu0 %vm388_vm0, %v343_v22 }
  0x3a   : > { %2453 = vmatmul.mubr.msk.f32.gmra.mrb[20].mxu1 %vm388_vm0, %v344_v23  ;;  %2355 = vmatmul.mubr.msk.f32.gmra.mrb[20].mxu0 %vm388_vm0, %v344_v23 }
  0x3b   : > { %2455 = vmatprep.mubr.msk.f32.mxu1 %vm388_vm0, %v345_v24  ;;  %2357 = vmatprep.mubr.msk.f32.mxu0 %vm388_vm0, %v345_v24 }
  0x3e   : > { %2456 = vmatmul.mubr.msk.f32.gmra.mrb[22].mxu1 %vm388_vm0, %v346_v25  ;;  %2358 = vmatmul.mubr.msk.f32.gmra.mrb[22].mxu0 %vm388_vm0, %v346_v25 }
  0x3f   : > { %2458 = vmatprep.mubr.msk.f32.mxu1 %vm388_vm0, %v347_v26  ;;  %2360 = vmatprep.mubr.msk.f32.mxu0 %vm388_vm0, %v347_v26 }
  0x42   : > { %2459 = vmatmul.mubr.msk.f32.gmra.mrb[24].mxu1 %vm388_vm0, %v348_v27  ;;  %2361 = vmatmul.mubr.msk.f32.gmra.mrb[24].mxu0 %vm388_vm0, %v348_v27 }
  0x43   : > { %2461 = vmatprep.mubr.msk.f32.mxu1 %vm388_vm0, %v349_v28  ;;  %2363 = vmatprep.mubr.msk.f32.mxu0 %vm388_vm0, %v349_v28 }
  0x46   : > { %2462 = vmatmul.mubr.msk.f32.gmra.mrb[26].mxu1 %vm388_vm0, %v350_v29  ;;  %2364 = vmatmul.mubr.msk.f32.gmra.mrb[26].mxu0 %vm388_vm0, %v350_v29 }
  0x47   : > { %2464 = vmatprep.mubr.msk.f32.mxu1 %vm388_vm0, %v351_v30  ;;  %2366 = vmatprep.mubr.msk.f32.mxu0 %vm388_vm0, %v351_v30 }
  0x4a   : > { %2465 = vmatmul.mubr.msk.f32.gmra.mrb[28].mxu1 %vm388_vm0, %v352_v31  ;;  %2367 = vmatmul.mubr.msk.f32.gmra.mrb[28].mxu0 %vm388_vm0, %v352_v31 }
  0x4b   : > { %2467 = vmatprep.mubr.msk.f32.mxu1 %vm388_vm0, %v353_v32  ;;  %2369 = vmatprep.mubr.msk.f32.mxu0 %vm388_vm0, %v353_v32 }
  0x4e   : > { %2468 = vmatmul.mubr.msk.f32.gmra.mrb[30].mxu1 %vm388_vm0, %v354_v33  ;;  %2370 = vmatmul.mubr.msk.f32.gmra.mrb[30].mxu0 %vm388_vm0, %v354_v33 }
  0x4f   : > { %2470 = vmatprep.mubr.msk.f32.mxu1 %vm388_vm0, %v355_v34  ;;  %2372 = vmatprep.mubr.msk.f32.mxu0 %vm388_vm0, %v355_v34 }
  0x52   : > { %2471 = vmatmul.mubr.msk.f32.gmra.mrb[32].mxu1 %vm388_vm0, %v356_v35  ;;  %2373 = vmatmul.mubr.msk.f32.gmra.mrb[32].mxu0 %vm388_vm0, %v356_v35 }
  0x53   : > { %2473 = vmatprep.mubr.msk.f32.mxu1 %vm388_vm0, %v357_v36  ;;  %2375 = vmatprep.mubr.msk.f32.mxu0 %vm388_vm0, %v357_v36 }
  0x56   : > { %2474 = vmatmul.mubr.msk.f32.gmra.mrb[34].mxu1 %vm388_vm0, %v358_v37  ;;  %2376 = vmatmul.mubr.msk.f32.gmra.mrb[34].mxu0 %vm388_vm0, %v358_v37 }
  0x57   : > { %2476 = vmatprep.mubr.msk.f32.mxu1 %vm388_vm0, %v359_v38  ;;  %2378 = vmatprep.mubr.msk.f32.mxu0 %vm388_vm0, %v359_v38 }
  0x5a   : > { %2477 = vmatmul.mubr.msk.f32.gmra.mrb[36].mxu1 %vm388_vm0, %v360_v39  ;;  %2379 = vmatmul.mubr.msk.f32.gmra.mrb[36].mxu0 %vm388_vm0, %v360_v39 }
  0x5b   : > { %2479 = vmatprep.mubr.msk.f32.mxu1 %vm388_vm0, %v361_v40  ;;  %2381 = vmatprep.mubr.msk.f32.mxu0 %vm388_vm0, %v361_v40 }
  0x5e   : > { %2480 = vmatmul.mubr.msk.f32.gmra.mrb[38].mxu1 %vm388_vm0, %v362_v41  ;;  %2382 = vmatmul.mubr.msk.f32.gmra.mrb[38].mxu0 %vm388_vm0, %v362_v41 }
  0x5f   : > { %2482 = vmatprep.mubr.msk.f32.mxu1 %vm388_vm0, %v363_v42  ;;  %2384 = vmatprep.mubr.msk.f32.mxu0 %vm388_vm0, %v363_v42 }
  0x62   : > { %2483 = vmatmul.mubr.msk.f32.gmra.mrb[40].mxu1 %vm388_vm0, %v364_v43  ;;  %2385 = vmatmul.mubr.msk.f32.gmra.mrb[40].mxu0 %vm388_vm0, %v364_v43 }
  0x63   : > { %2485 = vmatprep.mubr.msk.f32.mxu1 %vm388_vm0, %v365_v44  ;;  %2387 = vmatprep.mubr.msk.f32.mxu0 %vm388_vm0, %v365_v44 }
  0x66   : > { %2486 = vmatmul.mubr.msk.f32.gmra.mrb[42].mxu1 %vm388_vm0, %v366_v45  ;;  %2388 = vmatmul.mubr.msk.f32.gmra.mrb[42].mxu0 %vm388_vm0, %v366_v45 }
  0x67   : > { %2488 = vmatprep.mubr.msk.f32.mxu1 %vm388_vm0, %v367_v46  ;;  %2390 = vmatprep.mubr.msk.f32.mxu0 %vm388_vm0, %v367_v46 }
  0x6a   : > { %2489 = vmatmul.mubr.msk.f32.gmra.mrb[44].mxu1 %vm388_vm0, %v368_v47  ;;  %2391 = vmatmul.mubr.msk.f32.gmra.mrb[44].mxu0 %vm388_vm0, %v368_v47 }
  0x6b   : > { %2491 = vmatprep.mubr.msk.f32.mxu1 %vm388_vm0, %v369_v48  ;;  %2393 = vmatprep.mubr.msk.f32.mxu0 %vm388_vm0, %v369_v48 }
  0x6e   : > { %2492 = vmatmul.mubr.msk.f32.gmra.mrb[46].mxu1 %vm388_vm0, %v370_v49  ;;  %2394 = vmatmul.mubr.msk.f32.gmra.mrb[46].mxu0 %vm388_vm0, %v370_v49 }
  0x6f   : > { %2494 = vmatprep.mubr.msk.f32.mxu1 %vm388_vm0, %v371_v50  ;;  %2396 = vmatprep.mubr.msk.f32.mxu0 %vm388_vm0, %v371_v50 }
  0x72   : > { %2495 = vmatmul.mubr.msk.f32.gmra.mrb[48].mxu1 %vm388_vm0, %v372_v51  ;;  %2397 = vmatmul.mubr.msk.f32.gmra.mrb[48].mxu0 %vm388_vm0, %v372_v51 }
  0x73   : > { %2497 = vmatprep.mubr.msk.f32.mxu1 %vm388_vm0, %v373_v52  ;;  %2399 = vmatprep.mubr.msk.f32.mxu0 %vm388_vm0, %v373_v52 }
  0x76   : > { %2498 = vmatmul.mubr.msk.f32.gmra.mrb[50].mxu1 %vm388_vm0, %v374_v53  ;;  %2400 = vmatmul.mubr.msk.f32.gmra.mrb[50].mxu0 %vm388_vm0, %v374_v53 }
  0x77   : > { %2500 = vmatprep.mubr.msk.f32.mxu1 %vm388_vm0, %v375_v54  ;;  %2402 = vmatprep.mubr.msk.f32.mxu0 %vm388_vm0, %v375_v54 }
  0x7a   : > { %2501 = vmatmul.mubr.msk.f32.gmra.mrb[52].mxu1 %vm388_vm0, %v376_v55  ;;  %2403 = vmatmul.mubr.msk.f32.gmra.mrb[52].mxu0 %vm388_vm0, %v376_v55 }
  0x7b   : > { %2503 = vmatprep.mubr.msk.f32.mxu1 %vm388_vm0, %v377_v56  ;;  %2405 = vmatprep.mubr.msk.f32.mxu0 %vm388_vm0, %v377_v56 }
  0x7e   : > { %2504 = vmatmul.mubr.msk.f32.gmra.mrb[54].mxu1 %vm388_vm0, %v378_v57  ;;  %2406 = vmatmul.mubr.msk.f32.gmra.mrb[54].mxu0 %vm388_vm0, %v378_v57 }
  0x7f   : > { %2506 = vmatprep.mubr.msk.f32.mxu1 %vm388_vm0, %v379_v58  ;;  %2408 = vmatprep.mubr.msk.f32.mxu0 %vm388_vm0, %v379_v58 }
  0x82   : > { %2507 = vmatmul.mubr.msk.f32.gmra.mrb[56].mxu1 %vm388_vm0, %v380_v59  ;;  %2409 = vmatmul.mubr.msk.f32.gmra.mrb[56].mxu0 %vm388_vm0, %v380_v59 }
  0x83   : > { %2509 = vmatprep.mubr.msk.f32.mxu1 %vm388_vm0, %v381_v60  ;;  %2411 = vmatprep.mubr.msk.f32.mxu0 %vm388_vm0, %v381_v60 }
  0x86   : > { %2510 = vmatmul.mubr.msk.f32.gmra.mrb[58].mxu1 %vm388_vm0, %v382_v61  ;;  %2412 = vmatmul.mubr.msk.f32.gmra.mrb[58].mxu0 %vm388_vm0, %v382_v61 }
  0x87   : > { %2512 = vmatprep.mubr.msk.f32.mxu1 %vm388_vm0, %v383_v62  ;;  %2414 = vmatprep.mubr.msk.f32.mxu0 %vm388_vm0, %v383_v62 }
  0x8a   : > { %2513 = vmatmul.mubr.msk.f32.gmra.mrb[60].mxu1 %vm388_vm0, %v384_v63  ;;  %2415 = vmatmul.mubr.msk.f32.gmra.mrb[60].mxu0 %vm388_vm0, %v384_v63 }
  0x8b   : > { %2515 = vmatprep.mubr.msk.f32.mxu1 %vm388_vm0, %v385_v0  ;;  %2417 = vmatprep.mubr.msk.f32.mxu0 %vm388_vm0, %v385_v0 }
  0x8e   : > { %2516 = vmatmul.mubr.msk.f32.gmra.mrb[62].mxu1 %vm388_vm0, %v386_v1  ;;  %2418 = vmatmul.mubr.msk.f32.gmra.mrb[62].mxu0 %vm388_vm0, %v386_v1 }
  0xe5   : > { %v2424_v4 = vpop.f32.mrb[0].mxu1  ;;  %v2326_v6 = vpop.f32.mrb[0].mxu0 }
  0xe6   : > { %v1567_v8 = vmul.f32 %v2424_v4, %v2800_v2  ;;  %v1240_v9 = vpop.f32.mrb[1].mxu1  ;;  %v974_v10 = vmul.f32 %v2326_v6, %v2805_v3  ;;  %v647_v11 = vpop.f32.mrb[1].mxu0 }
  0xe7   : > { %v1566_v12 = vmul.f32 %v2800_v2, %v1240_v9  ;;  %v973_v13 = vmul.f32 %v2805_v3, %v647_v11 }
  0xe8   : > { %v1638_v14 = vadd.f32 %v2810_v5, %v1567_v8  ;;  %v1045_v15 = vadd.f32 %v2815_v7, %v974_v10 }
  0xe9   : > { %v1637_v16 = vadd.f32 %v2810_v5, %v1566_v12  ;;  %v1044_v17 = vadd.f32 %v2815_v7, %v973_v13  ;;  %v2427_v18 = vpop.f32.mrb[2].mxu1  ;;  %v2329_v19 = vpop.f32.mrb[2].mxu0 }
  0xea   : > { %vm1702_vm2 = vcmp.ge.f32.partialorder %v1638_v14, 0.0  ;;  %v1766_v20 = vmul.f32 0.01, %v1638_v14  ;;  %1110 = vst.msk [vmem:[%s2824_s26 + $0x8] sm:$0xff] %vm1108_vm1, %v1045_v15  ;;  %v1569_v21 = vmul.f32 %v2427_v18, %v2800_v2  ;;  %v1250_v22 = vpop.f32.mrb[3].mxu1  ;;  %v976_v23 = vmul.f32 %v2329_v19, %v2805_v3  ;;  %v657_v24 = vpop.f32.mrb[3].mxu0 }
  0xeb   : > { %vm1701_vm3 = vcmp.ge.f32.partialorder %v1637_v16, 0.0  ;;  %v1765_v25 = vmul.f32 0.01, %v1637_v16  ;;  %1109 = vst.msk [vmem:[%s2824_s26] sm:$0xff] %vm1108_vm1, %v1044_v17  ;;  %v1568_v26 = vmul.f32 %v2800_v2, %v1250_v22  ;;  %v975_v27 = vmul.f32 %v2805_v3, %v657_v24 }
  0xec   : > { %v1830_v28 = vsel %vm1702_vm2, %v1638_v14, %v1766_v20  ;;  %v1640_v29 = vadd.f32 %v2810_v5, %v1569_v21  ;;  %v1047_v30 = vadd.f32 %v2815_v7, %v976_v23 }
  0xed   : > { %1894 = vst.msk [vmem:[%s2835_s30 + $0x8] sm:$0xff] %vm388_vm0, %v1830_v28  ;;  %v1829_v31 = vsel %vm1701_vm3, %v1637_v16, %v1765_v25  ;;  %v1639_v32 = vadd.f32 %v2810_v5, %v1568_v26  ;;  %v1046_v33 = vadd.f32 %v2815_v7, %v975_v27  ;;  %v2430_v34 = vpop.f32.mrb[4].mxu1  ;;  %v2332_v35 = vpop.f32.mrb[4].mxu0 }
  0xee   : > { %1893 = vst.msk [vmem:[%s2835_s30] sm:$0xff] %vm388_vm0, %v1829_v31  ;;  %vm1704_vm4 = vcmp.ge.f32.partialorder %v1640_v29, 0.0  ;;  %v1768_v36 = vmul.f32 0.01, %v1640_v29  ;;  %v1571_v37 = vmul.f32 %v2430_v34, %v2800_v2  ;;  %v1260_v38 = vpop.f32.mrb[5].mxu1  ;;  %v978_v39 = vmul.f32 %v2332_v35, %v2805_v3  ;;  %v667_v40 = vpop.f32.mrb[5].mxu0 }
  0xef   : > { %1112 = vst.msk [vmem:[%s2824_s26 + $0x18] sm:$0xff] %vm1108_vm1, %v1047_v30  ;;  %vm1703_vm5 = vcmp.ge.f32.partialorder %v1639_v32, 0.0  ;;  %v1767_v41 = vmul.f32 0.01, %v1639_v32  ;;  %1111 = vst.msk [vmem:[%s2824_s26 + $0x10] sm:$0xff] %vm1108_vm1, %v1046_v33  ;;  %v1570_v42 = vmul.f32 %v2800_v2, %v1260_v38  ;;  %v977_v43 = vmul.f32 %v2805_v3, %v667_v40 }
  0xf0   : > { %v1832_v44 = vsel %vm1704_vm4, %v1640_v29, %v1768_v36  ;;  %v1642_v45 = vadd.f32 %v2810_v5, %v1571_v37  ;;  %v1049_v46 = vadd.f32 %v2815_v7, %v978_v39 }
  0xf1   : > { %1896 = vst.msk [vmem:[%s2835_s30 + $0x18] sm:$0xff] %vm388_vm0, %v1832_v44  ;;  %v1831_v47 = vsel %vm1703_vm5, %v1639_v32, %v1767_v41  ;;  %v1641_v48 = vadd.f32 %v2810_v5, %v1570_v42  ;;  %v1048_v49 = vadd.f32 %v2815_v7, %v977_v43  ;;  %v2433_v50 = vpop.f32.mrb[6].mxu1  ;;  %v2335_v51 = vpop.f32.mrb[6].mxu0 }
  0xf2   : > { %1895 = vst.msk [vmem:[%s2835_s30 + $0x10] sm:$0xff] %vm388_vm0, %v1831_v47  ;;  %vm1706_vm6 = vcmp.ge.f32.partialorder %v1642_v45, 0.0  ;;  %v1770_v52 = vmul.f32 0.01, %v1642_v45  ;;  %v1573_v53 = vmul.f32 %v2433_v50, %v2800_v2  ;;  %v1270_v54 = vpop.f32.mrb[7].mxu1  ;;  %v980_v55 = vmul.f32 %v2335_v51, %v2805_v3  ;;  %v677_v56 = vpop.f32.mrb[7].mxu0 }
  0xf3   : > { %1114 = vst.msk [vmem:[%s2824_s26 + $0x28] sm:$0xff] %vm1108_vm1, %v1049_v46  ;;  %vm1705_vm7 = vcmp.ge.f32.partialorder %v1641_v48, 0.0  ;;  %v1769_v57 = vmul.f32 0.01, %v1641_v48  ;;  %1113 = vst.msk [vmem:[%s2824_s26 + $0x20] sm:$0xff] %vm1108_vm1, %v1048_v49  ;;  %v1572_v58 = vmul.f32 %v2800_v2, %v1270_v54  ;;  %v979_v59 = vmul.f32 %v2805_v3, %v677_v56 }
  0xf4   : > { %v1834_v60 = vsel %vm1706_vm6, %v1642_v45, %v1770_v52  ;;  %v1644_v61 = vadd.f32 %v2810_v5, %v1573_v53  ;;  %v1051_v62 = vadd.f32 %v2815_v7, %v980_v55 }
  0xf5   : > { %1898 = vst.msk [vmem:[%s2835_s30 + $0x28] sm:$0xff] %vm388_vm0, %v1834_v60  ;;  %v1833_v63 = vsel %vm1705_vm7, %v1641_v48, %v1769_v57  ;;  %v1643_v0 = vadd.f32 %v2810_v5, %v1572_v58  ;;  %v1050_v1 = vadd.f32 %v2815_v7, %v979_v59  ;;  %v2436_v4 = vpop.f32.mrb[8].mxu1  ;;  %v2338_v6 = vpop.f32.mrb[8].mxu0 }
  0xf6   : > { %1897 = vst.msk [vmem:[%s2835_s30 + $0x20] sm:$0xff] %vm388_vm0, %v1833_v63  ;;  %vm1708_vm8 = vcmp.ge.f32.partialorder %v1644_v61, 0.0  ;;  %v1772_v8 = vmul.f32 0.01, %v1644_v61  ;;  %v1575_v9 = vmul.f32 %v2436_v4, %v2800_v2  ;;  %v1280_v10 = vpop.f32.mrb[9].mxu1  ;;  %v982_v11 = vmul.f32 %v2338_v6, %v2805_v3  ;;  %v687_v12 = vpop.f32.mrb[9].mxu0 }
  0xf7   : > { %1116 = vst.msk [vmem:[%s2824_s26 + $0x38] sm:$0xff] %vm1108_vm1, %v1051_v62  ;;  %vm1707_vm9 = vcmp.ge.f32.partialorder %v1643_v0, 0.0  ;;  %v1771_v13 = vmul.f32 0.01, %v1643_v0  ;;  %1115 = vst.msk [vmem:[%s2824_s26 + $0x30] sm:$0xff] %vm1108_vm1, %v1050_v1  ;;  %v1574_v14 = vmul.f32 %v2800_v2, %v1280_v10  ;;  %v981_v15 = vmul.f32 %v2805_v3, %v687_v12 }
  0xf8   : > { %v1836_v16 = vsel %vm1708_vm8, %v1644_v61, %v1772_v8  ;;  %v1646_v17 = vadd.f32 %v2810_v5, %v1575_v9  ;;  %v1053_v18 = vadd.f32 %v2815_v7, %v982_v11 }
  0xf9   : > { %1900 = vst.msk [vmem:[%s2835_s30 + $0x38] sm:$0xff] %vm388_vm0, %v1836_v16  ;;  %v1835_v19 = vsel %vm1707_vm9, %v1643_v0, %v1771_v13  ;;  %v1645_v20 = vadd.f32 %v2810_v5, %v1574_v14  ;;  %v1052_v21 = vadd.f32 %v2815_v7, %v981_v15  ;;  %v2439_v22 = vpop.f32.mrb[10].mxu1  ;;  %v2341_v23 = vpop.f32.mrb[10].mxu0 }
  0xfa   : > { %1899 = vst.msk [vmem:[%s2835_s30 + $0x30] sm:$0xff] %vm388_vm0, %v1835_v19  ;;  %vm1710_vm10 = vcmp.ge.f32.partialorder %v1646_v17, 0.0  ;;  %v1774_v24 = vmul.f32 0.01, %v1646_v17  ;;  %v1577_v25 = vmul.f32 %v2439_v22, %v2800_v2  ;;  %v1290_v26 = vpop.f32.mrb[11].mxu1  ;;  %v984_v27 = vmul.f32 %v2341_v23, %v2805_v3  ;;  %v697_v28 = vpop.f32.mrb[11].mxu0 }
  0xfb   : > { %1118 = vst.msk [vmem:[%s2824_s26 + $0x48] sm:$0xff] %vm1108_vm1, %v1053_v18  ;;  %vm1709_vm11 = vcmp.ge.f32.partialorder %v1645_v20, 0.0  ;;  %v1773_v29 = vmul.f32 0.01, %v1645_v20  ;;  %1117 = vst.msk [vmem:[%s2824_s26 + $0x40] sm:$0xff] %vm1108_vm1, %v1052_v21  ;;  %v1576_v30 = vmul.f32 %v2800_v2, %v1290_v26  ;;  %v983_v31 = vmul.f32 %v2805_v3, %v697_v28 }
  0xfc   : > { %v1838_v32 = vsel %vm1710_vm10, %v1646_v17, %v1774_v24  ;;  %v1648_v33 = vadd.f32 %v2810_v5, %v1577_v25  ;;  %v1055_v34 = vadd.f32 %v2815_v7, %v984_v27 }
  0xfd   : > { %1902 = vst.msk [vmem:[%s2835_s30 + $0x48] sm:$0xff] %vm388_vm0, %v1838_v32  ;;  %v1837_v35 = vsel %vm1709_vm11, %v1645_v20, %v1773_v29  ;;  %v1647_v36 = vadd.f32 %v2810_v5, %v1576_v30  ;;  %v1054_v37 = vadd.f32 %v2815_v7, %v983_v31  ;;  %v2442_v38 = vpop.f32.mrb[12].mxu1  ;;  %v2344_v39 = vpop.f32.mrb[12].mxu0 }
  0xfe   : > { %1901 = vst.msk [vmem:[%s2835_s30 + $0x40] sm:$0xff] %vm388_vm0, %v1837_v35  ;;  %vm1712_vm12 = vcmp.ge.f32.partialorder %v1648_v33, 0.0  ;;  %v1776_v40 = vmul.f32 0.01, %v1648_v33  ;;  %v1579_v41 = vmul.f32 %v2442_v38, %v2800_v2  ;;  %v1300_v42 = vpop.f32.mrb[13].mxu1  ;;  %v986_v43 = vmul.f32 %v2344_v39, %v2805_v3  ;;  %v707_v44 = vpop.f32.mrb[13].mxu0 }
  0xff   : > { %1120 = vst.msk [vmem:[%s2824_s26 + $0x58] sm:$0xff] %vm1108_vm1, %v1055_v34  ;;  %vm1711_vm13 = vcmp.ge.f32.partialorder %v1647_v36, 0.0  ;;  %v1775_v45 = vmul.f32 0.01, %v1647_v36  ;;  %1119 = vst.msk [vmem:[%s2824_s26 + $0x50] sm:$0xff] %vm1108_vm1, %v1054_v37  ;;  %v1578_v46 = vmul.f32 %v2800_v2, %v1300_v42  ;;  %v985_v47 = vmul.f32 %v2805_v3, %v707_v44 }
 0x100   : > { %v1840_v48 = vsel %vm1712_vm12, %v1648_v33, %v1776_v40  ;;  %v1650_v49 = vadd.f32 %v2810_v5, %v1579_v41  ;;  %v1057_v50 = vadd.f32 %v2815_v7, %v986_v43 }
 0x101   : > { %1904 = vst.msk [vmem:[%s2835_s30 + $0x58] sm:$0xff] %vm388_vm0, %v1840_v48  ;;  %v1839_v51 = vsel %vm1711_vm13, %v1647_v36, %v1775_v45  ;;  %v1649_v52 = vadd.f32 %v2810_v5, %v1578_v46  ;;  %v1056_v53 = vadd.f32 %v2815_v7, %v985_v47  ;;  %v2445_v54 = vpop.f32.mrb[14].mxu1  ;;  %v2347_v55 = vpop.f32.mrb[14].mxu0 }
 0x102   : > { %1903 = vst.msk [vmem:[%s2835_s30 + $0x50] sm:$0xff] %vm388_vm0, %v1839_v51  ;;  %vm1714_vm14 = vcmp.ge.f32.partialorder %v1650_v49, 0.0  ;;  %v1778_v56 = vmul.f32 0.01, %v1650_v49  ;;  %v1581_v57 = vmul.f32 %v2445_v54, %v2800_v2  ;;  %v1310_v58 = vpop.f32.mrb[15].mxu1  ;;  %v988_v59 = vmul.f32 %v2347_v55, %v2805_v3  ;;  %v717_v60 = vpop.f32.mrb[15].mxu0 }
 0x103   : > { %1122 = vst.msk [vmem:[%s2824_s26 + $0x68] sm:$0xff] %vm1108_vm1, %v1057_v50  ;;  %vm1713_vm15 = vcmp.ge.f32.partialorder %v1649_v52, 0.0  ;;  %v1777_v61 = vmul.f32 0.01, %v1649_v52  ;;  %1121 = vst.msk [vmem:[%s2824_s26 + $0x60] sm:$0xff] %vm1108_vm1, %v1056_v53  ;;  %v1580_v62 = vmul.f32 %v2800_v2, %v1310_v58  ;;  %v987_v63 = vmul.f32 %v2805_v3, %v717_v60 }
 0x104   : > { %v1842_v0 = vsel %vm1714_vm14, %v1650_v49, %v1778_v56  ;;  %v1652_v1 = vadd.f32 %v2810_v5, %v1581_v57  ;;  %v1059_v4 = vadd.f32 %v2815_v7, %v988_v59 }
 0x105   : > { %1906 = vst.msk [vmem:[%s2835_s30 + $0x68] sm:$0xff] %vm388_vm0, %v1842_v0  ;;  %v1841_v6 = vsel %vm1713_vm15, %v1649_v52, %v1777_v61  ;;  %v1651_v8 = vadd.f32 %v2810_v5, %v1580_v62  ;;  %v1058_v9 = vadd.f32 %v2815_v7, %v987_v63  ;;  %v2448_v10 = vpop.f32.mrb[16].mxu1  ;;  %v2350_v11 = vpop.f32.mrb[16].mxu0 }
 0x106   : > { %1905 = vst.msk [vmem:[%s2835_s30 + $0x60] sm:$0xff] %vm388_vm0, %v1841_v6  ;;  %vm1716_vm2 = vcmp.ge.f32.partialorder %v1652_v1, 0.0  ;;  %v1780_v12 = vmul.f32 0.01, %v1652_v1  ;;  %v1583_v13 = vmul.f32 %v2448_v10, %v2800_v2  ;;  %v1320_v14 = vpop.f32.mrb[17].mxu1  ;;  %v990_v15 = vmul.f32 %v2350_v11, %v2805_v3  ;;  %v727_v16 = vpop.f32.mrb[17].mxu0 }
 0x107   : > { %1124 = vst.msk [vmem:[%s2824_s26 + $0x78] sm:$0xff] %vm1108_vm1, %v1059_v4  ;;  %vm1715_vm3 = vcmp.ge.f32.partialorder %v1651_v8, 0.0  ;;  %v1779_v17 = vmul.f32 0.01, %v1651_v8  ;;  %1123 = vst.msk [vmem:[%s2824_s26 + $0x70] sm:$0xff] %vm1108_vm1, %v1058_v9  ;;  %v1582_v18 = vmul.f32 %v2800_v2, %v1320_v14  ;;  %v989_v19 = vmul.f32 %v2805_v3, %v727_v16 }
 0x108   : > { %v1844_v20 = vsel %vm1716_vm2, %v1652_v1, %v1780_v12  ;;  %v1654_v21 = vadd.f32 %v2810_v5, %v1583_v13  ;;  %v1061_v22 = vadd.f32 %v2815_v7, %v990_v15 }
 0x109   : > { %1908 = vst.msk [vmem:[%s2835_s30 + $0x78] sm:$0xff] %vm388_vm0, %v1844_v20  ;;  %v1843_v23 = vsel %vm1715_vm3, %v1651_v8, %v1779_v17  ;;  %v1653_v24 = vadd.f32 %v2810_v5, %v1582_v18  ;;  %v1060_v25 = vadd.f32 %v2815_v7, %v989_v19  ;;  %v2451_v26 = vpop.f32.mrb[18].mxu1  ;;  %v2353_v27 = vpop.f32.mrb[18].mxu0 }
 0x10a   : > { %1907 = vst.msk [vmem:[%s2835_s30 + $0x70] sm:$0xff] %vm388_vm0, %v1843_v23  ;;  %vm1718_vm4 = vcmp.ge.f32.partialorder %v1654_v21, 0.0  ;;  %v1782_v28 = vmul.f32 0.01, %v1654_v21  ;;  %v1585_v29 = vmul.f32 %v2451_v26, %v2800_v2  ;;  %v1330_v30 = vpop.f32.mrb[19].mxu1  ;;  %v992_v31 = vmul.f32 %v2353_v27, %v2805_v3  ;;  %v737_v32 = vpop.f32.mrb[19].mxu0 }
 0x10b   : > { %1126 = vst.msk [vmem:[%s2824_s26 + $0x88] sm:$0xff] %vm1108_vm1, %v1061_v22  ;;  %vm1717_vm5 = vcmp.ge.f32.partialorder %v1653_v24, 0.0  ;;  %v1781_v33 = vmul.f32 0.01, %v1653_v24  ;;  %1125 = vst.msk [vmem:[%s2824_s26 + $0x80] sm:$0xff] %vm1108_vm1, %v1060_v25  ;;  %v1584_v34 = vmul.f32 %v2800_v2, %v1330_v30  ;;  %v991_v35 = vmul.f32 %v2805_v3, %v737_v32 }
 0x10c   : > { %v1846_v36 = vsel %vm1718_vm4, %v1654_v21, %v1782_v28  ;;  %v1656_v37 = vadd.f32 %v2810_v5, %v1585_v29  ;;  %v1063_v38 = vadd.f32 %v2815_v7, %v992_v31 }
 0x10d   : > { %1910 = vst.msk [vmem:[%s2835_s30 + $0x88] sm:$0xff] %vm388_vm0, %v1846_v36  ;;  %v1845_v39 = vsel %vm1717_vm5, %v1653_v24, %v1781_v33  ;;  %v1655_v40 = vadd.f32 %v2810_v5, %v1584_v34  ;;  %v1062_v41 = vadd.f32 %v2815_v7, %v991_v35  ;;  %v2454_v42 = vpop.f32.mrb[20].mxu1  ;;  %v2356_v43 = vpop.f32.mrb[20].mxu0 }
 0x10e   : > { %1909 = vst.msk [vmem:[%s2835_s30 + $0x80] sm:$0xff] %vm388_vm0, %v1845_v39  ;;  %vm1720_vm6 = vcmp.ge.f32.partialorder %v1656_v37, 0.0  ;;  %v1784_v44 = vmul.f32 0.01, %v1656_v37  ;;  %v1587_v45 = vmul.f32 %v2454_v42, %v2800_v2  ;;  %v1340_v46 = vpop.f32.mrb[21].mxu1  ;;  %v994_v47 = vmul.f32 %v2356_v43, %v2805_v3  ;;  %v747_v48 = vpop.f32.mrb[21].mxu0 }
 0x10f   : > { %1128 = vst.msk [vmem:[%s2824_s26 + $0x98] sm:$0xff] %vm1108_vm1, %v1063_v38  ;;  %vm1719_vm7 = vcmp.ge.f32.partialorder %v1655_v40, 0.0  ;;  %v1783_v49 = vmul.f32 0.01, %v1655_v40  ;;  %1127 = vst.msk [vmem:[%s2824_s26 + $0x90] sm:$0xff] %vm1108_vm1, %v1062_v41  ;;  %v1586_v50 = vmul.f32 %v2800_v2, %v1340_v46  ;;  %v993_v51 = vmul.f32 %v2805_v3, %v747_v48 }
 0x110   : > { %v1848_v52 = vsel %vm1720_vm6, %v1656_v37, %v1784_v44  ;;  %v1658_v53 = vadd.f32 %v2810_v5, %v1587_v45  ;;  %v1065_v54 = vadd.f32 %v2815_v7, %v994_v47 }
 0x111   : > { %1912 = vst.msk [vmem:[%s2835_s30 + $0x98] sm:$0xff] %vm388_vm0, %v1848_v52  ;;  %v1847_v55 = vsel %vm1719_vm7, %v1655_v40, %v1783_v49  ;;  %v1657_v56 = vadd.f32 %v2810_v5, %v1586_v50  ;;  %v1064_v57 = vadd.f32 %v2815_v7, %v993_v51  ;;  %v2457_v58 = vpop.f32.mrb[22].mxu1  ;;  %v2359_v59 = vpop.f32.mrb[22].mxu0 }
 0x112   : > { %1911 = vst.msk [vmem:[%s2835_s30 + $0x90] sm:$0xff] %vm388_vm0, %v1847_v55  ;;  %vm1722_vm8 = vcmp.ge.f32.partialorder %v1658_v53, 0.0  ;;  %v1786_v60 = vmul.f32 0.01, %v1658_v53  ;;  %v1589_v61 = vmul.f32 %v2457_v58, %v2800_v2  ;;  %v1350_v62 = vpop.f32.mrb[23].mxu1  ;;  %v996_v63 = vmul.f32 %v2359_v59, %v2805_v3  ;;  %v757_v0 = vpop.f32.mrb[23].mxu0 }
 0x113   : > { %1130 = vst.msk [vmem:[%s2824_s26 + $0xa8] sm:$0xff] %vm1108_vm1, %v1065_v54  ;;  %vm1721_vm9 = vcmp.ge.f32.partialorder %v1657_v56, 0.0  ;;  %v1785_v1 = vmul.f32 0.01, %v1657_v56  ;;  %1129 = vst.msk [vmem:[%s2824_s26 + $0xa0] sm:$0xff] %vm1108_vm1, %v1064_v57  ;;  %v1588_v4 = vmul.f32 %v2800_v2, %v1350_v62  ;;  %v995_v6 = vmul.f32 %v2805_v3, %v757_v0 }
 0x114   : > { %v1850_v8 = vsel %vm1722_vm8, %v1658_v53, %v1786_v60  ;;  %v1660_v9 = vadd.f32 %v2810_v5, %v1589_v61  ;;  %v1067_v10 = vadd.f32 %v2815_v7, %v996_v63 }
 0x115   : > { %1914 = vst.msk [vmem:[%s2835_s30 + $0xa8] sm:$0xff] %vm388_vm0, %v1850_v8  ;;  %v1849_v11 = vsel %vm1721_vm9, %v1657_v56, %v1785_v1  ;;  %v1659_v12 = vadd.f32 %v2810_v5, %v1588_v4  ;;  %v1066_v13 = vadd.f32 %v2815_v7, %v995_v6  ;;  %v2460_v14 = vpop.f32.mrb[24].mxu1  ;;  %v2362_v15 = vpop.f32.mrb[24].mxu0 }
 0x116   : > { %1913 = vst.msk [vmem:[%s2835_s30 + $0xa0] sm:$0xff] %vm388_vm0, %v1849_v11  ;;  %vm1724_vm10 = vcmp.ge.f32.partialorder %v1660_v9, 0.0  ;;  %v1788_v16 = vmul.f32 0.01, %v1660_v9  ;;  %v1591_v17 = vmul.f32 %v2460_v14, %v2800_v2  ;;  %v1360_v18 = vpop.f32.mrb[25].mxu1  ;;  %v998_v19 = vmul.f32 %v2362_v15, %v2805_v3  ;;  %v767_v20 = vpop.f32.mrb[25].mxu0 }
 0x117   : > { %1132 = vst.msk [vmem:[%s2824_s26 + $0xb8] sm:$0xff] %vm1108_vm1, %v1067_v10  ;;  %vm1723_vm11 = vcmp.ge.f32.partialorder %v1659_v12, 0.0  ;;  %v1787_v21 = vmul.f32 0.01, %v1659_v12  ;;  %1131 = vst.msk [vmem:[%s2824_s26 + $0xb0] sm:$0xff] %vm1108_vm1, %v1066_v13  ;;  %v1590_v22 = vmul.f32 %v2800_v2, %v1360_v18  ;;  %v997_v23 = vmul.f32 %v2805_v3, %v767_v20 }
 0x118   : > { %v1852_v24 = vsel %vm1724_vm10, %v1660_v9, %v1788_v16  ;;  %v1662_v25 = vadd.f32 %v2810_v5, %v1591_v17  ;;  %v1069_v26 = vadd.f32 %v2815_v7, %v998_v19 }
 0x119   : > { %1916 = vst.msk [vmem:[%s2835_s30 + $0xb8] sm:$0xff] %vm388_vm0, %v1852_v24  ;;  %v1851_v27 = vsel %vm1723_vm11, %v1659_v12, %v1787_v21  ;;  %v1661_v28 = vadd.f32 %v2810_v5, %v1590_v22  ;;  %v1068_v29 = vadd.f32 %v2815_v7, %v997_v23  ;;  %v2463_v30 = vpop.f32.mrb[26].mxu1  ;;  %v2365_v31 = vpop.f32.mrb[26].mxu0 }
 0x11a   : > { %1915 = vst.msk [vmem:[%s2835_s30 + $0xb0] sm:$0xff] %vm388_vm0, %v1851_v27  ;;  %vm1726_vm12 = vcmp.ge.f32.partialorder %v1662_v25, 0.0  ;;  %v1790_v32 = vmul.f32 0.01, %v1662_v25  ;;  %v1593_v33 = vmul.f32 %v2463_v30, %v2800_v2  ;;  %v1370_v34 = vpop.f32.mrb[27].mxu1  ;;  %v1000_v35 = vmul.f32 %v2365_v31, %v2805_v3  ;;  %v777_v36 = vpop.f32.mrb[27].mxu0 }
 0x11b   : > { %1134 = vst.msk [vmem:[%s2824_s26 + $0xc8] sm:$0xff] %vm1108_vm1, %v1069_v26  ;;  %vm1725_vm13 = vcmp.ge.f32.partialorder %v1661_v28, 0.0  ;;  %v1789_v37 = vmul.f32 0.01, %v1661_v28  ;;  %1133 = vst.msk [vmem:[%s2824_s26 + $0xc0] sm:$0xff] %vm1108_vm1, %v1068_v29  ;;  %v1592_v38 = vmul.f32 %v2800_v2, %v1370_v34  ;;  %v999_v39 = vmul.f32 %v2805_v3, %v777_v36 }
 0x11c   : > { %v1854_v40 = vsel %vm1726_vm12, %v1662_v25, %v1790_v32  ;;  %v1664_v41 = vadd.f32 %v2810_v5, %v1593_v33  ;;  %v1071_v42 = vadd.f32 %v2815_v7, %v1000_v35 }
 0x11d   : > { %1918 = vst.msk [vmem:[%s2835_s30 + $0xc8] sm:$0xff] %vm388_vm0, %v1854_v40  ;;  %v1853_v43 = vsel %vm1725_vm13, %v1661_v28, %v1789_v37  ;;  %v1663_v44 = vadd.f32 %v2810_v5, %v1592_v38  ;;  %v1070_v45 = vadd.f32 %v2815_v7, %v999_v39  ;;  %v2466_v46 = vpop.f32.mrb[28].mxu1  ;;  %v2368_v47 = vpop.f32.mrb[28].mxu0 }
 0x11e   : > { %1917 = vst.msk [vmem:[%s2835_s30 + $0xc0] sm:$0xff] %vm388_vm0, %v1853_v43  ;;  %vm1728_vm14 = vcmp.ge.f32.partialorder %v1664_v41, 0.0  ;;  %v1792_v48 = vmul.f32 0.01, %v1664_v41  ;;  %v1595_v49 = vmul.f32 %v2466_v46, %v2800_v2  ;;  %v1380_v50 = vpop.f32.mrb[29].mxu1  ;;  %v1002_v51 = vmul.f32 %v2368_v47, %v2805_v3  ;;  %v787_v52 = vpop.f32.mrb[29].mxu0 }
 0x11f   : > { %1136 = vst.msk [vmem:[%s2824_s26 + $0xd8] sm:$0xff] %vm1108_vm1, %v1071_v42  ;;  %vm1727_vm15 = vcmp.ge.f32.partialorder %v1663_v44, 0.0  ;;  %v1791_v53 = vmul.f32 0.01, %v1663_v44  ;;  %1135 = vst.msk [vmem:[%s2824_s26 + $0xd0] sm:$0xff] %vm1108_vm1, %v1070_v45  ;;  %v1594_v54 = vmul.f32 %v2800_v2, %v1380_v50  ;;  %v1001_v55 = vmul.f32 %v2805_v3, %v787_v52 }
 0x120   : > { %v1856_v56 = vsel %vm1728_vm14, %v1664_v41, %v1792_v48  ;;  %v1666_v57 = vadd.f32 %v2810_v5, %v1595_v49  ;;  %v1073_v58 = vadd.f32 %v2815_v7, %v1002_v51 }
 0x121   : > { %1920 = vst.msk [vmem:[%s2835_s30 + $0xd8] sm:$0xff] %vm388_vm0, %v1856_v56  ;;  %v1855_v59 = vsel %vm1727_vm15, %v1663_v44, %v1791_v53  ;;  %v1665_v60 = vadd.f32 %v2810_v5, %v1594_v54  ;;  %v1072_v61 = vadd.f32 %v2815_v7, %v1001_v55  ;;  %v2469_v62 = vpop.f32.mrb[30].mxu1  ;;  %v2371_v63 = vpop.f32.mrb[30].mxu0 }
 0x122   : > { %1919 = vst.msk [vmem:[%s2835_s30 + $0xd0] sm:$0xff] %vm388_vm0, %v1855_v59  ;;  %vm1730_vm2 = vcmp.ge.f32.partialorder %v1666_v57, 0.0  ;;  %v1794_v0 = vmul.f32 0.01, %v1666_v57  ;;  %v1597_v1 = vmul.f32 %v2469_v62, %v2800_v2  ;;  %v1390_v4 = vpop.f32.mrb[31].mxu1  ;;  %v1004_v6 = vmul.f32 %v2371_v63, %v2805_v3  ;;  %v797_v8 = vpop.f32.mrb[31].mxu0 }
 0x123   : > { %1138 = vst.msk [vmem:[%s2824_s26 + $0xe8] sm:$0xff] %vm1108_vm1, %v1073_v58  ;;  %vm1729_vm3 = vcmp.ge.f32.partialorder %v1665_v60, 0.0  ;;  %v1793_v9 = vmul.f32 0.01, %v1665_v60  ;;  %1137 = vst.msk [vmem:[%s2824_s26 + $0xe0] sm:$0xff] %vm1108_vm1, %v1072_v61  ;;  %v1596_v10 = vmul.f32 %v2800_v2, %v1390_v4  ;;  %v1003_v11 = vmul.f32 %v2805_v3, %v797_v8 }
 0x124   : > { %v1858_v12 = vsel %vm1730_vm2, %v1666_v57, %v1794_v0  ;;  %v1668_v13 = vadd.f32 %v2810_v5, %v1597_v1  ;;  %v1075_v14 = vadd.f32 %v2815_v7, %v1004_v6 }
 0x125   : > { %1922 = vst.msk [vmem:[%s2835_s30 + $0xe8] sm:$0xff] %vm388_vm0, %v1858_v12  ;;  %v1857_v15 = vsel %vm1729_vm3, %v1665_v60, %v1793_v9  ;;  %v1667_v16 = vadd.f32 %v2810_v5, %v1596_v10  ;;  %v1074_v17 = vadd.f32 %v2815_v7, %v1003_v11  ;;  %v2472_v18 = vpop.f32.mrb[32].mxu1  ;;  %v2374_v19 = vpop.f32.mrb[32].mxu0 }
 0x126   : > { %1921 = vst.msk [vmem:[%s2835_s30 + $0xe0] sm:$0xff] %vm388_vm0, %v1857_v15  ;;  %vm1732_vm4 = vcmp.ge.f32.partialorder %v1668_v13, 0.0  ;;  %v1796_v20 = vmul.f32 0.01, %v1668_v13  ;;  %v1599_v21 = vmul.f32 %v2472_v18, %v2800_v2  ;;  %v1400_v22 = vpop.f32.mrb[33].mxu1  ;;  %v1006_v23 = vmul.f32 %v2374_v19, %v2805_v3  ;;  %v807_v24 = vpop.f32.mrb[33].mxu0 }
 0x127   : > { %1140 = vst.msk [vmem:[%s2824_s26 + $0xf8] sm:$0xff] %vm1108_vm1, %v1075_v14  ;;  %vm1731_vm5 = vcmp.ge.f32.partialorder %v1667_v16, 0.0  ;;  %v1795_v25 = vmul.f32 0.01, %v1667_v16  ;;  %1139 = vst.msk [vmem:[%s2824_s26 + $0xf0] sm:$0xff] %vm1108_vm1, %v1074_v17  ;;  %v1598_v26 = vmul.f32 %v2800_v2, %v1400_v22  ;;  %v1005_v27 = vmul.f32 %v2805_v3, %v807_v24 }
 0x128   : > { %v1860_v28 = vsel %vm1732_vm4, %v1668_v13, %v1796_v20  ;;  %v1670_v29 = vadd.f32 %v2810_v5, %v1599_v21  ;;  %v1077_v30 = vadd.f32 %v2815_v7, %v1006_v23 }
 0x129   : > { %1924 = vst.msk [vmem:[%s2835_s30 + $0xf8] sm:$0xff] %vm388_vm0, %v1860_v28  ;;  %v1859_v31 = vsel %vm1731_vm5, %v1667_v16, %v1795_v25  ;;  %v1669_v32 = vadd.f32 %v2810_v5, %v1598_v26  ;;  %v1076_v33 = vadd.f32 %v2815_v7, %v1005_v27  ;;  %v2475_v34 = vpop.f32.mrb[34].mxu1  ;;  %v2377_v35 = vpop.f32.mrb[34].mxu0 }
 0x12a   : > { %1923 = vst.msk [vmem:[%s2835_s30 + $0xf0] sm:$0xff] %vm388_vm0, %v1859_v31  ;;  %vm1734_vm6 = vcmp.ge.f32.partialorder %v1670_v29, 0.0  ;;  %v1798_v36 = vmul.f32 0.01, %v1670_v29  ;;  %v1601_v37 = vmul.f32 %v2475_v34, %v2800_v2  ;;  %v1410_v38 = vpop.f32.mrb[35].mxu1  ;;  %v1008_v39 = vmul.f32 %v2377_v35, %v2805_v3  ;;  %v817_v40 = vpop.f32.mrb[35].mxu0 }
 0x12b   : > { %1142 = vst.msk [vmem:[%s2824_s26 + $0x108] sm:$0xff] %vm1108_vm1, %v1077_v30  ;;  %vm1733_vm7 = vcmp.ge.f32.partialorder %v1669_v32, 0.0  ;;  %v1797_v41 = vmul.f32 0.01, %v1669_v32  ;;  %1141 = vst.msk [vmem:[%s2824_s26 + $0x100] sm:$0xff] %vm1108_vm1, %v1076_v33  ;;  %v1600_v42 = vmul.f32 %v2800_v2, %v1410_v38  ;;  %v1007_v43 = vmul.f32 %v2805_v3, %v817_v40 }
 0x12c   : > { %v1862_v44 = vsel %vm1734_vm6, %v1670_v29, %v1798_v36  ;;  %v1672_v45 = vadd.f32 %v2810_v5, %v1601_v37  ;;  %v1079_v46 = vadd.f32 %v2815_v7, %v1008_v39 }
 0x12d   : > { %1926 = vst.msk [vmem:[%s2835_s30 + $0x108] sm:$0xff] %vm388_vm0, %v1862_v44  ;;  %v1861_v47 = vsel %vm1733_vm7, %v1669_v32, %v1797_v41  ;;  %v1671_v48 = vadd.f32 %v2810_v5, %v1600_v42  ;;  %v1078_v49 = vadd.f32 %v2815_v7, %v1007_v43  ;;  %v2478_v50 = vpop.f32.mrb[36].mxu1  ;;  %v2380_v51 = vpop.f32.mrb[36].mxu0 }
 0x12e   : > { %1925 = vst.msk [vmem:[%s2835_s30 + $0x100] sm:$0xff] %vm388_vm0, %v1861_v47  ;;  %vm1736_vm8 = vcmp.ge.f32.partialorder %v1672_v45, 0.0  ;;  %v1800_v52 = vmul.f32 0.01, %v1672_v45  ;;  %v1603_v53 = vmul.f32 %v2478_v50, %v2800_v2  ;;  %v1420_v54 = vpop.f32.mrb[37].mxu1  ;;  %v1010_v55 = vmul.f32 %v2380_v51, %v2805_v3  ;;  %v827_v56 = vpop.f32.mrb[37].mxu0 }
 0x12f   : > { %1144 = vst.msk [vmem:[%s2824_s26 + $0x118] sm:$0xff] %vm1108_vm1, %v1079_v46  ;;  %vm1735_vm9 = vcmp.ge.f32.partialorder %v1671_v48, 0.0  ;;  %v1799_v57 = vmul.f32 0.01, %v1671_v48  ;;  %1143 = vst.msk [vmem:[%s2824_s26 + $0x110] sm:$0xff] %vm1108_vm1, %v1078_v49  ;;  %v1602_v58 = vmul.f32 %v2800_v2, %v1420_v54  ;;  %v1009_v59 = vmul.f32 %v2805_v3, %v827_v56 }
 0x130   : > { %v1864_v60 = vsel %vm1736_vm8, %v1672_v45, %v1800_v52  ;;  %v1674_v61 = vadd.f32 %v2810_v5, %v1603_v53  ;;  %v1081_v62 = vadd.f32 %v2815_v7, %v1010_v55 }
 0x131   : > { %1928 = vst.msk [vmem:[%s2835_s30 + $0x118] sm:$0xff] %vm388_vm0, %v1864_v60  ;;  %v1863_v63 = vsel %vm1735_vm9, %v1671_v48, %v1799_v57  ;;  %v1673_v0 = vadd.f32 %v2810_v5, %v1602_v58  ;;  %v1080_v1 = vadd.f32 %v2815_v7, %v1009_v59  ;;  %v2481_v4 = vpop.f32.mrb[38].mxu1  ;;  %v2383_v6 = vpop.f32.mrb[38].mxu0 }
 0x132   : > { %1927 = vst.msk [vmem:[%s2835_s30 + $0x110] sm:$0xff] %vm388_vm0, %v1863_v63  ;;  %vm1738_vm10 = vcmp.ge.f32.partialorder %v1674_v61, 0.0  ;;  %v1802_v8 = vmul.f32 0.01, %v1674_v61  ;;  %v1605_v9 = vmul.f32 %v2481_v4, %v2800_v2  ;;  %v1430_v10 = vpop.f32.mrb[39].mxu1  ;;  %v1012_v11 = vmul.f32 %v2383_v6, %v2805_v3  ;;  %v837_v12 = vpop.f32.mrb[39].mxu0 }
 0x133   : > { %1146 = vst.msk [vmem:[%s2824_s26 + $0x128] sm:$0xff] %vm1108_vm1, %v1081_v62  ;;  %vm1737_vm11 = vcmp.ge.f32.partialorder %v1673_v0, 0.0  ;;  %v1801_v13 = vmul.f32 0.01, %v1673_v0  ;;  %1145 = vst.msk [vmem:[%s2824_s26 + $0x120] sm:$0xff] %vm1108_vm1, %v1080_v1  ;;  %v1604_v14 = vmul.f32 %v2800_v2, %v1430_v10  ;;  %v1011_v15 = vmul.f32 %v2805_v3, %v837_v12 }
 0x134   : > { %v1866_v16 = vsel %vm1738_vm10, %v1674_v61, %v1802_v8  ;;  %v1676_v17 = vadd.f32 %v2810_v5, %v1605_v9  ;;  %v1083_v18 = vadd.f32 %v2815_v7, %v1012_v11 }
 0x135   : > { %1930 = vst.msk [vmem:[%s2835_s30 + $0x128] sm:$0xff] %vm388_vm0, %v1866_v16  ;;  %v1865_v19 = vsel %vm1737_vm11, %v1673_v0, %v1801_v13  ;;  %v1675_v20 = vadd.f32 %v2810_v5, %v1604_v14  ;;  %v1082_v21 = vadd.f32 %v2815_v7, %v1011_v15  ;;  %v2484_v22 = vpop.f32.mrb[40].mxu1  ;;  %v2386_v23 = vpop.f32.mrb[40].mxu0 }
 0x136   : > { %1929 = vst.msk [vmem:[%s2835_s30 + $0x120] sm:$0xff] %vm388_vm0, %v1865_v19  ;;  %vm1740_vm12 = vcmp.ge.f32.partialorder %v1676_v17, 0.0  ;;  %v1804_v24 = vmul.f32 0.01, %v1676_v17  ;;  %v1607_v25 = vmul.f32 %v2484_v22, %v2800_v2  ;;  %v1440_v26 = vpop.f32.mrb[41].mxu1  ;;  %v1014_v27 = vmul.f32 %v2386_v23, %v2805_v3  ;;  %v847_v28 = vpop.f32.mrb[41].mxu0 }
 0x137   : > { %1148 = vst.msk [vmem:[%s2824_s26 + $0x138] sm:$0xff] %vm1108_vm1, %v1083_v18  ;;  %vm1739_vm13 = vcmp.ge.f32.partialorder %v1675_v20, 0.0  ;;  %v1803_v29 = vmul.f32 0.01, %v1675_v20  ;;  %1147 = vst.msk [vmem:[%s2824_s26 + $0x130] sm:$0xff] %vm1108_vm1, %v1082_v21  ;;  %v1606_v30 = vmul.f32 %v2800_v2, %v1440_v26  ;;  %v1013_v31 = vmul.f32 %v2805_v3, %v847_v28 }
 0x138   : > { %v1868_v32 = vsel %vm1740_vm12, %v1676_v17, %v1804_v24  ;;  %v1678_v33 = vadd.f32 %v2810_v5, %v1607_v25  ;;  %v1085_v34 = vadd.f32 %v2815_v7, %v1014_v27  ;;  %v3210_v19 = vld [vmem:[%s3370_s6] ss:$0 sm:$0xff] }
 0x139   : > { %1932 = vst.msk [vmem:[%s2835_s30 + $0x138] sm:$0xff] %vm388_vm0, %v1868_v32  ;;  %v1867_v35 = vsel %vm1739_vm13, %v1675_v20, %v1803_v29  ;;  %v1677_v36 = vadd.f32 %v2810_v5, %v1606_v30  ;;  %v1084_v37 = vadd.f32 %v2815_v7, %v1013_v31  ;;  %v2487_v38 = vpop.f32.mrb[42].mxu1  ;;  %v2389_v39 = vpop.f32.mrb[42].mxu0  ;;  %v3216_v21 = vld [vmem:[%s3367_s3] ss:$0 sm:$0xff] }
 0x13a   : > { %1931 = vst.msk [vmem:[%s2835_s30 + $0x130] sm:$0xff] %vm388_vm0, %v1867_v35  ;;  %vm1742_vm14 = vcmp.ge.f32.partialorder %v1678_v33, 0.0  ;;  %v1806_v40 = vmul.f32 0.01, %v1678_v33  ;;  %v1609_v41 = vmul.f32 %v2487_v38, %v2800_v2  ;;  %v1450_v42 = vpop.f32.mrb[43].mxu1  ;;  %v1016_v43 = vmul.f32 %v2389_v39, %v2805_v3  ;;  %v857_v44 = vpop.f32.mrb[43].mxu0 }
 0x13b   : > { %1150 = vst.msk [vmem:[%s2824_s26 + $0x148] sm:$0xff] %vm1108_vm1, %v1085_v34  ;;  %vm1741_vm15 = vcmp.ge.f32.partialorder %v1677_v36, 0.0  ;;  %v1805_v45 = vmul.f32 0.01, %v1677_v36  ;;  %1149 = vst.msk [vmem:[%s2824_s26 + $0x140] sm:$0xff] %vm1108_vm1, %v1084_v37  ;;  %v1608_v46 = vmul.f32 %v2800_v2, %v1450_v42  ;;  %v1015_v47 = vmul.f32 %v2805_v3, %v857_v44 }
 0x13c   : > { %v1870_v48 = vsel %vm1742_vm14, %v1678_v33, %v1806_v40  ;;  %v1680_v49 = vadd.f32 %v2810_v5, %v1609_v41  ;;  %v1087_v50 = vadd.f32 %v2815_v7, %v1016_v43 }
 0x13d   : > { %1934 = vst.msk [vmem:[%s2835_s30 + $0x148] sm:$0xff] %vm388_vm0, %v1870_v48  ;;  %v1869_v51 = vsel %vm1741_vm15, %v1677_v36, %v1805_v45  ;;  %v1679_v52 = vadd.f32 %v2810_v5, %v1608_v46  ;;  %v1086_v53 = vadd.f32 %v2815_v7, %v1015_v47  ;;  %v2490_v54 = vpop.f32.mrb[44].mxu1  ;;  %v2392_v55 = vpop.f32.mrb[44].mxu0 }
 0x13e   : > { %1933 = vst.msk [vmem:[%s2835_s30 + $0x140] sm:$0xff] %vm388_vm0, %v1869_v51  ;;  %vm1744_vm2 = vcmp.ge.f32.partialorder %v1680_v49, 0.0  ;;  %v1808_v56 = vmul.f32 0.01, %v1680_v49  ;;  %v1611_v57 = vmul.f32 %v2490_v54, %v2800_v2  ;;  %v1460_v58 = vpop.f32.mrb[45].mxu1  ;;  %v1018_v59 = vmul.f32 %v2392_v55, %v2805_v3  ;;  %v867_v60 = vpop.f32.mrb[45].mxu0 }
 0x13f   : > { %1152 = vst.msk [vmem:[%s2824_s26 + $0x158] sm:$0xff] %vm1108_vm1, %v1087_v50  ;;  %vm1743_vm3 = vcmp.ge.f32.partialorder %v1679_v52, 0.0  ;;  %v1807_v61 = vmul.f32 0.01, %v1679_v52  ;;  %1151 = vst.msk [vmem:[%s2824_s26 + $0x150] sm:$0xff] %vm1108_vm1, %v1086_v53  ;;  %v1610_v62 = vmul.f32 %v2800_v2, %v1460_v58  ;;  %v1017_v63 = vmul.f32 %v2805_v3, %v867_v60 }
 0x140   : > { %v1872_v0 = vsel %vm1744_vm2, %v1680_v49, %v1808_v56  ;;  %v1682_v1 = vadd.f32 %v2810_v5, %v1611_v57  ;;  %v1089_v4 = vadd.f32 %v2815_v7, %v1018_v59 }
 0x141   : > { %1936 = vst.msk [vmem:[%s2835_s30 + $0x158] sm:$0xff] %vm388_vm0, %v1872_v0  ;;  %v1871_v6 = vsel %vm1743_vm3, %v1679_v52, %v1807_v61  ;;  %v1681_v8 = vadd.f32 %v2810_v5, %v1610_v62  ;;  %v1088_v9 = vadd.f32 %v2815_v7, %v1017_v63  ;;  %v2493_v10 = vpop.f32.mrb[46].mxu1  ;;  %v2395_v11 = vpop.f32.mrb[46].mxu0  ;;  %v3198_v5 = vld [vmem:[%s3369_s5] ss:$0 sm:$0xff] }
 0x142   : > { %1935 = vst.msk [vmem:[%s2835_s30 + $0x150] sm:$0xff] %vm388_vm0, %v1871_v6  ;;  %vm1746_vm4 = vcmp.ge.f32.partialorder %v1682_v1, 0.0  ;;  %v1810_v12 = vmul.f32 0.01, %v1682_v1  ;;  %v1613_v13 = vmul.f32 %v2493_v10, %v2800_v2  ;;  %v1470_v14 = vpop.f32.mrb[47].mxu1  ;;  %v1020_v15 = vmul.f32 %v2395_v11, %v2805_v3  ;;  %v877_v16 = vpop.f32.mrb[47].mxu0 }
 0x143   : > { %1154 = vst.msk [vmem:[%s2824_s26 + $0x168] sm:$0xff] %vm1108_vm1, %v1089_v4  ;;  %vm1745_vm5 = vcmp.ge.f32.partialorder %v1681_v8, 0.0  ;;  %v1809_v17 = vmul.f32 0.01, %v1681_v8  ;;  %1153 = vst.msk [vmem:[%s2824_s26 + $0x160] sm:$0xff] %vm1108_vm1, %v1088_v9  ;;  %v1612_v7 = vmul.f32 %v3198_v5, %v1470_v14 }
 0x144   : > { %v3204_v2 = vld [vmem:[%s3366_s2] ss:$0 sm:$0xff]  ;;  %v1874_v18 = vsel %vm1746_vm4, %v1682_v1, %v1810_v12  ;;  %v1684_v20 = vadd.f32 %v3210_v19, %v1613_v13  ;;  %v1091_v22 = vadd.f32 %v3216_v21, %v1020_v15 }
 0x145   : > { %v1019_v3 = vmul.f32 %v3204_v2, %v877_v16  ;;  %1938 = vst.msk [vmem:[%s2835_s30 + $0x168] sm:$0xff] %vm388_vm0, %v1874_v18  ;;  %v1873_v23 = vsel %vm1745_vm5, %v1681_v8, %v1809_v17  ;;  %v1683_v24 = vadd.f32 %v3210_v19, %v1612_v7  ;;  %v2496_v26 = vpop.f32.mrb[48].mxu1  ;;  %v2398_v27 = vpop.f32.mrb[48].mxu0 }
 0x146   : > { %1937 = vst.msk [vmem:[%s2835_s30 + $0x160] sm:$0xff] %vm388_vm0, %v1873_v23  ;;  %vm1748_vm6 = vcmp.ge.f32.partialorder %v1684_v20, 0.0  ;;  %v1812_v28 = vmul.f32 0.01, %v1684_v20  ;;  %v1615_v29 = vmul.f32 %v3198_v5, %v2496_v26  ;;  %v1480_v30 = vpop.f32.mrb[49].mxu1  ;;  %v1022_v31 = vmul.f32 %v3204_v2, %v2398_v27  ;;  %v887_v32 = vpop.f32.mrb[49].mxu0 }
 0x147   : > { %v1090_v25 = vadd.f32 %v3216_v21, %v1019_v3  ;;  %1156 = vst.msk [vmem:[%s2824_s26 + $0x178] sm:$0xff] %vm1108_vm1, %v1091_v22  ;;  %vm1747_vm7 = vcmp.ge.f32.partialorder %v1683_v24, 0.0  ;;  %v1811_v33 = vmul.f32 0.01, %v1683_v24  ;;  %v1614_v34 = vmul.f32 %v3198_v5, %v1480_v30 }
 0x148   : > { %v1021_v35 = vmul.f32 %v3204_v2, %v887_v32  ;;  %v1876_v36 = vsel %vm1748_vm6, %v1684_v20, %v1812_v28  ;;  %v1686_v37 = vadd.f32 %v3210_v19, %v1615_v29  ;;  %v1093_v38 = vadd.f32 %v3216_v21, %v1022_v31 }
 0x149   : > { %1155 = vst.msk [vmem:[%s2824_s26 + $0x170] sm:$0xff] %vm1108_vm1, %v1090_v25  ;;  %v1875_v39 = vsel %vm1747_vm7, %v1683_v24, %v1811_v33  ;;  %v1685_v40 = vadd.f32 %v3210_v19, %v1614_v34  ;;  %v2499_v42 = vpop.f32.mrb[50].mxu1  ;;  %v2401_v43 = vpop.f32.mrb[50].mxu0 }
 0x14a   : > { %1940 = vst.msk [vmem:[%s2835_s30 + $0x178] sm:$0xff] %vm388_vm0, %v1876_v36  ;;  %v1092_v41 = vadd.f32 %v3216_v21, %v1021_v35  ;;  %1939 = vst.msk [vmem:[%s2835_s30 + $0x170] sm:$0xff] %vm388_vm0, %v1875_v39  ;;  %vm1750_vm8 = vcmp.ge.f32.partialorder %v1686_v37, 0.0  ;;  %v1814_v44 = vmul.f32 0.01, %v1686_v37  ;;  %v1617_v45 = vmul.f32 %v3198_v5, %v2499_v42  ;;  %v1490_v46 = vpop.f32.mrb[51].mxu1 }
 0x14b   : > { %1158 = vst.msk [vmem:[%s2824_s26 + $0x188] sm:$0xff] %vm1108_vm1, %v1093_v38  ;;  %v1024_v47 = vmul.f32 %v3204_v2, %v2401_v43  ;;  %v897_v48 = vpop.f32.mrb[51].mxu0  ;;  %vm1749_vm9 = vcmp.ge.f32.partialorder %v1685_v40, 0.0  ;;  %v1813_v49 = vmul.f32 0.01, %v1685_v40  ;;  %v1616_v50 = vmul.f32 %v3198_v5, %v1490_v46 }
 0x14c   : > { %1157 = vst.msk [vmem:[%s2824_s26 + $0x180] sm:$0xff] %vm1108_vm1, %v1092_v41  ;;  %v1023_v51 = vmul.f32 %v3204_v2, %v897_v48  ;;  %v1878_v52 = vsel %vm1750_vm8, %v1686_v37, %v1814_v44  ;;  %v1688_v53 = vadd.f32 %v3210_v19, %v1617_v45 }
 0x14d   : > { %v1095_v54 = vadd.f32 %v3216_v21, %v1024_v47  ;;  %1942 = vst.msk [vmem:[%s2835_s30 + $0x188] sm:$0xff] %vm388_vm0, %v1878_v52  ;;  %v1877_v55 = vsel %vm1749_vm9, %v1685_v40, %v1813_v49  ;;  %v1687_v56 = vadd.f32 %v3210_v19, %v1616_v50  ;;  %v2502_v58 = vpop.f32.mrb[52].mxu1  ;;  %v2404_v59 = vpop.f32.mrb[52].mxu0 }
 0x14e   : > { %v1094_v57 = vadd.f32 %v3216_v21, %v1023_v51  ;;  %1941 = vst.msk [vmem:[%s2835_s30 + $0x180] sm:$0xff] %vm388_vm0, %v1877_v55  ;;  %vm1752_vm10 = vcmp.ge.f32.partialorder %v1688_v53, 0.0  ;;  %v1816_v60 = vmul.f32 0.01, %v1688_v53  ;;  %v1619_v61 = vmul.f32 %v3198_v5, %v2502_v58  ;;  %v1500_v62 = vpop.f32.mrb[53].mxu1  ;;  %v907_v0 = vpop.f32.mrb[53].mxu0 }
 0x14f   : > { %1160 = vst.msk [vmem:[%s2824_s26 + $0x198] sm:$0xff] %vm1108_vm1, %v1095_v54  ;;  %v1026_v63 = vmul.f32 %v3204_v2, %v2404_v59  ;;  %vm1751_vm11 = vcmp.ge.f32.partialorder %v1687_v56, 0.0  ;;  %v1815_v1 = vmul.f32 0.01, %v1687_v56  ;;  %v1618_v4 = vmul.f32 %v3198_v5, %v1500_v62 }
 0x150   : > { %1159 = vst.msk [vmem:[%s2824_s26 + $0x190] sm:$0xff] %vm1108_vm1, %v1094_v57  ;;  %v1025_v6 = vmul.f32 %v3204_v2, %v907_v0  ;;  %v1880_v8 = vsel %vm1752_vm10, %v1688_v53, %v1816_v60  ;;  %v1690_v9 = vadd.f32 %v3210_v19, %v1619_v61 }
 0x151   : > { %v1097_v10 = vadd.f32 %v3216_v21, %v1026_v63  ;;  %1944 = vst.msk [vmem:[%s2835_s30 + $0x198] sm:$0xff] %vm388_vm0, %v1880_v8  ;;  %v1879_v11 = vsel %vm1751_vm11, %v1687_v56, %v1815_v1  ;;  %v1689_v12 = vadd.f32 %v3210_v19, %v1618_v4  ;;  %v2505_v14 = vpop.f32.mrb[54].mxu1  ;;  %v2407_v15 = vpop.f32.mrb[54].mxu0 }
 0x152   : > { %v1096_v13 = vadd.f32 %v3216_v21, %v1025_v6  ;;  %1943 = vst.msk [vmem:[%s2835_s30 + $0x190] sm:$0xff] %vm388_vm0, %v1879_v11  ;;  %vm1754_vm12 = vcmp.ge.f32.partialorder %v1690_v9, 0.0  ;;  %v1818_v16 = vmul.f32 0.01, %v1690_v9  ;;  %v1621_v17 = vmul.f32 %v3198_v5, %v2505_v14  ;;  %v1510_v7 = vpop.f32.mrb[55].mxu1  ;;  %v917_v18 = vpop.f32.mrb[55].mxu0 }
 0x153   : > { %1162 = vst.msk [vmem:[%s2824_s26 + $0x1a8] sm:$0xff] %vm1108_vm1, %v1097_v10  ;;  %v1028_v3 = vmul.f32 %v3204_v2, %v2407_v15  ;;  %vm1753_vm13 = vcmp.ge.f32.partialorder %v1689_v12, 0.0  ;;  %v1817_v20 = vmul.f32 0.01, %v1689_v12  ;;  %v1620_v22 = vmul.f32 %v3198_v5, %v1510_v7 }
 0x154   : > { %1161 = vst.msk [vmem:[%s2824_s26 + $0x1a0] sm:$0xff] %vm1108_vm1, %v1096_v13  ;;  %v1027_v23 = vmul.f32 %v3204_v2, %v917_v18  ;;  %v1882_v24 = vsel %vm1754_vm12, %v1690_v9, %v1818_v16  ;;  %v1692_v25 = vadd.f32 %v3210_v19, %v1621_v17 }
 0x155   : > { %v1099_v26 = vadd.f32 %v3216_v21, %v1028_v3  ;;  %1946 = vst.msk [vmem:[%s2835_s30 + $0x1a8] sm:$0xff] %vm388_vm0, %v1882_v24  ;;  %v1881_v27 = vsel %vm1753_vm13, %v1689_v12, %v1817_v20  ;;  %v1691_v28 = vadd.f32 %v3210_v19, %v1620_v22  ;;  %v2508_v30 = vpop.f32.mrb[56].mxu1  ;;  %v2410_v31 = vpop.f32.mrb[56].mxu0 }
 0x156   : > { %v1098_v29 = vadd.f32 %v3216_v21, %v1027_v23  ;;  %1945 = vst.msk [vmem:[%s2835_s30 + $0x1a0] sm:$0xff] %vm388_vm0, %v1881_v27  ;;  %vm1756_vm14 = vcmp.ge.f32.partialorder %v1692_v25, 0.0  ;;  %v1820_v32 = vmul.f32 0.01, %v1692_v25  ;;  %v1623_v33 = vmul.f32 %v3198_v5, %v2508_v30  ;;  %v1520_v34 = vpop.f32.mrb[57].mxu1  ;;  %v927_v36 = vpop.f32.mrb[57].mxu0 }
 0x157   : > { %1164 = vst.msk [vmem:[%s2824_s26 + $0x1b8] sm:$0xff] %vm1108_vm1, %v1099_v26  ;;  %v1030_v35 = vmul.f32 %v3204_v2, %v2410_v31  ;;  %vm1755_vm15 = vcmp.ge.f32.partialorder %v1691_v28, 0.0  ;;  %v1819_v37 = vmul.f32 0.01, %v1691_v28  ;;  %v1622_v38 = vmul.f32 %v3198_v5, %v1520_v34 }
 0x158   : > { %1163 = vst.msk [vmem:[%s2824_s26 + $0x1b0] sm:$0xff] %vm1108_vm1, %v1098_v29  ;;  %v1029_v39 = vmul.f32 %v3204_v2, %v927_v36  ;;  %v1884_v40 = vsel %vm1756_vm14, %v1692_v25, %v1820_v32  ;;  %v1694_v41 = vadd.f32 %v3210_v19, %v1623_v33 }
 0x159   : > { %v1101_v42 = vadd.f32 %v3216_v21, %v1030_v35  ;;  %1948 = vst.msk [vmem:[%s2835_s30 + $0x1b8] sm:$0xff] %vm388_vm0, %v1884_v40  ;;  %v1883_v43 = vsel %vm1755_vm15, %v1691_v28, %v1819_v37  ;;  %v1693_v44 = vadd.f32 %v3210_v19, %v1622_v38  ;;  %v2511_v46 = vpop.f32.mrb[58].mxu1  ;;  %v2413_v47 = vpop.f32.mrb[58].mxu0 }
 0x15a   : > { %v1100_v45 = vadd.f32 %v3216_v21, %v1029_v39  ;;  %1947 = vst.msk [vmem:[%s2835_s30 + $0x1b0] sm:$0xff] %vm388_vm0, %v1883_v43  ;;  %vm1758_vm2 = vcmp.ge.f32.partialorder %v1694_v41, 0.0  ;;  %v1822_v48 = vmul.f32 0.01, %v1694_v41  ;;  %v1625_v49 = vmul.f32 %v3198_v5, %v2511_v46  ;;  %v1530_v50 = vpop.f32.mrb[59].mxu1  ;;  %v937_v52 = vpop.f32.mrb[59].mxu0 }
 0x15b   : > { %1166 = vst.msk [vmem:[%s2824_s26 + $0x1c8] sm:$0xff] %vm1108_vm1, %v1101_v42  ;;  %v1032_v51 = vmul.f32 %v3204_v2, %v2413_v47  ;;  %vm1757_vm3 = vcmp.ge.f32.partialorder %v1693_v44, 0.0  ;;  %v1821_v53 = vmul.f32 0.01, %v1693_v44  ;;  %v1624_v54 = vmul.f32 %v3198_v5, %v1530_v50 }
 0x15c   : > { %1165 = vst.msk [vmem:[%s2824_s26 + $0x1c0] sm:$0xff] %vm1108_vm1, %v1100_v45  ;;  %v1031_v55 = vmul.f32 %v3204_v2, %v937_v52  ;;  %v1886_v56 = vsel %vm1758_vm2, %v1694_v41, %v1822_v48  ;;  %v1696_v57 = vadd.f32 %v3210_v19, %v1625_v49 }
 0x15d   : > { %v1103_v58 = vadd.f32 %v3216_v21, %v1032_v51  ;;  %1950 = vst.msk [vmem:[%s2835_s30 + $0x1c8] sm:$0xff] %vm388_vm0, %v1886_v56  ;;  %v1885_v59 = vsel %vm1757_vm3, %v1693_v44, %v1821_v53  ;;  %v1695_v60 = vadd.f32 %v3210_v19, %v1624_v54  ;;  %v2514_v62 = vpop.f32.mrb[60].mxu1  ;;  %v2416_v63 = vpop.f32.mrb[60].mxu0 }
 0x15e   : > { %v1102_v61 = vadd.f32 %v3216_v21, %v1031_v55  ;;  %1949 = vst.msk [vmem:[%s2835_s30 + $0x1c0] sm:$0xff] %vm388_vm0, %v1885_v59  ;;  %vm1760_vm4 = vcmp.ge.f32.partialorder %v1696_v57, 0.0  ;;  %v1824_v0 = vmul.f32 0.01, %v1696_v57  ;;  %v1627_v1 = vmul.f32 %v3198_v5, %v2514_v62  ;;  %v1540_v4 = vpop.f32.mrb[61].mxu1  ;;  %v947_v8 = vpop.f32.mrb[61].mxu0 }
 0x15f   : > { %1168 = vst.msk [vmem:[%s2824_s26 + $0x1d8] sm:$0xff] %vm1108_vm1, %v1103_v58  ;;  %v1034_v6 = vmul.f32 %v3204_v2, %v2416_v63  ;;  %vm1759_vm5 = vcmp.ge.f32.partialorder %v1695_v60, 0.0  ;;  %v1823_v9 = vmul.f32 0.01, %v1695_v60  ;;  %v1626_v10 = vmul.f32 %v3198_v5, %v1540_v4 }
 0x160   : > { %1167 = vst.msk [vmem:[%s2824_s26 + $0x1d0] sm:$0xff] %vm1108_vm1, %v1102_v61  ;;  %v1033_v11 = vmul.f32 %v3204_v2, %v947_v8  ;;  %v1888_v12 = vsel %vm1760_vm4, %v1696_v57, %v1824_v0  ;;  %v1698_v13 = vadd.f32 %v3210_v19, %v1627_v1 }
 0x161   : > { %v1105_v14 = vadd.f32 %v3216_v21, %v1034_v6  ;;  %1952 = vst.msk [vmem:[%s2835_s30 + $0x1d8] sm:$0xff] %vm388_vm0, %v1888_v12  ;;  %v1887_v15 = vsel %vm1759_vm5, %v1695_v60, %v1823_v9  ;;  %v1697_v16 = vadd.f32 %v3210_v19, %v1626_v10  ;;  %v2517_v7 = vpop.f32.mrb[62].mxu1  ;;  %v2419_v3 = vpop.f32.mrb[62].mxu0 }
 0x162   : > { %v1104_v17 = vadd.f32 %v3216_v21, %v1033_v11  ;;  %1951 = vst.msk [vmem:[%s2835_s30 + $0x1d0] sm:$0xff] %vm388_vm0, %v1887_v15  ;;  %vm1762_vm6 = vcmp.ge.f32.partialorder %v1698_v13, 0.0  ;;  %v1826_v18 = vmul.f32 0.01, %v1698_v13  ;;  %v1629_v20 = vmul.f32 %v3198_v5, %v2517_v7  ;;  %v1550_v22 = vpop.f32.mrb[63].mxu1  ;;  %v957_v24 = vpop.f32.mrb[63].mxu0 }
 0x163   : > { %1170 = vst.msk [vmem:[%s2824_s26 + $0x1e8] sm:$0xff] %vm1108_vm1, %v1105_v14  ;;  %v1036_v23 = vmul.f32 %v3204_v2, %v2419_v3  ;;  %vm1761_vm7 = vcmp.ge.f32.partialorder %v1697_v16, 0.0  ;;  %v1825_v25 = vmul.f32 0.01, %v1697_v16  ;;  %v1628_v26 = vmul.f32 %v3198_v5, %v1550_v22 }
 0x164   : > { %1169 = vst.msk [vmem:[%s2824_s26 + $0x1e0] sm:$0xff] %vm1108_vm1, %v1104_v17  ;;  %v1035_v27 = vmul.f32 %v3204_v2, %v957_v24  ;;  %v1890_v28 = vsel %vm1762_vm6, %v1698_v13, %v1826_v18  ;;  %v1700_v29 = vadd.f32 %v3210_v19, %v1629_v20 }
 0x165   : > { %v1107_v30 = vadd.f32 %v3216_v21, %v1036_v23  ;;  %1954 = vst.msk [vmem:[%s2835_s30 + $0x1e8] sm:$0xff] %vm388_vm0, %v1890_v28  ;;  %v1889_v31 = vsel %vm1761_vm7, %v1697_v16, %v1825_v25  ;;  %v1699_v32 = vadd.f32 %v3210_v19, %v1628_v26 }
 0x166   : > { %v1106_v33 = vadd.f32 %v3216_v21, %v1035_v27  ;;  %1953 = vst.msk [vmem:[%s2835_s30 + $0x1e0] sm:$0xff] %vm388_vm0, %v1889_v31  ;;  %vm1764_vm8 = vcmp.ge.f32.partialorder %v1700_v29, 0.0  ;;  %v1828_v5 = vmul.f32 0.01, %v1700_v29 }
 0x167   : > { %1172 = vst.msk [vmem:[%s2824_s26 + $0x1f8] sm:$0xff] %vm1108_vm1, %v1107_v30  ;;  %vm1763_vm9 = vcmp.ge.f32.partialorder %v1699_v32, 0.0  ;;  %v1827_v2 = vmul.f32 0.01, %v1699_v32 }
 0x168   : > { %1171 = vst.msk [vmem:[%s2824_s26 + $0x1f0] sm:$0xff] %vm1108_vm1, %v1106_v33  ;;  %v1892_v34 = vsel %vm1764_vm8, %v1700_v29, %v1828_v5 }
 0x169   : > { %1956 = vst.msk [vmem:[%s2835_s30 + $0x1f8] sm:$0xff] %vm388_vm0, %v1892_v34  ;;  %v1891_v35 = vsel %vm1763_vm9, %v1699_v32, %v1827_v2 }
 0x16a   : > { %1955 = vst.msk [vmem:[%s2835_s30 + $0x1f0] sm:$0xff] %vm388_vm0, %v1891_v35 }
 0x16b PF: > { %s19_s27 = sadd.s32 1, %s2536_s27  }
 0x16c   : > { %p16_p4 = scmp.ge.s32.totalorder %s19_s27, 4  }
 0x16e   :  { %18 = sbr.rel (!%p16_p4) target bundleno = 1 (0x1), region = 90 }

// kernel: _lambda_.4
= control target key start
LH: loop header
LB: loop body
LE: loop exit
PB: predicated region body
PF: predicated region fallthrough
CT: control target
= control target key end

     0   :  { %s2206_s15 = smov 0   ;;  %s2208_s16 = smov 0   ;;  %s3176_s0 = inlined_call_operand.vmem [shape: f32[2,8,8,8,8], index: 0, kind: input, shape index: {}]   ;;  %s3177_s1 = inlined_call_operand.vmem [shape: f32[216,8], index: 1, kind: input, shape index: {}]   ;;  %s3178_s2 = inlined_call_operand.vmem [shape: f32[1,8], index: 2, kind: input, shape index: {}]   ;;  %s3179_s3 = inlined_call_operand.vmem [shape: f32[1,8], index: 3, kind: input, shape index: {}]   ;;  %s3180_s4 = inlined_call_operand.vmem [shape: f32[2,8,64,8], index: 4, kind: output, shape index: {}]  }
   0x1   :  { %s2210_s17 = smov 0   ;;  %s2212_s18 = smov 0  }
   0x2   :  { %s2214_s19 = smov 0  }
   0x3 LB: > { %s23_s20 = sadd.s32 1, %s2154_s17  ;;  %s26_s21 = sadd.s32 1, %s2158_s18  ;;  %s2162_s19 = sphi %s2214_s19, %s14_s19   ;;  %s2158_s18 = sphi %s2212_s18, %s3193_s18   ;;  %s2154_s17 = sphi %s2210_s17, %s3192_s17   ;;  %s2150_s16 = sphi %s2208_s16, %s3191_s16   ;;  %s2146_s15 = sphi %s2206_s15, %s3190_s15  }
   0x4   : > { %p24_p0 = scmp.ge.s32.totalorder %s23_s20, 8  ;;  %p1957_p1 = scmp.ge.s32.totalorder %s2162_s19, 1 }
   0x5   : > { %p176_p2 = scmp.lt.s32.totalorder %s2162_s19, 17 }
   0x6   : > { %s3195_s20 = smov (%p24_p0, %s23_s20), 0  ;;  %s3197_s21 = smov (!%p24_p0, %s26_s21), %s2158_s18 }
   0x7   : > { %p177_p3 = pnand %p1957_p1, %p176_p2  ;;  %p28_p4 = scmp.ge.s32.totalorder %s3197_s21, 2 }
   0x8   : > { %p206_p5 = scmp.lt.s32.totalorder (!%p177_p3), %s2150_s16, 1  ;;  %p213_p6 = scmp.lt.s32.totalorder (!%p177_p3), %s2146_s15, 7  ;;  %vm3181_vm0 = vcmask (!%p177_p3), 64512   ;;  %vm222_vm1 = vcmask (!%p177_p3), 58368   ;;  %v2164_v0 = vmov (!%p177_p3), 0.0  }
   0x9   : > { %s3199_s21 = smov (%p28_p4, %s3197_s21), 0  ;;  %180 = sbr.rel (%p177_p3) target bundleno = 811 (0x32b), region = 36 }
   0xa   : > { %221 = vst.msk [vmem:[#allocation2] sm:$0xff] (!%p177_p3), %vm3181_vm0, %v2164_v0  ;;  %224 = vst.msk [vmem:[#allocation2 + $0x10] sm:$0xff] (!%p177_p3), %vm3181_vm0, %v2164_v0  ;;  %s282_s22 = sadd.s32 (!%p177_p3), 4294967295, %s2146_s15 }
   0xb   : > { %226 = vst.msk [vmem:[#allocation2 + $0x20] sm:$0xff] (!%p177_p3), %vm3181_vm0, %v2164_v0  ;;  %228 = vst.msk [vmem:[#allocation2 + $0x30] sm:$0xff] (!%p177_p3), %vm3181_vm0, %v2164_v0  ;;  %p283_p7 = scmp.ge.s32.totalorder (!%p177_p3), %s282_s22, 0  ;;  %p284_p8 = scmp.lt.s32.totalorder (!%p177_p3), %s282_s22, 8 }
   0xc   : > { %230 = vst.msk [vmem:[#allocation2 + $0x40] sm:$0xff] (!%p177_p3), %vm3181_vm0, %v2164_v0  ;;  %232 = vst.msk [vmem:[#allocation2 + $0x50] sm:$0xff] (!%p177_p3), %vm3181_vm0, %v2164_v0  ;;  %p287_p9 = scmp.gt.s32.totalorder (!%p177_p3), %s282_s22, 0  ;;  %p1963_p11 = scmp.lt.s32.totalorder (!%p177_p3), %s282_s22, 7 }
   0xd   : > { %234 = vst.msk [vmem:[#allocation2 + $0x60] sm:$0xff] (!%p177_p3), %vm3181_vm0, %v2164_v0  ;;  %236 = vst.msk [vmem:[#allocation2 + $0x70] sm:$0xff] (!%p177_p3), %vm3181_vm0, %v2164_v0  ;;  %p285_p10 = pnand (!%p177_p3), %p284_p8, %p283_p7 }
   0xe   : > { %238 = vst.msk [vmem:[#allocation2 + $0x80] sm:$0xff] (!%p177_p3), %vm3181_vm0, %v2164_v0  ;;  %240 = vst.msk [vmem:[#allocation2 + $0x90] sm:$0xff] (!%p177_p3), %vm3181_vm0, %v2164_v0 }
   0xf   : > { %242 = vst.msk [vmem:[#allocation2 + $0xa0] sm:$0xff] (!%p177_p3), %vm3181_vm0, %v2164_v0  ;;  %244 = vst.msk [vmem:[#allocation2 + $0xb0] sm:$0xff] (!%p177_p3), %vm3181_vm0, %v2164_v0 }
  0x10   : > { %246 = vst.msk [vmem:[#allocation2 + $0xc0] sm:$0xff] %vm3181_vm0, %v2164_v0  ;;  %248 = vst.msk [vmem:[#allocation2 + $0xd0] sm:$0xff] %vm3181_vm0, %v2164_v0  ;;  %s3201_s16 = smov (!%p206_p5, %s2150_s16), 1  ;;  %s3203_s22 = smov (!%p287_p9, %s282_s22), 0 }
  0x11   : > { %250 = vst.msk [vmem:[#allocation2 + $0xe0] sm:$0xff] %vm3181_vm0, %v2164_v0  ;;  %252 = vst.msk [vmem:[#allocation2 + $0xf0] sm:$0xff] %vm3181_vm0, %v2164_v0  ;;  %s214_s23 = scalar_select %p213_p6, %s2146_s15, 7 }
  0x12   : > { %254 = vst.msk [vmem:[#allocation2 + $0x100] sm:$0xff] %vm3181_vm0, %v2164_v0  ;;  %256 = vst.msk [vmem:[#allocation2 + $0x110] sm:$0xff] %vm3181_vm0, %v2164_v0  ;;  %s1993_s24 = sshll.u32 %s3201_s16, 9  ;;  %s1961_s25 = sshll.u32 %s3201_s16, 6 }
  0x13   : > { %258 = vst.msk [vmem:[#allocation2 + $0x120] sm:$0xff] %vm3181_vm0, %v2164_v0  ;;  %260 = vst.msk [vmem:[#allocation2 + $0x130] sm:$0xff] %vm3181_vm0, %v2164_v0  ;;  %s2372_s28 = scalar_lea.vmem %s3176_s0, %s1993_s24  ;;  %s1960_s29 = sshll.u32 %s214_s23, 3 }
  0x14   : > { %262 = vst.msk [vmem:[#allocation2 + $0x140] sm:$0xff] %vm3181_vm0, %v2164_v0  ;;  %264 = vst.msk [vmem:[#allocation2 + $0x150] sm:$0xff] %vm3181_vm0, %v2164_v0  ;;  %s217_s30 = sadd.s32 %s1961_s25, %s1960_s29  ;;  %s3205_s22 = smov (!%p1963_p11, %s3203_s22), 7 }
  0x15   : > { %266 = vst.msk [vmem:[#allocation2 + $0x160] sm:$0xff] %vm3181_vm0, %v2164_v0  ;;  %268 = vst.msk [vmem:[#allocation2 + $0x170] sm:$0xff] %vm3181_vm0, %v2164_v0  ;;  %s1962_s5 = sshll.u32 %s217_s30, 3  ;;  %s1968_s9 = sshll.u32 (!%p285_p10), %s3205_s22, 6 }
  0x16   : > { %270 = vst.msk [vmem:[#allocation2 + $0x180] sm:$0xff] %vm3181_vm0, %v2164_v0  ;;  %272 = vst.msk [vmem:[#allocation2 + $0x190] sm:$0xff] %vm3181_vm0, %v2164_v0  ;;  %s2377_s8 = scalar_lea.vmem %s3180_s4, %s1962_s5  ;;  %s294_s10 = scalar_lea.vmem (!%p285_p10), %s2372_s28, %s1968_s9 }
  0x17   : > { %274 = vst.msk [vmem:[#allocation2 + $0x1a0] sm:$0xff] %vm3181_vm0, %v2164_v0  ;;  %276 = vst.msk [vmem:[#allocation2 + $0x1b0] sm:$0xff] %vm3181_vm0, %v2164_v0  ;;  %v295_v1 = vld [vmem:[%s294_s10] sm:$0xff] (!%p285_p10)  ;;  %v296_v2 = vld [vmem:[%s294_s10 + $0x8] sm:$0xff] (!%p285_p10) }
  0x18   : > { %278 = vst.msk [vmem:[#allocation2 + $0x1c0] sm:$0xff] %vm3181_vm0, %v2164_v0  ;;  %280 = vst.msk [vmem:[#allocation2 + $0x1d0] sm:$0xff] %vm3181_vm0, %v2164_v0  ;;  %v297_v3 = vld [vmem:[%s294_s10 + $0x10] sm:$0xff] (!%p285_p10)  ;;  %v298_v4 = vld [vmem:[%s294_s10 + $0x18] sm:$0xff] (!%p285_p10) }
  0x19   : > { %223 = vst.msk [vmem:[#allocation2 + $0x8] sm:$0x3] %vm222_vm1, %v2164_v0  ;;  %225 = vst.msk [vmem:[#allocation2 + $0x18] sm:$0x3] %vm222_vm1, %v2164_v0  ;;  %v299_v5 = vld [vmem:[%s294_s10 + $0x20] sm:$0xff] (!%p285_p10)  ;;  %v300_v6 = vld [vmem:[%s294_s10 + $0x28] sm:$0xff] (!%p285_p10) }
  0x1a   : > { %227 = vst.msk [vmem:[#allocation2 + $0x28] sm:$0x3] %vm222_vm1, %v2164_v0  ;;  %229 = vst.msk [vmem:[#allocation2 + $0x38] sm:$0x3] %vm222_vm1, %v2164_v0  ;;  %v301_v7 = vld [vmem:[%s294_s10 + $0x30] sm:$0xff] (!%p285_p10)  ;;  %v302_v8 = vld [vmem:[%s294_s10 + $0x38] sm:$0xff] (!%p285_p10) }
  0x1b   : > { %231 = vst.msk [vmem:[#allocation2 + $0x48] sm:$0x3] %vm222_vm1, %v2164_v0  ;;  %233 = vst.msk [vmem:[#allocation2 + $0x58] sm:$0x3] %vm222_vm1, %v2164_v0 }
  0x1c   : > { %235 = vst.msk [vmem:[#allocation2 + $0x68] sm:$0x3] %vm222_vm1, %v2164_v0  ;;  %237 = vst.msk [vmem:[#allocation2 + $0x78] sm:$0x3] %vm222_vm1, %v2164_v0 }
  0x1d   : > { %239 = vst.msk [vmem:[#allocation2 + $0x88] sm:$0x3] %vm222_vm1, %v2164_v0  ;;  %241 = vst.msk [vmem:[#allocation2 + $0x98] sm:$0x3] %vm222_vm1, %v2164_v0 }
  0x1e   : > { %243 = vst.msk [vmem:[#allocation2 + $0xa8] sm:$0x3] %vm222_vm1, %v2164_v0  ;;  %245 = vst.msk [vmem:[#allocation2 + $0xb8] sm:$0x3] %vm222_vm1, %v2164_v0 }
  0x1f   : > { %247 = vst.msk [vmem:[#allocation2 + $0xc8] sm:$0x3] %vm222_vm1, %v2164_v0  ;;  %249 = vst.msk [vmem:[#allocation2 + $0xd8] sm:$0x3] %vm222_vm1, %v2164_v0 }
  0x20   : > { %251 = vst.msk [vmem:[#allocation2 + $0xe8] sm:$0x3] %vm222_vm1, %v2164_v0  ;;  %253 = vst.msk [vmem:[#allocation2 + $0xf8] sm:$0x3] %vm222_vm1, %v2164_v0 }
  0x21   : > { %255 = vst.msk [vmem:[#allocation2 + $0x108] sm:$0x3] %vm222_vm1, %v2164_v0  ;;  %257 = vst.msk [vmem:[#allocation2 + $0x118] sm:$0x3] %vm222_vm1, %v2164_v0  ;;  %292 = sbr.rel (%p285_p10) target bundleno = 44 (0x2c), region = 40 }
  0x22   : > { %259 = vst.msk [vmem:[#allocation2 + $0x128] sm:$0x3] %vm222_vm1, %v2164_v0  ;;  %261 = vst.msk [vmem:[#allocation2 + $0x138] sm:$0x3] %vm222_vm1, %v2164_v0 }
  0x23   : > { %263 = vst.msk [vmem:[#allocation2 + $0x148] sm:$0x3] %vm222_vm1, %v2164_v0  ;;  %265 = vst.msk [vmem:[#allocation2 + $0x158] sm:$0x3] %vm222_vm1, %v2164_v0 }
  0x24   : > { %267 = vst.msk [vmem:[#allocation2 + $0x168] sm:$0x3] %vm222_vm1, %v2164_v0  ;;  %269 = vst.msk [vmem:[#allocation2 + $0x178] sm:$0x3] %vm222_vm1, %v2164_v0 }
  0x25   : > { %271 = vst.msk [vmem:[#allocation2 + $0x188] sm:$0x3] %vm222_vm1, %v2164_v0  ;;  %273 = vst.msk [vmem:[#allocation2 + $0x198] sm:$0x3] %vm222_vm1, %v2164_v0 }
  0x26   : > { %275 = vst.msk [vmem:[#allocation2 + $0x1a8] sm:$0x3] %vm222_vm1, %v2164_v0  ;;  %277 = vst.msk [vmem:[#allocation2 + $0x1b8] sm:$0x3] %vm222_vm1, %v2164_v0 }
  0x27   : > { %279 = vst.msk [vmem:[#allocation2 + $0x1c8] sm:$0x3] %vm222_vm1, %v2164_v0  ;;  %281 = vst.msk [vmem:[#allocation2 + $0x1d8] sm:$0x3] %vm222_vm1, %v2164_v0 }
  0x28   : > { %304 = vst.msk [vmem:[#allocation2 + $0x11] sm:$0xff] %vm3181_vm0, %v295_v1  ;;  %305 = vst.msk [vmem:[#allocation2 + $0x21] sm:$0xff] %vm3181_vm0, %v296_v2 }
  0x29   : > { %306 = vst.msk [vmem:[#allocation2 + $0x31] sm:$0xff] %vm3181_vm0, %v297_v3  ;;  %307 = vst.msk [vmem:[#allocation2 + $0x41] sm:$0xff] %vm3181_vm0, %v298_v4 }
  0x2a   : > { %308 = vst.msk [vmem:[#allocation2 + $0x51] sm:$0xff] %vm3181_vm0, %v299_v5  ;;  %309 = vst.msk [vmem:[#allocation2 + $0x61] sm:$0xff] %vm3181_vm0, %v300_v6 }
  0x2b   : > { %310 = vst.msk [vmem:[#allocation2 + $0x71] sm:$0xff] %vm3181_vm0, %v301_v7  ;;  %311 = vst.msk [vmem:[#allocation2 + $0x81] sm:$0xff] %vm3181_vm0, %v302_v8 }
  0x2c PF: > { %p312_p12 = scmp.ge.s32.totalorder %s2146_s15, 0  ;;  %p313_p13 = scmp.lt.s32.totalorder %s2146_s15, 8 }
  0x2d   : > { %p316_p0 = scmp.gt.s32.totalorder %s2146_s15, 0 }
  0x2e   : > { %p314_p1 = pnand %p313_p13, %p312_p12 }
  0x2f   : > { %s317_s11 = scalar_select %p316_p0, %s2146_s15, 0 }
  0x30   : > { %321 = sbr.rel (%p314_p1) target bundleno = 57 (0x39), region = 44 }
  0x31   : > { %s3207_s11 = smov (!%p213_p6, %s317_s11), 7 }
  0x32   : > { %s1974_s12 = sshll.u32 (!%p314_p1), %s3207_s11, 6 }
  0x33   : > { %s323_s13 = scalar_lea.vmem (!%p314_p1), %s2372_s28, %s1974_s12 }
  0x34   : > { %v324_v9 = vld [vmem:[%s323_s13] sm:$0xff] (!%p314_p1)  ;;  %v325_v10 = vld [vmem:[%s323_s13 + $0x8] sm:$0xff] (!%p314_p1)  ;;  %v326_v11 = vld [vmem:[%s323_s13 + $0x10] sm:$0xff] (!%p314_p1) }
  0x35   : > { %333 = vst.msk [vmem:[#allocation2 + $0xb1] sm:$0xff] (!%p314_p1), %vm3181_vm0, %v324_v9  ;;  %334 = vst.msk [vmem:[#allocation2 + $0xc1] sm:$0xff] (!%p314_p1), %vm3181_vm0, %v325_v10  ;;  %v327_v12 = vld [vmem:[%s323_s13 + $0x18] sm:$0xff] (!%p314_p1)  ;;  %v328_v13 = vld [vmem:[%s323_s13 + $0x20] sm:$0xff] (!%p314_p1) }
  0x36   : > { %335 = vst.msk [vmem:[#allocation2 + $0xd1] sm:$0xff] (!%p314_p1), %vm3181_vm0, %v326_v11  ;;  %v329_v14 = vld [vmem:[%s323_s13 + $0x28] sm:$0xff] (!%p314_p1)  ;;  %336 = vst.msk [vmem:[#allocation2 + $0xe1] sm:$0xff] (!%p314_p1), %vm3181_vm0, %v327_v12  ;;  %v330_v15 = vld [vmem:[%s323_s13 + $0x30] sm:$0xff] (!%p314_p1) }
  0x37   : > { %337 = vst.msk [vmem:[#allocation2 + $0xf1] sm:$0xff] %vm3181_vm0, %v328_v13  ;;  %338 = vst.msk [vmem:[#allocation2 + $0x101] sm:$0xff] %vm3181_vm0, %v329_v14  ;;  %v331_v16 = vld [vmem:[%s323_s13 + $0x38] sm:$0xff] }
  0x38   : > { %339 = vst.msk [vmem:[#allocation2 + $0x111] sm:$0xff] %vm3181_vm0, %v330_v15  ;;  %340 = vst.msk [vmem:[#allocation2 + $0x121] sm:$0xff] %vm3181_vm0, %v331_v16 }
  0x39 PF: > { %s341_s14 = sadd.s32 1, %s2146_s15 }
  0x3a   : > { %p342_p2 = scmp.ge.s32.totalorder %s341_s14, 0  ;;  %p343_p3 = scmp.lt.s32.totalorder %s341_s14, 8 }
  0x3b   : > { %p346_p4 = scmp.gt.s32.totalorder %s341_s14, 0  ;;  %p1975_p5 = scmp.lt.s32.totalorder %s341_s14, 7 }
  0x3c   : > { %p344_p6 = pnand %p343_p3, %p342_p2 }
  0x3d   : > { %s3209_s14 = smov (!%p346_p4, %s341_s14), 0 }
  0x3e   : > { %s3211_s14 = smov (!%p1975_p5, %s3209_s14), 7  ;;  %351 = sbr.rel (%p344_p6) target bundleno = 70 (0x46), region = 48 }
  0x3f   : > { %s1980_s16 = sshll.u32 (!%p344_p6), %s3211_s14, 6 }
  0x40   : > { %s353_s22 = scalar_lea.vmem (!%p344_p6), %s2372_s28, %s1980_s16 }
  0x41   : > { %v354_v17 = vld [vmem:[%s353_s22] sm:$0xff] (!%p344_p6)  ;;  %v355_v18 = vld [vmem:[%s353_s22 + $0x8] sm:$0xff] (!%p344_p6)  ;;  %v356_v19 = vld [vmem:[%s353_s22 + $0x10] sm:$0xff] (!%p344_p6) }
  0x42   : > { %363 = vst.msk [vmem:[#allocation2 + $0x151] sm:$0xff] (!%p344_p6), %vm3181_vm0, %v354_v17  ;;  %364 = vst.msk [vmem:[#allocation2 + $0x161] sm:$0xff] (!%p344_p6), %vm3181_vm0, %v355_v18  ;;  %v357_v20 = vld [vmem:[%s353_s22 + $0x18] sm:$0xff] (!%p344_p6)  ;;  %v358_v21 = vld [vmem:[%s353_s22 + $0x20] sm:$0xff] (!%p344_p6) }
  0x43   : > { %365 = vst.msk [vmem:[#allocation2 + $0x171] sm:$0xff] (!%p344_p6), %vm3181_vm0, %v356_v19  ;;  %v359_v22 = vld [vmem:[%s353_s22 + $0x28] sm:$0xff] (!%p344_p6)  ;;  %366 = vst.msk [vmem:[#allocation2 + $0x181] sm:$0xff] (!%p344_p6), %vm3181_vm0, %v357_v20  ;;  %v360_v23 = vld [vmem:[%s353_s22 + $0x30] sm:$0xff] (!%p344_p6) }
  0x44   : > { %367 = vst.msk [vmem:[#allocation2 + $0x191] sm:$0xff] (!%p344_p6), %vm3181_vm0, %v358_v21  ;;  %368 = vst.msk [vmem:[#allocation2 + $0x1a1] sm:$0xff] (!%p344_p6), %vm3181_vm0, %v359_v22  ;;  %v361_v24 = vld [vmem:[%s353_s22 + $0x38] sm:$0xff] (!%p344_p6) }
  0x45   : > { %369 = vst.msk [vmem:[#allocation2 + $0x1b1] sm:$0xff] %vm3181_vm0, %v360_v23  ;;  %370 = vst.msk [vmem:[#allocation2 + $0x1c1] sm:$0xff] %vm3181_vm0, %v361_v24 }
  0x46 PF: > { %v2413_v25 = vld [vmem:[#allocation2 + $0x21] sm:$0xff]  ;;  %s2165_s15 = smov 8   ;;  %v2418_v27 = vld [vmem:[#allocation2 + $0x31] sm:$0xff]  ;;  %s2166_s23 = smov 16   ;;  %vm427_vm2 = vcmask 130112   ;;  %vm476_vm3 = vcmask 195712  }
  0x47   : > { %v387_v26 = vld [vmem:[#allocation2 + $0x1] sm:$0xff]  ;;  %407 = vrot.lane.b32.xlu1 %v2413_v25, %s2165_s15  ;;  %v388_v28 = vld [vmem:[#allocation2 + $0x11] sm:$0xff]  ;;  %s2167_s24 = smov 24   ;;  %s2168_s25 = smov 32   ;;  %vm526_vm4 = vcmask 261312   ;;  %vm575_vm5 = vcmask 326912  }
  0x48   : > { %403 = vrot.lane.b32.xlu0 %v387_v26, %s2165_s15  ;;  %v392_v29 = vld [vmem:[#allocation2 + $0x51] sm:$0xff]  ;;  %v2423_v30 = vld [vmem:[#allocation2 + $0x41] sm:$0xff]  ;;  %s2169_s26 = smov 40   ;;  %s2170_s27 = smov 48   ;;  %vm624_vm6 = vcmask 392512   ;;  %vm674_vm7 = vcmask 458112  }
  0x49   : > { %v2425_v31 = vld [vmem:[#allocation2 + $0x20] sm:$0xff]  ;;  %v486_v32 = vld [vmem:[#allocation2 + $0x10] sm:$0xff]  ;;  %s2171_s28 = smov 56   ;;  %s2172_s29 = smov 64   ;;  %vm723_vm8 = vcmask 523712   ;;  %vm772_vm9 = vcmask 589312  }
  0x4a   : > { %v2427_v33 = vld [vmem:[#allocation2 + $0x40] sm:$0xff]  ;;  %v2429_v34 = vld [vmem:[#allocation2 + $0x30] sm:$0xff]  ;;  %381 = vst.msk [vmem:[#allocation3 + $0x20] sm:$0xff] %vm3181_vm0, %v2425_v31  ;;  %380 = vst.msk [vmem:[#allocation3 + $0x10] sm:$0xff] %vm3181_vm0, %v486_v32  ;;  %s2173_s30 = smov 72   ;;  %s2174_s5 = smov 80  }
  0x4b   : > { %409 = vrot.lane.b32.xlu1 %v2418_v27, %s2165_s15  ;;  %v2431_v35 = vld [vmem:[#allocation2 + $0x60] sm:$0xff]  ;;  %v2436_v36 = vld [vmem:[#allocation2 + $0x50] sm:$0xff]  ;;  %382 = vst.msk [vmem:[#allocation3 + $0x30] sm:$0xff] %vm3181_vm0, %v2429_v34  ;;  %383 = vst.msk [vmem:[#allocation3 + $0x40] sm:$0xff] %vm3181_vm0, %v2427_v33  ;;  %s2175_s6 = smov 88   ;;  %s2176_s10 = smov 96  }
  0x4c   : > { %405 = vrot.lane.b32.xlu0 %v388_v28, %s2165_s15  ;;  %v2438_v37 = vld [vmem:[#allocation2 + $0x70] sm:$0xff]  ;;  %385 = vst.msk [vmem:[#allocation3 + $0x60] sm:$0xff] %vm3181_vm0, %v2431_v35  ;;  %384 = vst.msk [vmem:[#allocation3 + $0x50] sm:$0xff] %vm3181_vm0, %v2436_v36  ;;  %v2455_v39 = vld [vmem:[#allocation2 + $0x61] sm:$0xff]  ;;  %s2178_s13 = smov 104   ;;  %s2179_s9 = smov 112  }
  0x4d   : > { %386 = vst.msk [vmem:[#allocation3 + $0x70] sm:$0xff] %vm3181_vm0, %v2438_v37  ;;  %v2453_v38 = vld [vmem:[#allocation2 + $0x71] sm:$0xff]  ;;  %v371_v40 = vld [vmem:[#allocation2] sm:$0xff]  ;;  %s2180_s22 = smov 120   ;;  %vm822_vm10 = vcmask 654912   ;;  %vm871_vm11 = vcmask 720512  }
  0x4e   : > { %379 = vst.msk [vmem:[#allocation3] sm:$0xff] %vm3181_vm0, %v371_v40  ;;  %v437_v41 = vld [vmem:[#allocation2 + $0x12] sm:$0xff]  ;;  %v436_v42 = vld [vmem:[#allocation2 + $0x2] sm:$0xff]  ;;  %vm920_vm12 = vcmask 786112   ;;  %vm970_vm13 = vcmask 851712   ;;  %vm1019_vm14 = vcmask 917312  }
  0x4f   : > { %413 = vrot.lane.b32.xlu1 %v392_v29, %s2165_s15  ;;  %v2462_v43 = vld [vmem:[#allocation2 + $0xe1] sm:$0xff]  ;;  %v2468_v44 = vld [vmem:[#allocation2 + $0x32] sm:$0xff]  ;;  %vm1068_vm15 = vcmask 982912   ;;  %vm1669_vm1 = vcmask 719872  }
  0x50   : > { %411 = vrot.lane.b32.xlu0 %v2423_v30, %s2165_s15  ;;  %1137 = vst.msk [vmem:[#allocation3 + $0x28] sm:$0xff] %vm3181_vm0, %v2462_v43  ;;  %v2470_v45 = vld [vmem:[#allocation2 + $0x22] sm:$0xff]  ;;  %v441_v46 = vld [vmem:[#allocation2 + $0x52] sm:$0xff] }
  0x51   : > { %v2476_v47 = vld [vmem:[#allocation2 + $0x42] sm:$0xff]  ;;  %v2481_v48 = vld [vmem:[#allocation2 + $0x72] sm:$0xff] }
  0x52   : > { %v2483_v49 = vld [vmem:[#allocation2 + $0x62] sm:$0xff]  ;;  %v2506_v51 = vld [vmem:[#allocation2 + $0xf1] sm:$0xff] }
  0x53   : > { %417 = vrot.lane.b32.xlu1 %v2453_v38, %s2165_s15  ;;  %v493_v50 = vld [vmem:[#allocation2 + $0x80] sm:$0xff]  ;;  %1138 = vst.msk [vmem:[#allocation3 + $0x38] sm:$0xff] %vm3181_vm0, %v2506_v51  ;;  %v2575_v61 = vld [vmem:[#allocation2 + $0xd1] sm:$0xff] }
  0x54   : > { %415 = vrot.lane.b32.xlu0 %v2455_v39, %s2165_s15  ;;  %v2517_v52 = vld [vmem:[#allocation2 + $0x81] sm:$0xff]  ;;  %1136 = vst.msk [vmem:[#allocation3 + $0x18] sm:$0xff] %vm3181_vm0, %v2575_v61  ;;  %v2582_v1 = vld [vmem:[#allocation2 + $0x111] sm:$0xff] }
  0x55   : > { %v2533_v53 = vld [vmem:[#allocation2 + $0x82] sm:$0xff]  ;;  %1140 = vst.msk [vmem:[#allocation3 + $0x58] sm:$0xff] %vm3181_vm0, %v2582_v1  ;;  %v1144_v6 = vld [vmem:[#allocation2 + $0xd2] sm:$0xff] }
  0x56   : > { %v2539_v54 = vld [vmem:[#allocation2 + $0xc1] sm:$0xff]  ;;  %v1337_v10 = vld [vmem:[#allocation2 + $0x150] sm:$0xff] }
  0x57   : > { %454 = vrot.lane.b32.xlu1 %v437_v41, %s2166_s23  ;;  %1135 = vst.msk [vmem:[#allocation3 + $0x8] sm:$0xff] %vm3181_vm0, %v2539_v54  ;;  %v2547_v55 = vld [vmem:[#allocation2 + $0x101] sm:$0xff]  ;;  %v1148_v11 = vld [vmem:[#allocation2 + $0x112] sm:$0xff] }
  0x58   : > { %452 = vrot.lane.b32.xlu0 %v436_v42, %s2166_s23  ;;  %1139 = vst.msk [vmem:[#allocation3 + $0x48] sm:$0xff] %vm3181_vm0, %v2547_v55  ;;  %v2559_v56 = vld [vmem:[#allocation2 + $0xc2] sm:$0xff]  ;;  %v1341_v15 = vld [vmem:[#allocation2 + $0x190] sm:$0xff] }
  0x59   : > { %v1192_v57 = vld [vmem:[#allocation2 + $0x140] sm:$0xff]  ;;  %v1385_v20 = vld [vmem:[#allocation2 + $0x151] sm:$0xff] }
  0x5a   : > { %v2564_v58 = vld [vmem:[#allocation2 + $0x102] sm:$0xff]  ;;  %v1389_v23 = vld [vmem:[#allocation2 + $0x191] sm:$0xff] }
  0x5b   : > { %458 = vrot.lane.b32.xlu1 %v2468_v44, %s2166_s23  ;;  %v1196_v59 = vld [vmem:[#allocation2 + $0x180] sm:$0xff] }
  0x5c   : > { %456 = vrot.lane.b32.xlu0 %v2470_v45, %s2166_s23  ;;  %v1240_v60 = vld [vmem:[#allocation2 + $0x141] sm:$0xff] }
  0x5d   : > { %v1244_v62 = vld [vmem:[#allocation2 + $0x181] sm:$0xff] }
  0x5e   : > { %v1288_v63 = vld [vmem:[#allocation2 + $0x142] sm:$0xff] }
  0x5f   : > { %462 = vrot.lane.b32.xlu1 %v441_v46, %s2166_s23  ;;  %v782_v2 = vld [vmem:[#allocation2 + $0xa0] sm:$0xff] }
  0x60   : > { %460 = vrot.lane.b32.xlu0 %v2476_v47, %s2166_s23  ;;  %v1292_v3 = vld [vmem:[#allocation2 + $0x182] sm:$0xff] }
  0x61   : > { %v786_v7 = vld [vmem:[#allocation2 + $0xe0] sm:$0xff] }
  0x62   : > { %v831_v14 = vld [vmem:[#allocation2 + $0xa1] sm:$0xff] }
  0x63   : > { %466 = vrot.lane.b32.xlu1 %v2481_v48, %s2166_s23  ;;  %v880_v26 = vld [vmem:[#allocation2 + $0xa2] sm:$0xff] }
  0x64   : > { %464 = vrot.lane.b32.xlu0 %v2483_v49, %s2166_s23  ;;  %v1642_v42 = vld [vmem:[%s3177_s1] sm:$0xff] }
  0x67   : > { %504 = vrot.lane.b32.xlu1 %v2425_v31, %s2167_s24 }
  0x68   : > { %502 = vrot.lane.b32.xlu0 %v486_v32, %s2167_s24 }
  0x6b   : > { %508 = vrot.lane.b32.xlu1 %v2427_v33, %s2167_s24 }
  0x6c   : > { %506 = vrot.lane.b32.xlu0 %v2429_v34, %s2167_s24 }
  0x6f   : > { %512 = vrot.lane.b32.xlu1 %v2431_v35, %s2167_s24 }
  0x70   : > { %510 = vrot.lane.b32.xlu0 %v2436_v36, %s2167_s24 }
  0x73   : > { %516 = vrot.lane.b32.xlu1 %v493_v50, %s2167_s24 }
  0x74   : > { %514 = vrot.lane.b32.xlu0 %v2438_v37, %s2167_s24 }
  0x77   : > { %553 = vrot.lane.b32.xlu1 %v2413_v25, %s2168_s25 }
  0x78   : > { %551 = vrot.lane.b32.xlu0 %v388_v28, %s2168_s25 }
  0x7b   : > { %557 = vrot.lane.b32.xlu1 %v2423_v30, %s2168_s25 }
  0x7c   : > { %555 = vrot.lane.b32.xlu0 %v2418_v27, %s2168_s25 }
  0x7f   : > { %561 = vrot.lane.b32.xlu1 %v2455_v39, %s2168_s25 }
  0x80   : > { %559 = vrot.lane.b32.xlu0 %v392_v29, %s2168_s25 }
  0x83   : > { %565 = vrot.lane.b32.xlu1 %v2517_v52, %s2168_s25 }
  0x84   : > { %563 = vrot.lane.b32.xlu0 %v2453_v38, %s2168_s25 }
  0x87   : > { %602 = vrot.lane.b32.xlu1 %v2470_v45, %s2169_s26 }
  0x88   : > { %600 = vrot.lane.b32.xlu0 %v437_v41, %s2169_s26 }
  0x8b   : > { %606 = vrot.lane.b32.xlu1 %v2476_v47, %s2169_s26 }
  0x8c   : > { %604 = vrot.lane.b32.xlu0 %v2468_v44, %s2169_s26 }
  0x8f   : > { %610 = vrot.lane.b32.xlu1 %v2483_v49, %s2169_s26 }
  0x90   : > { %608 = vrot.lane.b32.xlu0 %v441_v46, %s2169_s26 }
  0x93   : > { %614 = vrot.lane.b32.xlu1 %v2533_v53, %s2169_s26 }
  0x94   : > { %612 = vrot.lane.b32.xlu0 %v2481_v48, %s2169_s26 }
  0x97   : > { %652 = vrot.lane.b32.xlu1 %v2429_v34, %s2170_s27 }
  0x98   : > { %650 = vrot.lane.b32.xlu0 %v2425_v31, %s2170_s27  ;;  %v2624_v31 = vld [vmem:[#allocation2 + $0xe2] sm:$0xff] }
  0x9b   : > { %656 = vrot.lane.b32.xlu1 %v2436_v36, %s2170_s27  ;;  %v1437_v36 = vld [vmem:[#allocation2 + $0x192] sm:$0xff] }
  0x9c   : > { %654 = vrot.lane.b32.xlu0 %v2427_v33, %s2170_s27  ;;  %v1433_v33 = vld [vmem:[#allocation2 + $0x152] sm:$0xff] }
  0x9f   : > { %660 = vrot.lane.b32.xlu1 %v2438_v37, %s2170_s27 }
  0xa0   : > { %658 = vrot.lane.b32.xlu0 %v2431_v35, %s2170_s27 }
  0xa3   : > { %1159 = vrot.lane.b32.xlu1 %v2559_v56, %s2165_s15 }
  0xa4   : > { %662 = vrot.lane.b32.xlu0 %v493_v50, %s2170_s27 }
  0xa7   : > { %1208 = vrot.lane.b32.xlu1 %v1192_v57, %s2166_s23  ;;  %v1645_v57 = vld [vmem:[%s3177_s1 + $0x18] sm:$0xff] }
  0xa8   : > { %1167 = vrot.lane.b32.xlu0 %v2564_v58, %s2165_s15 }
  0xab   : > { %699 = vrot.lane.b32.xlu1 %v2413_v25, %s2171_s28 }
  0xac   : > { %1216 = vrot.lane.b32.xlu0 %v1196_v59, %s2166_s23  ;;  %v2663_v59 = vld [vmem:[#allocation2 + $0x160] sm:$0xff] }
  0xaf   : > { %1256 = vrot.lane.b32.xlu1 %v1240_v60, %s2167_s24 }
  0xb0   : > { %707 = vrot.lane.b32.xlu0 %v2455_v39, %s2171_s28  ;;  %v930_v39 = vld [vmem:[#allocation2 + $0xb0] sm:$0xff] }
  0xb3   : > { %748 = vrot.lane.b32.xlu1 %v2470_v45, %s2172_s29  ;;  %v2177_v45 = vmov 0.0|0.0  }
  0xb4   : > { %1264 = vrot.lane.b32.xlu0 %v1244_v62, %s2167_s24  ;;  %2000 = vmatprep.subr.bf16.mxu0 %v2177_v45 }
  0xb5   : > { %2039 = vmatprep.subr.bf16.mxu1 %v2177_v45 }
  0xb7   : > { %1304 = vrot.lane.b32.xlu1 %v1288_v63, %s2168_s25 }
  0xb8   : > { %756 = vrot.lane.b32.xlu0 %v2483_v49, %s2172_s29 }
  0xb9   : > { %v408_v4 = vpop.permute.xlu1 %407 }
  0xba   : > { %v404_v5 = vpop.permute.xlu0 %403  ;;  %430 = vst.msk [vmem:[#allocation3 + $0x20] sm:$0xff] %vm427_vm2, %v408_v4 }
  0xbb   : > { %428 = vst.msk [vmem:[#allocation3] sm:$0xff] %vm427_vm2, %v404_v5  ;;  %798 = vrot.lane.b32.xlu1 %v782_v2, %s2173_s30  ;;  %v1646_v2 = vld [vmem:[%s3177_s1 + $0x20] sm:$0xff] }
  0xbc   : > { %1312 = vrot.lane.b32.xlu0 %v1292_v3, %s2168_s25  ;;  %v1647_v3 = vld [vmem:[%s3177_s1 + $0x28] sm:$0xff]  ;;  %v2678_v5 = vld [vmem:[#allocation2 + $0x1a0] sm:$0xff] }
  0xbd   : > { %v410_v8 = vpop.permute.xlu1 %409  ;;  %v2007_v4 = vpack.c.bf16 %v1647_v3, %v1646_v2 }
  0xbe   : > { %v406_v9 = vpop.permute.xlu0 %405  ;;  %431 = vst.msk [vmem:[#allocation3 + $0x30] sm:$0xff] %vm427_vm2, %v410_v8 }
  0xbf   : > { %429 = vst.msk [vmem:[#allocation3 + $0x10] sm:$0xff] %vm427_vm2, %v406_v9  ;;  %1161 = vrot.lane.b32.xlu1 %v1144_v6, %s2165_s15  ;;  %v2681_v6 = vld [vmem:[#allocation2 + $0x121] sm:$0xff]  ;;  %v1648_v9 = vld [vmem:[%s3177_s1 + $0x30] sm:$0xff] }
  0xc0   : > { %806 = vrot.lane.b32.xlu0 %v786_v7, %s2173_s30  ;;  %1141 = vst.msk [vmem:[#allocation3 + $0x68] sm:$0xff] %vm3181_vm0, %v2681_v6 }
  0xc1   : > { %v414_v12 = vpop.permute.xlu1 %413 }
  0xc2   : > { %v412_v13 = vpop.permute.xlu0 %411  ;;  %433 = vst.msk [vmem:[#allocation3 + $0x50] sm:$0xff] %vm427_vm2, %v414_v12 }
  0xc3   : > { %432 = vst.msk [vmem:[#allocation3 + $0x40] sm:$0xff] %vm427_vm2, %v412_v13  ;;  %1353 = vrot.lane.b32.xlu1 %v1337_v10, %s2169_s26 }
  0xc4   : > { %1169 = vrot.lane.b32.xlu0 %v1148_v11, %s2165_s15  ;;  %v2697_v11 = vld [vmem:[#allocation2 + $0xb1] sm:$0xff] }
  0xc5   : > { %v418_v16 = vpop.permute.xlu1 %417 }
  0xc6   : > { %v416_v17 = vpop.permute.xlu0 %415  ;;  %435 = vst.msk [vmem:[#allocation3 + $0x70] sm:$0xff] %vm427_vm2, %v418_v16  ;;  %v1651_v16 = vld [vmem:[%s3177_s1 + $0x48] sm:$0xff] }
  0xc7   : > { %434 = vst.msk [vmem:[#allocation3 + $0x60] sm:$0xff] %vm427_vm2, %v416_v17  ;;  %847 = vrot.lane.b32.xlu1 %v831_v14, %s2174_s5 }
  0xc8   : > { %1361 = vrot.lane.b32.xlu0 %v1341_v15, %s2169_s26 }
  0xc9   : > { %v455_v18 = vpop.permute.xlu1 %454 }
  0xca   : > { %v453_v19 = vpop.permute.xlu0 %452  ;;  %478 = vst.msk [vmem:[#allocation3 + $0x10] sm:$0xff] %vm476_vm3, %v455_v18 }
  0xcb   : > { %477 = vst.msk [vmem:[#allocation3] sm:$0xff] %vm476_vm3, %v453_v19  ;;  %1210 = vrot.lane.b32.xlu1 %v1337_v10, %s2166_s23  ;;  %v1649_v10 = vld [vmem:[%s3177_s1 + $0x38] sm:$0xff] }
  0xcc   : > { %855 = vrot.lane.b32.xlu0 %v2462_v43, %s2174_s5  ;;  %v1643_v43 = vld [vmem:[%s3177_s1 + $0x8] sm:$0xff]  ;;  %v2010_v12 = vpack.c.bf16 %v1649_v10, %v1648_v9 }
  0xcd   : > { %v459_v21 = vpop.permute.xlu1 %458  ;;  %v2001_v46 = vpack.c.bf16 %v1643_v43, %v1642_v42  ;;  %v2771_v42 = vld [vmem:[#allocation2 + $0xb2] sm:$0xff] }
  0xce   : > { %v457_v22 = vpop.permute.xlu0 %456  ;;  %480 = vst.msk [vmem:[#allocation3 + $0x30] sm:$0xff] %vm476_vm3, %v459_v21  ;;  %v1653_v21 = vld [vmem:[%s3177_s1 + $0x58] sm:$0xff] }
  0xcf   : > { %479 = vst.msk [vmem:[#allocation3 + $0x20] sm:$0xff] %vm476_vm3, %v457_v22  ;;  %1401 = vrot.lane.b32.xlu1 %v1385_v20, %s2170_s27  ;;  %2002 = vmatpush1.bf16.msra.mxu0 %v2001_v46 }
  0xd0   : > { %1218 = vrot.lane.b32.xlu0 %v1341_v15, %s2166_s23  ;;  %2053 = vmatpush1.bf16.msra.mxu1 %v2001_v46  ;;  %v1650_v15 = vld [vmem:[%s3177_s1 + $0x40] sm:$0xff]  ;;  %v1660_v46 = vld [vmem:[%s3177_s1 + $0x90] sm:$0xff] }
  0xd1   : > { %v463_v24 = vpop.permute.xlu1 %462  ;;  %2003 = vmatprep.subr.bf16.mxu0 %v2177_v45  ;;  %2040 = vmatprep.subr.bf16.mxu1 %v2177_v45  ;;  %v2013_v17 = vpack.c.bf16 %v1651_v16, %v1650_v15  ;;  %v1668_v16 = vld [vmem:[%s3177_s1 + $0xd0] sm:$0xff] }
  0xd2   : > { %v461_v25 = vpop.permute.xlu0 %460  ;;  %482 = vst.msk [vmem:[#allocation3 + $0x50] sm:$0xff] %vm476_vm3, %v463_v24 }
  0xd3   : > { %481 = vst.msk [vmem:[#allocation3 + $0x40] sm:$0xff] %vm476_vm3, %v461_v25  ;;  %701 = vrot.lane.b32.xlu1 %v2418_v27, %s2171_s28 }
  0xd4   : > { %1409 = vrot.lane.b32.xlu0 %v1389_v23, %s2170_s27 }
  0xd5   : > { %v467_v28 = vpop.permute.xlu1 %466 }
  0xd6   : > { %v465_v29 = vpop.permute.xlu0 %464  ;;  %484 = vst.msk [vmem:[#allocation3 + $0x70] sm:$0xff] %vm476_vm3, %v467_v28  ;;  %v1655_v28 = vld [vmem:[%s3177_s1 + $0x68] sm:$0xff] }
  0xd7   : > { %483 = vst.msk [vmem:[#allocation3 + $0x60] sm:$0xff] %vm476_vm3, %v465_v29  ;;  %896 = vrot.lane.b32.xlu1 %v880_v26, %s2175_s6  ;;  %v1654_v26 = vld [vmem:[%s3177_s1 + $0x60] sm:$0xff] }
  0xd8   : > { %709 = vrot.lane.b32.xlu0 %v2453_v38, %s2171_s28  ;;  %v2739_v29 = vld [vmem:[#allocation2 + $0x161] sm:$0xff] }
  0xd9   : > { %v505_v32 = vpop.permute.xlu1 %504 }
  0xda   : > { %v503_v27 = vpop.permute.xlu0 %502  ;;  %528 = vst.msk [vmem:[#allocation3 + $0x10] sm:$0xff] %vm526_vm4, %v505_v32 }
  0xdb   : > { %527 = vst.msk [vmem:[#allocation3] sm:$0xff] %vm526_vm4, %v503_v27  ;;  %1258 = vrot.lane.b32.xlu1 %v1385_v20, %s2167_s24  ;;  %v1652_v20 = vld [vmem:[%s3177_s1 + $0x50] sm:$0xff] }
  0xdc   : > { %904 = vrot.lane.b32.xlu0 %v2624_v31, %s2175_s6  ;;  %v2016_v22 = vpack.c.bf16 %v1653_v21, %v1652_v20 }
  0xdd   : > { %v509_v34 = vpop.permute.xlu1 %508 }
  0xde   : > { %v507_v35 = vpop.permute.xlu0 %506  ;;  %530 = vst.msk [vmem:[#allocation3 + $0x30] sm:$0xff] %vm526_vm4, %v509_v34  ;;  %v1657_v34 = vld [vmem:[%s3177_s1 + $0x78] sm:$0xff] }
  0xdf   : > { %529 = vst.msk [vmem:[#allocation3 + $0x20] sm:$0xff] %vm526_vm4, %v507_v35  ;;  %1449 = vrot.lane.b32.xlu1 %v1433_v33, %s2171_s28 }
  0xe0   : > { %1266 = vrot.lane.b32.xlu0 %v1389_v23, %s2167_s24  ;;  %v1149_v23 = vld [vmem:[#allocation2 + $0x122] sm:$0xff] }
  0xe1   : > { %v513_v37 = vpop.permute.xlu1 %512 }
  0xe2   : > { %v511_v38 = vpop.permute.xlu0 %510  ;;  %532 = vst.msk [vmem:[#allocation3 + $0x50] sm:$0xff] %vm526_vm4, %v513_v37 }
  0xe3   : > { %531 = vst.msk [vmem:[#allocation3 + $0x40] sm:$0xff] %vm526_vm4, %v511_v38  ;;  %750 = vrot.lane.b32.xlu1 %v2468_v44, %s2172_s29  ;;  %v934_v44 = vld [vmem:[#allocation2 + $0xf0] sm:$0xff] }
  0xe4   : > { %1457 = vrot.lane.b32.xlu0 %v1437_v36, %s2171_s28 }
  0xe5   : > { %v517_v40 = vpop.permute.xlu1 %516 }
  0xe6   : > { %v515_v41 = vpop.permute.xlu0 %514  ;;  %534 = vst.msk [vmem:[#allocation3 + $0x70] sm:$0xff] %vm526_vm4, %v517_v40  ;;  %v1659_v40 = vld [vmem:[%s3177_s1 + $0x88] sm:$0xff] }
  0xe7   : > { %533 = vst.msk [vmem:[#allocation3 + $0x60] sm:$0xff] %vm526_vm4, %v515_v41  ;;  %946 = vrot.lane.b32.xlu1 %v930_v39, %s2176_s10 }
  0xe8   : > { %758 = vrot.lane.b32.xlu0 %v2481_v48, %s2172_s29  ;;  %v1644_v48 = vld [vmem:[%s3177_s1 + $0x10] sm:$0xff] }
  0xe9   : > { %v554_v49 = vpop.permute.xlu1 %553  ;;  %v2004_v60 = vpack.c.bf16 %v1645_v57, %v1644_v48 }
  0xea   : > { %v552_v50 = vpop.permute.xlu0 %551  ;;  %577 = vst.msk [vmem:[#allocation3 + $0x10] sm:$0xff] %vm575_vm5, %v554_v49  ;;  %v1661_v49 = vld [vmem:[%s3177_s1 + $0x98] sm:$0xff] }
  0xeb   : > { %576 = vst.msk [vmem:[#allocation3] sm:$0xff] %vm575_vm5, %v552_v50  ;;  %1306 = vrot.lane.b32.xlu1 %v1433_v33, %s2168_s25  ;;  %2005 = vmatpush1.bf16.msra.mxu0 %v2004_v60  ;;  %v1656_v33 = vld [vmem:[%s3177_s1 + $0x70] sm:$0xff]  ;;  %v2028_v48 = vpack.c.bf16 %v1661_v49, %v1660_v46 }
  0xec   : > { %954 = vrot.lane.b32.xlu0 %v934_v44, %s2176_s10  ;;  %2054 = vmatpush1.bf16.msra.mxu1 %v2004_v60  ;;  %v2022_v35 = vpack.c.bf16 %v1657_v34, %v1656_v33  ;;  %v2787_v50 = vld [vmem:[#allocation2 + $0xf2] sm:$0xff] }
  0xed   : > { %v558_v62 = vpop.permute.xlu1 %557  ;;  %2006 = vmatprep.subr.bf16.mxu0 %v2177_v45  ;;  %2041 = vmatprep.subr.bf16.mxu1 %v2177_v45  ;;  %v641_v46 = vld [vmem:[#allocation2 + $0x90] sm:$0xff] }
  0xee   : > { %v556_v63 = vpop.permute.xlu0 %555  ;;  %579 = vst.msk [vmem:[#allocation3 + $0x30] sm:$0xff] %vm575_vm5, %v558_v62  ;;  %v1663_v62 = vld [vmem:[%s3177_s1 + $0xa8] sm:$0xff]  ;;  %v2922_v49 = vld [vmem:[#allocation2 + $0x1b1] sm:$0xff] }
  0xef   : > { %578 = vst.msk [vmem:[#allocation3 + $0x20] sm:$0xff] %vm575_vm5, %v556_v63  ;;  %1498 = vrot.lane.b32.xlu1 %v2663_v59, %s2172_s29  ;;  %2008 = vmatpush1.bf16.msra.mxu0 %v2007_v4 }
  0xf0   : > { %1314 = vrot.lane.b32.xlu0 %v1437_v36, %s2168_s25  ;;  %2055 = vmatpush1.bf16.msra.mxu1 %v2007_v4  ;;  %v2755_v36 = vld [vmem:[#allocation2 + $0x1a1] sm:$0xff]  ;;  %v1665_v4 = vld [vmem:[%s3177_s1 + $0xb8] sm:$0xff] }
  0xf1   : > { %v562_v7 = vpop.permute.xlu1 %561  ;;  %2009 = vmatprep.subr.bf16.mxu0 %v2177_v45  ;;  %2042 = vmatprep.subr.bf16.mxu1 %v2177_v45 }
  0xf2   : > { %v560_v8 = vpop.permute.xlu0 %559  ;;  %581 = vst.msk [vmem:[#allocation3 + $0x50] sm:$0xff] %vm575_vm5, %v562_v7 }
  0xf3   : > { %580 = vst.msk [vmem:[#allocation3 + $0x40] sm:$0xff] %vm575_vm5, %v560_v8  ;;  %800 = vrot.lane.b32.xlu1 %v930_v39, %s2173_s30  ;;  %2011 = vmatpush1.bf16.msra.mxu0 %v2010_v12  ;;  %v1658_v39 = vld [vmem:[%s3177_s1 + $0x80] sm:$0xff] }
  0xf4   : > { %1506 = vrot.lane.b32.xlu0 %v2678_v5, %s2172_s29  ;;  %2056 = vmatpush1.bf16.msra.mxu1 %v2010_v12  ;;  %v2025_v41 = vpack.c.bf16 %v1659_v40, %v1658_v39  ;;  %v2817_v8 = vld [vmem:[#allocation2 + $0x162] sm:$0xff]  ;;  %v1150_v39 = vld [vmem:[#allocation2 + $0x132] sm:$0xff] }
  0xf5   : > { %v566_v13 = vpop.permute.xlu1 %565  ;;  %2012 = vmatprep.subr.bf16.mxu0 %v2177_v45  ;;  %2043 = vmatprep.subr.bf16.mxu1 %v2177_v45 }
  0xf6   : > { %v564_v14 = vpop.permute.xlu0 %563  ;;  %583 = vst.msk [vmem:[#allocation3 + $0x70] sm:$0xff] %vm575_vm5, %v566_v13  ;;  %v2833_v13 = vld [vmem:[#allocation2 + $0x1a2] sm:$0xff] }
  0xf7   : > { %582 = vst.msk [vmem:[#allocation3 + $0x60] sm:$0xff] %vm575_vm5, %v564_v14  ;;  %995 = vrot.lane.b32.xlu1 %v2697_v11, %s2178_s13  ;;  %2014 = vmatpush1.bf16.msra.mxu0 %v2013_v17 }
  0xf8   : > { %808 = vrot.lane.b32.xlu0 %v934_v44, %s2173_s30  ;;  %2057 = vmatpush1.bf16.msra.mxu1 %v2013_v17 }
  0xf9   : > { %v603_v18 = vpop.permute.xlu1 %602  ;;  %2015 = vmatprep.subr.bf16.mxu0 %v2177_v45  ;;  %2044 = vmatprep.subr.bf16.mxu1 %v2177_v45 }
  0xfa   : > { %v601_v19 = vpop.permute.xlu0 %600  ;;  %626 = vst.msk [vmem:[#allocation3 + $0x10] sm:$0xff] %vm624_vm6, %v603_v18 }
  0xfb   : > { %625 = vst.msk [vmem:[#allocation3] sm:$0xff] %vm624_vm6, %v601_v19  ;;  %1163 = vrot.lane.b32.xlu1 %v2624_v31, %s2165_s15  ;;  %2017 = vmatpush1.bf16.msra.mxu0 %v2016_v22  ;;  %v2019_v31 = vpack.c.bf16 %v1655_v28, %v1654_v26 }
  0xfc   : > { %1003 = vrot.lane.b32.xlu0 %v2506_v51, %s2178_s13  ;;  %2058 = vmatpush1.bf16.msra.mxu1 %v2016_v22 }
  0xfd   : > { %v607_v24 = vpop.permute.xlu1 %606  ;;  %2018 = vmatprep.subr.bf16.mxu0 %v2177_v45  ;;  %2045 = vmatprep.subr.bf16.mxu1 %v2177_v45 }
  0xfe   : > { %v605_v25 = vpop.permute.xlu0 %604  ;;  %628 = vst.msk [vmem:[#allocation3 + $0x30] sm:$0xff] %vm624_vm6, %v607_v24 }
  0xff   : > { %627 = vst.msk [vmem:[#allocation3 + $0x20] sm:$0xff] %vm624_vm6, %v605_v25  ;;  %1355 = vrot.lane.b32.xlu1 %v2663_v59, %s2169_s26  ;;  %2020 = vmatpush1.bf16.msra.mxu0 %v2019_v31 }
 0x100   : > { %1171 = vrot.lane.b32.xlu0 %v1149_v23, %s2165_s15  ;;  %2059 = vmatpush1.bf16.msra.mxu1 %v2019_v31 }
 0x101   : > { %v611_v32 = vpop.permute.xlu1 %610  ;;  %2021 = vmatprep.subr.bf16.mxu0 %v2177_v45  ;;  %2046 = vmatprep.subr.bf16.mxu1 %v2177_v45 }
 0x102   : > { %v609_v27 = vpop.permute.xlu0 %608  ;;  %630 = vst.msk [vmem:[#allocation3 + $0x50] sm:$0xff] %vm624_vm6, %v611_v32 }
 0x103   : > { %629 = vst.msk [vmem:[#allocation3 + $0x40] sm:$0xff] %vm624_vm6, %v609_v27  ;;  %1546 = vrot.lane.b32.xlu1 %v2739_v29, %s2173_s30  ;;  %2023 = vmatpush1.bf16.msra.mxu0 %v2022_v35  ;;  %v1134_v27 = vld [vmem:[#allocation2 + $0x131] sm:$0xff] }
 0x104   : > { %1363 = vrot.lane.b32.xlu0 %v2678_v5, %s2169_s26  ;;  %2060 = vmatpush1.bf16.msra.mxu1 %v2022_v35  ;;  %1142 = vst.msk [vmem:[#allocation3 + $0x78] sm:$0xff] %vm3181_vm0, %v1134_v27  ;;  %vm1118_vm0 = vcmask 1048512  }
 0x105   : > { %v615_v37 = vpop.permute.xlu1 %614  ;;  %2024 = vmatprep.subr.bf16.mxu0 %v2177_v45  ;;  %2047 = vmatprep.subr.bf16.mxu1 %v2177_v45 }
 0x106   : > { %v613_v38 = vpop.permute.xlu0 %612  ;;  %632 = vst.msk [vmem:[#allocation3 + $0x70] sm:$0xff] %vm624_vm6, %v615_v37 }
 0x107   : > { %631 = vst.msk [vmem:[#allocation3 + $0x60] sm:$0xff] %vm624_vm6, %v613_v38  ;;  %849 = vrot.lane.b32.xlu1 %v2697_v11, %s2174_s5  ;;  %2026 = vmatpush1.bf16.msra.mxu0 %v2025_v41  ;;  %v1666_v11 = vld [vmem:[%s3177_s1 + $0xc0] sm:$0xff] }
 0x108   : > { %1554 = vrot.lane.b32.xlu0 %v2755_v36, %s2173_s30  ;;  %2061 = vmatpush1.bf16.msra.mxu1 %v2025_v41 }
 0x109   : > { %v653_v43 = vpop.permute.xlu1 %652  ;;  %2027 = vmatprep.subr.bf16.mxu0 %v2177_v45  ;;  %2048 = vmatprep.subr.bf16.mxu1 %v2177_v45 }
 0x10a   : > { %v651_v44 = vpop.permute.xlu0 %650  ;;  %676 = vst.msk [vmem:[#allocation3 + $0x10] sm:$0xff] %vm674_vm7, %v653_v43 }
 0x10b   : > { %675 = vst.msk [vmem:[#allocation3] sm:$0xff] %vm674_vm7, %v651_v44  ;;  %1044 = vrot.lane.b32.xlu1 %v2771_v42, %s2179_s9  ;;  %2029 = vmatpush1.bf16.msra.mxu0 %v2028_v48 }
 0x10c   : > { %857 = vrot.lane.b32.xlu0 %v2506_v51, %s2174_s5  ;;  %2062 = vmatpush1.bf16.msra.mxu1 %v2028_v48  ;;  %v1662_v51 = vld [vmem:[%s3177_s1 + $0xa0] sm:$0xff] }
 0x10d   : > { %v657_v57 = vpop.permute.xlu1 %656  ;;  %v2031_v63 = vpack.c.bf16 %v1663_v62, %v1662_v51  ;;  %2030 = vmatprep.subr.bf16.mxu0 %v2177_v45  ;;  %2049 = vmatprep.subr.bf16.mxu1 %v2177_v45 }
 0x10e   : > { %v655_v60 = vpop.permute.xlu0 %654  ;;  %678 = vst.msk [vmem:[#allocation3 + $0x30] sm:$0xff] %vm674_vm7, %v657_v57 }
 0x10f   : > { %677 = vst.msk [vmem:[#allocation3 + $0x20] sm:$0xff] %vm674_vm7, %v655_v60  ;;  %1212 = vrot.lane.b32.xlu1 %v2663_v59, %s2166_s23  ;;  %2032 = vmatpush1.bf16.msra.mxu0 %v2031_v63  ;;  %v1664_v59 = vld [vmem:[%s3177_s1 + $0xb0] sm:$0xff] }
 0x110   : > { %1052 = vrot.lane.b32.xlu0 %v2787_v50, %s2179_s9  ;;  %2063 = vmatpush1.bf16.msra.mxu1 %v2031_v63  ;;  %v2034_v7 = vpack.c.bf16 %v1665_v4, %v1664_v59  ;;  %v1579_v59 = vld [vmem:[#allocation2 + $0x172] sm:$0xff] }
 0x111   : > { %v661_v2 = vpop.permute.xlu1 %660  ;;  %2033 = vmatprep.subr.bf16.mxu0 %v2177_v45  ;;  %2050 = vmatprep.subr.bf16.mxu1 %v2177_v45 }
 0x112   : > { %v659_v3 = vpop.permute.xlu0 %658  ;;  %680 = vst.msk [vmem:[#allocation3 + $0x50] sm:$0xff] %vm674_vm7, %v661_v2 }
 0x113   : > { %679 = vst.msk [vmem:[#allocation3 + $0x40] sm:$0xff] %vm674_vm7, %v659_v3  ;;  %1403 = vrot.lane.b32.xlu1 %v2739_v29, %s2170_s27  ;;  %2035 = vmatpush1.bf16.msra.mxu0 %v2034_v7  ;;  %v1583_v3 = vld [vmem:[#allocation2 + $0x1b2] sm:$0xff] }
 0x114   : > { %1220 = vrot.lane.b32.xlu0 %v2678_v5, %s2166_s23  ;;  %2064 = vmatpush1.bf16.msra.mxu1 %v2034_v7  ;;  %v1667_v5 = vld [vmem:[%s3177_s1 + $0xc8] sm:$0xff] }
 0x115   : > { %v1160_v9 = vpop.permute.xlu1 %1159  ;;  %v2037_v12 = vpack.c.bf16 %v1667_v5, %v1666_v11  ;;  %2036 = vmatprep.subr.bf16.mxu0 %v2177_v45  ;;  %2051 = vmatprep.subr.bf16.mxu1 %v2177_v45 }
 0x116   : > { %v663_v10 = vpop.permute.xlu0 %662  ;;  %1183 = vst.msk [vmem:[#allocation3 + $0x8] sm:$0xff] %vm427_vm2, %v1160_v9  ;;  %v686_v9 = vld [vmem:[#allocation2 + $0x51] sm:$0xff] }
 0x117   : > { %681 = vst.msk [vmem:[#allocation3 + $0x60] sm:$0xff] %vm674_vm7, %v663_v10  ;;  %1594 = vrot.lane.b32.xlu1 %v2817_v8, %s2174_s5  ;;  %2038 = vmatpush1.bf16.msra.mxu0 %v2037_v12 }
 0x118   : > { %1411 = vrot.lane.b32.xlu0 %v2755_v36, %s2170_s27  ;;  %2065 = vmatpush1.bf16.msra.mxu1 %v2037_v12 }
 0x119   : > { %v1209_v14 = vpop.permute.xlu1 %1208  ;;  %1746 = vmatprep.subr.mxu0 %v2164_v0  ;;  %2052 = vmatprep.subr.mxu1 %v2164_v0  ;;  %v1082_v0 = vld [vmem:[#allocation2 + $0x100] sm:$0xff] }
 0x11a   : > { %v1168_v15 = vpop.permute.xlu0 %1167  ;;  %1232 = vst.msk [vmem:[#allocation3 + $0x8] sm:$0xff] %vm476_vm3, %v1209_v14  ;;  %v1079_v14 = vld [vmem:[#allocation2 + $0xd0] sm:$0xff] }
 0x11b   : > { %1187 = vst.msk [vmem:[#allocation3 + $0x48] sm:$0xff] %vm427_vm2, %v1168_v15  ;;  %703 = vrot.lane.b32.xlu1 %v2423_v30, %s2171_s28  ;;  %1747 = vmatpush1.msra.mxu0 %v1668_v16  ;;  %v1078_v30 = vld [vmem:[#allocation2 + $0xc0] sm:$0xff] }
 0x11c   : > { %1602 = vrot.lane.b32.xlu0 %v2833_v13, %s2174_s5  ;;  %2066 = vmatpush1.msra.mxu1 %v1668_v16 }
 0x11d   : > { %v700_v45 = vpop.permute.xlu1 %699 }
 0x11e   : > { %v1217_v17 = vpop.permute.xlu0 %1216  ;;  %724 = vst.msk [vmem:[#allocation3] sm:$0xff] %vm723_vm8, %v700_v45 }
 0x11f   : > { %1236 = vst.msk [vmem:[#allocation3 + $0x48] sm:$0xff] %vm476_vm3, %v1217_v17  ;;  %898 = vrot.lane.b32.xlu1 %v2771_v42, %s2175_s6  ;;  %v2915_v42 = vld [vmem:[#allocation2 + $0x171] sm:$0xff] }
 0x120   : > { %711 = vrot.lane.b32.xlu0 %v2517_v52, %s2171_s28 }
 0x121   : > { %v1257_v18 = vpop.permute.xlu1 %1256 }
 0x122   : > { %v708_v19 = vpop.permute.xlu0 %707  ;;  %1280 = vst.msk [vmem:[#allocation3 + $0x8] sm:$0xff] %vm526_vm4, %v1257_v18  ;;  %v735_v18 = vld [vmem:[#allocation2 + $0x52] sm:$0xff] }
 0x123   : > { %728 = vst.msk [vmem:[#allocation3 + $0x40] sm:$0xff] %vm723_vm8, %v708_v19  ;;  %1094 = vrot.lane.b32.xlu1 %v1078_v30, %s2180_s22 }
 0x124   : > { %906 = vrot.lane.b32.xlu0 %v2787_v50, %s2175_s6 }
 0x125   : > { %v749_v20 = vpop.permute.xlu1 %748 }
 0x126   : > { %v1265_v21 = vpop.permute.xlu0 %1264  ;;  %773 = vst.msk [vmem:[#allocation3] sm:$0xff] %vm772_vm9, %v749_v20 }
 0x127   : > { %1284 = vst.msk [vmem:[#allocation3 + $0x48] sm:$0xff] %vm526_vm4, %v1265_v21  ;;  %1260 = vrot.lane.b32.xlu1 %v2739_v29, %s2167_s24 }
 0x128   : > { %1102 = vrot.lane.b32.xlu0 %v1082_v0, %s2180_s22 }
 0x129   : > { %v1305_v52 = vpop.permute.xlu1 %1304 }
 0x12a   : > { %v757_v22 = vpop.permute.xlu0 %756  ;;  %1328 = vst.msk [vmem:[#allocation3 + $0x8] sm:$0xff] %vm575_vm5, %v1305_v52 }
 0x12b   : > { %777 = vst.msk [vmem:[#allocation3 + $0x40] sm:$0xff] %vm772_vm9, %v757_v22  ;;  %1451 = vrot.lane.b32.xlu1 %v2817_v8, %s2171_s28 }
 0x12c   : > { %1268 = vrot.lane.b32.xlu0 %v2755_v36, %s2167_s24 }
 0x12d   : > { %v799_v23 = vpop.permute.xlu1 %798 }
 0x12e   : > { %v1313_v24 = vpop.permute.xlu0 %1312  ;;  %823 = vst.msk [vmem:[#allocation3] sm:$0xff] %vm822_vm10, %v799_v23  ;;  %v1488_v23 = vld [vmem:[#allocation2 + $0x1c0] sm:$0xff] }
 0x12f   : > { %1332 = vst.msk [vmem:[#allocation3 + $0x48] sm:$0xff] %vm575_vm5, %v1313_v24  ;;  %752 = vrot.lane.b32.xlu1 %v2476_v47, %s2172_s29  ;;  %v2886_v47 = vld [vmem:[#allocation2 + $0x170] sm:$0xff]  ;;  %v1484_v24 = vld [vmem:[#allocation2 + $0x180] sm:$0xff] }
 0x130   : > { %1459 = vrot.lane.b32.xlu0 %v2833_v13, %s2171_s28 }
 0x131   : > { %v1162_v25 = vpop.permute.xlu1 %1161 }
 0x132   : > { %v807_v26 = vpop.permute.xlu0 %806  ;;  %1184 = vst.msk [vmem:[#allocation3 + $0x18] sm:$0xff] %vm427_vm2, %v1162_v25 }
 0x133   : > { %827 = vst.msk [vmem:[#allocation3 + $0x40] sm:$0xff] %vm822_vm10, %v807_v26  ;;  %948 = vrot.lane.b32.xlu1 %v1078_v30, %s2176_s10 }
 0x134   : > { %760 = vrot.lane.b32.xlu0 %v2533_v53, %s2172_s29  ;;  %v1487_v53 = vld [vmem:[#allocation2 + $0x1b0] sm:$0xff] }
 0x135   : > { %v1354_v28 = vpop.permute.xlu1 %1353 }
 0x136   : > { %v1170_v29 = vpop.permute.xlu0 %1169  ;;  %1377 = vst.msk [vmem:[#allocation3 + $0x8] sm:$0xff] %vm624_vm6, %v1354_v28 }
 0x137   : > { %1188 = vst.msk [vmem:[#allocation3 + $0x58] sm:$0xff] %vm427_vm2, %v1170_v29  ;;  %1308 = vrot.lane.b32.xlu1 %v2817_v8, %s2168_s25  ;;  %v690_v8 = vld [vmem:[#allocation2 + $0x91] sm:$0xff] }
 0x138   : > { %956 = vrot.lane.b32.xlu0 %v1082_v0, %s2176_s10 }
 0x139   : > { %v848_v31 = vpop.permute.xlu1 %847 }
 0x13a   : > { %v1362_v32 = vpop.permute.xlu0 %1361  ;;  %872 = vst.msk [vmem:[#allocation3] sm:$0xff] %vm871_vm11, %v848_v31 }
 0x13b   : > { %1381 = vst.msk [vmem:[#allocation3 + $0x48] sm:$0xff] %vm624_vm6, %v1362_v32  ;;  %1500 = vrot.lane.b32.xlu1 %v2886_v47, %s2172_s29 }
 0x13c   : > { %1316 = vrot.lane.b32.xlu0 %v2833_v13, %s2168_s25  ;;  %v1083_v13 = vld [vmem:[#allocation2 + $0x110] sm:$0xff] }
 0x13d   : > { %v1211_v33 = vpop.permute.xlu1 %1210 }
 0x13e   : > { %v856_v34 = vpop.permute.xlu0 %855  ;;  %1233 = vst.msk [vmem:[#allocation3 + $0x18] sm:$0xff] %vm476_vm3, %v1211_v33 }
 0x13f   : > { %876 = vst.msk [vmem:[#allocation3 + $0x40] sm:$0xff] %vm871_vm11, %v856_v34  ;;  %802 = vrot.lane.b32.xlu1 %v1078_v30, %s2173_s30  ;;  %v739_v30 = vld [vmem:[#allocation2 + $0x92] sm:$0xff]  ;;  %v1536_v34 = vld [vmem:[#allocation2 + $0x1c1] sm:$0xff] }
 0x140   : > { %1508 = vrot.lane.b32.xlu0 %v1487_v53, %s2172_s29 }
 0x141   : > { %v1402_v35 = vpop.permute.xlu1 %1401 }
 0x142   : > { %v1219_v36 = vpop.permute.xlu0 %1218  ;;  %1425 = vst.msk [vmem:[#allocation3 + $0x8] sm:$0xff] %vm674_vm7, %v1402_v35  ;;  %v1532_v35 = vld [vmem:[#allocation2 + $0x181] sm:$0xff] }
 0x143   : > { %1237 = vst.msk [vmem:[#allocation3 + $0x58] sm:$0xff] %vm476_vm3, %v1219_v36  ;;  %997 = vrot.lane.b32.xlu1 %v2539_v54, %s2178_s13 }
 0x144   : > { %810 = vrot.lane.b32.xlu0 %v1082_v0, %s2173_s30 }
 0x145   : > { %v702_v37 = vpop.permute.xlu1 %701 }
 0x146   : > { %v1410_v38 = vpop.permute.xlu0 %1409  ;;  %725 = vst.msk [vmem:[#allocation3 + $0x10] sm:$0xff] %vm723_vm8, %v702_v37 }
 0x147   : > { %1429 = vst.msk [vmem:[#allocation3 + $0x48] sm:$0xff] %vm674_vm7, %v1410_v38  ;;  %1165 = vrot.lane.b32.xlu1 %v2787_v50, %s2165_s15 }
 0x148   : > { %1005 = vrot.lane.b32.xlu0 %v2547_v55, %s2178_s13 }
 0x149   : > { %v897_v40 = vpop.permute.xlu1 %896 }
 0x14a   : > { %v710_v41 = vpop.permute.xlu0 %709  ;;  %921 = vst.msk [vmem:[#allocation3] sm:$0xff] %vm920_vm12, %v897_v40 }
 0x14b   : > { %729 = vst.msk [vmem:[#allocation3 + $0x50] sm:$0xff] %vm723_vm8, %v710_v41  ;;  %1357 = vrot.lane.b32.xlu1 %v2886_v47, %s2169_s26  ;;  %v1034_v41 = vld [vmem:[#allocation2 + $0x112] sm:$0xff] }
 0x14c   : > { %1173 = vrot.lane.b32.xlu0 %v1150_v39, %s2165_s15 }
 0x14d   : > { %v1259_v43 = vpop.permute.xlu1 %1258 }
 0x14e   : > { %v905_v44 = vpop.permute.xlu0 %904  ;;  %1281 = vst.msk [vmem:[#allocation3 + $0x18] sm:$0xff] %vm526_vm4, %v1259_v43 }
 0x14f   : > { %925 = vst.msk [vmem:[#allocation3 + $0x40] sm:$0xff] %vm920_vm12, %v905_v44  ;;  %1548 = vrot.lane.b32.xlu1 %v2915_v42, %s2173_s30 }
 0x150   : > { %1365 = vrot.lane.b32.xlu0 %v1487_v53, %s2169_s26 }
 0x151   : > { %v1450_v50 = vpop.permute.xlu1 %1449 }
 0x152   : > { %v1267_v48 = vpop.permute.xlu0 %1266  ;;  %1473 = vst.msk [vmem:[#allocation3 + $0x8] sm:$0xff] %vm723_vm8, %v1450_v50 }
 0x153   : > { %1285 = vst.msk [vmem:[#allocation3 + $0x58] sm:$0xff] %vm526_vm4, %v1267_v48  ;;  %664 = vrot.lane.b32.xlu1 %v641_v46, %s2170_s27 }
 0x154   : > { %1556 = vrot.lane.b32.xlu0 %v2922_v49, %s2173_s30 }
 0x155   : > { %v751_v57 = vpop.permute.xlu1 %750 }
 0x156   : > { %v1458_v60 = vpop.permute.xlu0 %1457  ;;  %774 = vst.msk [vmem:[#allocation3 + $0x10] sm:$0xff] %vm772_vm9, %v751_v57 }
 0x157   : > { %1477 = vst.msk [vmem:[#allocation3 + $0x48] sm:$0xff] %vm723_vm8, %v1458_v60  ;;  %859 = vrot.lane.b32.xlu1 %v2547_v55, %s2174_s5 }
 0x158   : > { %851 = vrot.lane.b32.xlu0 %v2539_v54, %s2174_s5 }
 0x159   : > { %v947_v51 = vpop.permute.xlu1 %946 }
 0x15a   : > { %v759_v62 = vpop.permute.xlu0 %758  ;;  %971 = vst.msk [vmem:[#allocation3] sm:$0xff] %vm970_vm13, %v947_v51 }
 0x15b   : > { %778 = vst.msk [vmem:[#allocation3 + $0x50] sm:$0xff] %vm772_vm9, %v759_v62  ;;  %1054 = vrot.lane.b32.xlu1 %v2564_v58, %s2179_s9  ;;  %v1084_v62 = vld [vmem:[#allocation2 + $0x120] sm:$0xff] }
 0x15c   : > { %1046 = vrot.lane.b32.xlu0 %v2559_v56, %s2179_s9 }
 0x15d   : > { %v1307_v63 = vpop.permute.xlu1 %1306 }
 0x15e   : > { %v955_v2 = vpop.permute.xlu0 %954  ;;  %1329 = vst.msk [vmem:[#allocation3 + $0x18] sm:$0xff] %vm575_vm5, %v1307_v63  ;;  %v1080_v63 = vld [vmem:[#allocation2 + $0xe0] sm:$0xff] }
 0x15f   : > { %975 = vst.msk [vmem:[#allocation3 + $0x40] sm:$0xff] %vm970_vm13, %v955_v2  ;;  %1222 = vrot.lane.b32.xlu1 %v1487_v53, %s2166_s23 }
 0x160   : > { %1214 = vrot.lane.b32.xlu0 %v2886_v47, %s2166_s23 }
 0x161   : > { %v1499_v54 = vpop.permute.xlu1 %1498 }
 0x162   : > { %v1315_v55 = vpop.permute.xlu0 %1314  ;;  %1522 = vst.msk [vmem:[#allocation3 + $0x8] sm:$0xff] %vm772_vm9, %v1499_v54 }
 0x163   : > { %1333 = vst.msk [vmem:[#allocation3 + $0x58] sm:$0xff] %vm575_vm5, %v1315_v55  ;;  %1413 = vrot.lane.b32.xlu1 %v2922_v49, %s2170_s27 }
 0x164   : > { %1405 = vrot.lane.b32.xlu0 %v2915_v42, %s2170_s27 }
 0x165   : > { %v801_v4 = vpop.permute.xlu1 %800 }
 0x166   : > { %v1507_v7 = vpop.permute.xlu0 %1506  ;;  %824 = vst.msk [vmem:[#allocation3 + $0x10] sm:$0xff] %vm822_vm10, %v801_v4 }
 0x167   : > { %1526 = vst.msk [vmem:[#allocation3 + $0x48] sm:$0xff] %vm772_vm9, %v1507_v7  ;;  %1604 = vrot.lane.b32.xlu1 %v1583_v3, %s2174_s5  ;;  %v1489_v7 = vld [vmem:[#allocation2 + $0x1d0] sm:$0xff] }
 0x168   : > { %1596 = vrot.lane.b32.xlu0 %v1579_v59, %s2174_s5 }
 0x169   : > { %v996_v10 = vpop.permute.xlu1 %995 }
 0x16a   : > { %v809_v11 = vpop.permute.xlu0 %808  ;;  %1020 = vst.msk [vmem:[#allocation3] sm:$0xff] %vm1019_vm14, %v996_v10 }
 0x16b   : > { %828 = vst.msk [vmem:[#allocation3 + $0x50] sm:$0xff] %vm822_vm10, %v809_v11  ;;  %713 = vrot.lane.b32.xlu1 %v690_v8, %s2171_s28  ;;  %v1485_v8 = vld [vmem:[#allocation2 + $0x190] sm:$0xff]  ;;  %v982_v11 = vld [vmem:[#allocation2 + $0xe1] sm:$0xff] }
 0x16c   : > { %705 = vrot.lane.b32.xlu0 %v686_v9, %s2171_s28 }
 0x16d   : > { %v1164_v5 = vpop.permute.xlu1 %1163 }
 0x16e   : > { %v1004_v12 = vpop.permute.xlu0 %1003  ;;  %1185 = vst.msk [vmem:[#allocation3 + $0x28] sm:$0xff] %vm427_vm2, %v1164_v5 }
 0x16f   : > { %1024 = vst.msk [vmem:[#allocation3 + $0x40] sm:$0xff] %vm1019_vm14, %v1004_v12  ;;  %908 = vrot.lane.b32.xlu1 %v2564_v58, %s2175_s6 }
 0x170   : > { %900 = vrot.lane.b32.xlu0 %v2559_v56, %s2175_s6 }
 0x171   : > { %v1356_v15 = vpop.permute.xlu1 %1355 }
 0x172   : > { %v1172_v16 = vpop.permute.xlu0 %1171  ;;  %1378 = vst.msk [vmem:[#allocation3 + $0x18] sm:$0xff] %vm624_vm6, %v1356_v15 }
 0x173   : > { %1189 = vst.msk [vmem:[#allocation3 + $0x68] sm:$0xff] %vm427_vm2, %v1172_v16  ;;  %1104 = vrot.lane.b32.xlu1 %v1083_v13, %s2180_s22 }
 0x174   : > { %1096 = vrot.lane.b32.xlu0 %v1079_v14, %s2180_s22 }
 0x175   : > { %v1547_v45 = vpop.permute.xlu1 %1546 }
 0x176   : > { %v1364_v17 = vpop.permute.xlu0 %1363  ;;  %1570 = vst.msk [vmem:[#allocation3 + $0x8] sm:$0xff] %vm822_vm10, %v1547_v45  ;;  %v1035_v45 = vld [vmem:[#allocation2 + $0x122] sm:$0xff] }
 0x177   : > { %1382 = vst.msk [vmem:[#allocation3 + $0x58] sm:$0xff] %vm624_vm6, %v1364_v17  ;;  %1270 = vrot.lane.b32.xlu1 %v2922_v49, %s2167_s24  ;;  %v1031_v17 = vld [vmem:[#allocation2 + $0xe2] sm:$0xff] }
 0x178   : > { %1262 = vrot.lane.b32.xlu0 %v2915_v42, %s2167_s24  ;;  %v1030_v42 = vld [vmem:[#allocation2 + $0xd2] sm:$0xff] }
 0x179   : > { %v850_v56 = vpop.permute.xlu1 %849 }
 0x17a   : > { %v1555_v58 = vpop.permute.xlu0 %1554  ;;  %873 = vst.msk [vmem:[#allocation3 + $0x10] sm:$0xff] %vm871_vm11, %v850_v56 }
 0x17b   : > { %1574 = vst.msk [vmem:[#allocation3 + $0x48] sm:$0xff] %vm822_vm10, %v1555_v58  ;;  %1461 = vrot.lane.b32.xlu1 %v1583_v3, %s2171_s28 }
 0x17c   : > { %1453 = vrot.lane.b32.xlu0 %v1579_v59, %s2171_s28 }
 0x17d   : > { %v1045_v19 = vpop.permute.xlu1 %1044 }
 0x17e   : > { %v858_v0 = vpop.permute.xlu0 %857  ;;  %1069 = vst.msk [vmem:[#allocation3] sm:$0xff] %vm1068_vm15, %v1045_v19 }
 0x17f   : > { %877 = vst.msk [vmem:[#allocation3 + $0x50] sm:$0xff] %vm871_vm11, %v858_v0  ;;  %762 = vrot.lane.b32.xlu1 %v739_v30, %s2172_s29  ;;  %v1581_v30 = vld [vmem:[#allocation2 + $0x192] sm:$0xff] }
 0x180   : > { %754 = vrot.lane.b32.xlu0 %v735_v18, %s2172_s29  ;;  %v1085_v0 = vld [vmem:[#allocation2 + $0x130] sm:$0xff] }
 0x181   : > { %v1213_v20 = vpop.permute.xlu1 %1212 }
 0x182   : > { %v1053_v21 = vpop.permute.xlu0 %1052  ;;  %1234 = vst.msk [vmem:[#allocation3 + $0x28] sm:$0xff] %vm476_vm3, %v1213_v20  ;;  %v1081_v20 = vld [vmem:[#allocation2 + $0xf0] sm:$0xff] }
 0x183   : > { %1073 = vst.msk [vmem:[#allocation3 + $0x40] sm:$0xff] %vm1068_vm15, %v1053_v21  ;;  %958 = vrot.lane.b32.xlu1 %v1083_v13, %s2176_s10 }
 0x184   : > { %950 = vrot.lane.b32.xlu0 %v1079_v14, %s2176_s10 }
 0x185   : > { %v1404_v52 = vpop.permute.xlu1 %1403 }
 0x186   : > { %v1221_v22 = vpop.permute.xlu0 %1220  ;;  %1426 = vst.msk [vmem:[#allocation3 + $0x18] sm:$0xff] %vm674_vm7, %v1404_v52 }
 0x187   : > { %1238 = vst.msk [vmem:[#allocation3 + $0x68] sm:$0xff] %vm476_vm3, %v1221_v22  ;;  %1318 = vrot.lane.b32.xlu1 %v1583_v3, %s2168_s25 }
 0x188   : > { %1310 = vrot.lane.b32.xlu0 %v1579_v59, %s2168_s25 }
 0x189   : > { %v1595_v25 = vpop.permute.xlu1 %1594 }
 0x18a   : > { %v1412_v26 = vpop.permute.xlu0 %1411  ;;  %1618 = vst.msk [vmem:[#allocation3 + $0x8] sm:$0xff] %vm871_vm11, %v1595_v25 }
 0x18b   : > { %1430 = vst.msk [vmem:[#allocation3 + $0x58] sm:$0xff] %vm674_vm7, %v1412_v26  ;;  %1510 = vrot.lane.b32.xlu1 %v1488_v23, %s2172_s29 }
 0x18c   : > { %1502 = vrot.lane.b32.xlu0 %v1484_v24, %s2172_s29 }
 0x18d   : > { %v704_v28 = vpop.permute.xlu1 %703 }
 0x18e   : > { %v1603_v29 = vpop.permute.xlu0 %1602  ;;  %726 = vst.msk [vmem:[#allocation3 + $0x20] sm:$0xff] %vm723_vm8, %v704_v28 }
 0x18f   : > { %1622 = vst.msk [vmem:[#allocation3 + $0x48] sm:$0xff] %vm871_vm11, %v1603_v29  ;;  %812 = vrot.lane.b32.xlu1 %v1083_v13, %s2173_s30  ;;  %v1537_v13 = vld [vmem:[#allocation2 + $0x1d1] sm:$0xff] }
 0x190   : > { %804 = vrot.lane.b32.xlu0 %v1079_v14, %s2173_s30  ;;  %v1533_v14 = vld [vmem:[#allocation2 + $0x191] sm:$0xff] }
 0x191   : > { %v899_v47 = vpop.permute.xlu1 %898  ;;  %v1627_v32 = vld [vmem:[#allocation3 + $0x8] sm:$0xff] }
 0x192   : > { %v712_v31 = vpop.permute.xlu0 %711  ;;  %922 = vst.msk [vmem:[#allocation3 + $0x10] sm:$0xff] %vm920_vm12, %v899_v47  ;;  %1981 = vmatprep.mubr.msk.f32.mxu0 %vm1669_vm1, %v1627_v32 }
 0x193   : > { %730 = vst.msk [vmem:[#allocation3 + $0x60] sm:$0xff] %vm723_vm8, %v712_v31  ;;  %1007 = vrot.lane.b32.xlu1 %v2582_v1, %s2178_s13 }
 0x194   : > { %999 = vrot.lane.b32.xlu0 %v2575_v61, %s2178_s13 }
 0x195   : > { %v1095_v53 = vpop.permute.xlu1 %1094 }
 0x196   : > { %v907_v27 = vpop.permute.xlu0 %906  ;;  %v1635_v33 = vld [vmem:[#allocation3 + $0x48] sm:$0xff]  ;;  %1119 = vst.msk [vmem:[#allocation3] sm:$0xff] %vm1118_vm0, %v1095_v53 }
 0x197   : > { %926 = vst.msk [vmem:[#allocation3 + $0x50] sm:$0xff] %vm920_vm12, %v907_v27  ;;  %1985 = vmatprep.mubr.msk.f32.mxu1 %vm1669_vm1, %v1635_v33  ;;  %1367 = vrot.lane.b32.xlu1 %v1488_v23, %s2169_s26 }
 0x198   : > { %1359 = vrot.lane.b32.xlu0 %v1484_v24, %s2169_s26 }
 0x199   : > { %v1261_v36 = vpop.permute.xlu1 %1260 }
 0x19a   : > { %v1103_v37 = vpop.permute.xlu0 %1102  ;;  %1282 = vst.msk [vmem:[#allocation3 + $0x28] sm:$0xff] %vm526_vm4, %v1261_v36 }
 0x19b   : > { %1123 = vst.msk [vmem:[#allocation3 + $0x40] sm:$0xff] %vm1118_vm0, %v1103_v37  ;;  %1558 = vrot.lane.b32.xlu1 %v1536_v34, %s2173_s30 }
 0x19c   : > { %1550 = vrot.lane.b32.xlu0 %v1532_v35, %s2173_s30 }
 0x19d   : > { %v1452_v38 = vpop.permute.xlu1 %1451  ;;  %v1626_v40 = vld [vmem:[#allocation3] sm:$0xff] }
 0x19e   : > { %v1269_v39 = vpop.permute.xlu0 %1268  ;;  %1474 = vst.msk [vmem:[#allocation3 + $0x18] sm:$0xff] %vm723_vm8, %v1452_v38  ;;  %1759 = vmatmul.mubr.f32.vlgmr.msra.gmra.mrb[0].mxu0 %v1626_v40 }
 0x19f   : > { %1286 = vst.msk [vmem:[#allocation3 + $0x68] sm:$0xff] %vm526_vm4, %v1269_v39  ;;  %861 = vrot.lane.b32.xlu1 %v2582_v1, %s2174_s5  ;;  %v1580_v1 = vld [vmem:[#allocation2 + $0x182] sm:$0xff] }
 0x1a0   : > { %853 = vrot.lane.b32.xlu0 %v2575_v61, %s2174_s5  ;;  %v1584_v61 = vld [vmem:[#allocation2 + $0x1c2] sm:$0xff] }
 0x1a1   : > { %v753_v43 = vpop.permute.xlu1 %752 }
 0x1a2   : > { %v1460_v44 = vpop.permute.xlu0 %1459  ;;  %v1634_v46 = vld [vmem:[#allocation3 + $0x40] sm:$0xff]  ;;  %775 = vst.msk [vmem:[#allocation3 + $0x20] sm:$0xff] %vm772_vm9, %v753_v43 }
 0x1a3   : > { %1478 = vst.msk [vmem:[#allocation3 + $0x58] sm:$0xff] %vm723_vm8, %v1460_v44  ;;  %1779 = vmatmul.mubr.f32.vlgmr.msra.gmra.mrb[0].mxu1 %v1634_v46  ;;  %1056 = vrot.lane.b32.xlu1 %v1034_v41, %s2179_s9 }
 0x1a4   : > { %1048 = vrot.lane.b32.xlu0 %v1030_v42, %s2179_s9 }
 0x1a5   : > { %v949_v49 = vpop.permute.xlu1 %948 }
 0x1a6   : > { %v761_v50 = vpop.permute.xlu0 %760  ;;  %972 = vst.msk [vmem:[#allocation3 + $0x10] sm:$0xff] %vm970_vm13, %v949_v49 }
 0x1a7   : > { %779 = vst.msk [vmem:[#allocation3 + $0x60] sm:$0xff] %vm772_vm9, %v761_v50  ;;  %1415 = vrot.lane.b32.xlu1 %v1536_v34, %s2170_s27 }
 0x1a8   : > { %1407 = vrot.lane.b32.xlu0 %v1532_v35, %s2170_s27 }
 0x1a9   : > { %v1309_v48 = vpop.permute.xlu1 %1308 }
 0x1aa   : > { %v957_v57 = vpop.permute.xlu0 %956  ;;  %1330 = vst.msk [vmem:[#allocation3 + $0x28] sm:$0xff] %vm575_vm5, %v1309_v48 }
 0x1ab   : > { %976 = vst.msk [vmem:[#allocation3 + $0x50] sm:$0xff] %vm970_vm13, %v957_v57  ;;  %1606 = vrot.lane.b32.xlu1 %v1584_v61, %s2174_s5 }
 0x1ac   : > { %1598 = vrot.lane.b32.xlu0 %v1580_v1, %s2174_s5 }
 0x1ad   : > { %v1501_v60 = vpop.permute.xlu1 %1500 }
 0x1ae   : > { %v1317_v51 = vpop.permute.xlu0 %1316  ;;  %1523 = vst.msk [vmem:[#allocation3 + $0x18] sm:$0xff] %vm772_vm9, %v1501_v60 }
 0x1af   : > { %1334 = vst.msk [vmem:[#allocation3 + $0x68] sm:$0xff] %vm575_vm5, %v1317_v51  ;;  %910 = vrot.lane.b32.xlu1 %v1034_v41, %s2175_s6 }
 0x1b0   : > { %902 = vrot.lane.b32.xlu0 %v1030_v42, %s2175_s6 }
 0x1b1   : > { %v803_v2 = vpop.permute.xlu1 %802 }
 0x1b2   : > { %v1509_v54 = vpop.permute.xlu0 %1508  ;;  %825 = vst.msk [vmem:[#allocation3 + $0x20] sm:$0xff] %vm822_vm10, %v803_v2 }
 0x1b3   : > { %1527 = vst.msk [vmem:[#allocation3 + $0x58] sm:$0xff] %vm772_vm9, %v1509_v54  ;;  %1106 = vrot.lane.b32.xlu1 %v1084_v62, %s2180_s22 }
 0x1b4   : > { %1098 = vrot.lane.b32.xlu0 %v1080_v63, %s2180_s22 }
 0x1b5   : > { %v998_v55 = vpop.permute.xlu1 %997 }
 0x1b6   : > { %v811_v3 = vpop.permute.xlu0 %810  ;;  %1021 = vst.msk [vmem:[#allocation3 + $0x10] sm:$0xff] %vm1019_vm14, %v998_v55 }
 0x1b7   : > { %829 = vst.msk [vmem:[#allocation3 + $0x60] sm:$0xff] %vm822_vm10, %v811_v3  ;;  %1463 = vrot.lane.b32.xlu1 %v1584_v61, %s2171_s28 }
 0x1b8   : > { %1455 = vrot.lane.b32.xlu0 %v1580_v1, %s2171_s28 }
 0x1b9   : > { %v1166_v59 = vpop.permute.xlu1 %1165 }
 0x1ba   : > { %v1006_v4 = vpop.permute.xlu0 %1005  ;;  %1186 = vst.msk [vmem:[#allocation3 + $0x38] sm:$0xff] %vm427_vm2, %v1166_v59 }
 0x1bb   : > { %1025 = vst.msk [vmem:[#allocation3 + $0x50] sm:$0xff] %vm1019_vm14, %v1006_v4  ;;  %960 = vrot.lane.b32.xlu1 %v1084_v62, %s2176_s10 }
 0x1bc   : > { %952 = vrot.lane.b32.xlu0 %v1080_v63, %s2176_s10 }
 0x1bd   : > { %v1358_v9 = vpop.permute.xlu1 %1357 }
 0x1be   : > { %v1174_v10 = vpop.permute.xlu0 %1173  ;;  %1379 = vst.msk [vmem:[#allocation3 + $0x28] sm:$0xff] %vm624_vm6, %v1358_v9 }
 0x1bf   : > { %1190 = vst.msk [vmem:[#allocation3 + $0x78] sm:$0xff] %vm427_vm2, %v1174_v10  ;;  %1512 = vrot.lane.b32.xlu1 %v1489_v7, %s2172_s29  ;;  %vm3182_vm2 = vcmask 64512  }
 0x1c0   : > { %1504 = vrot.lane.b32.xlu0 %v1485_v8, %s2172_s29 }
 0x1c1   : > { %v1549_v5 = vpop.permute.xlu1 %1548 }
 0x1c2   : > { %v1366_v12 = vpop.permute.xlu0 %1365  ;;  %1571 = vst.msk [vmem:[#allocation3 + $0x18] sm:$0xff] %vm822_vm10, %v1549_v5 }
 0x1c3   : > { %1383 = vst.msk [vmem:[#allocation3 + $0x68] sm:$0xff] %vm624_vm6, %v1366_v12  ;;  %1009 = vrot.lane.b32.xlu1 %v2681_v6, %s2178_s13  ;;  %v1585_v6 = vld [vmem:[#allocation2 + $0x1d2] sm:$0xff] }
 0x1c4   : > { %1001 = vrot.lane.b32.xlu0 %v982_v11, %s2178_s13 }
 0x1c5   : > { %v665_v15 = vpop.permute.xlu1 %664 }
 0x1c6   : > { %v1557_v16 = vpop.permute.xlu0 %1556  ;;  %682 = vst.msk [vmem:[#allocation3 + $0x70] sm:$0xff] %vm674_vm7, %v665_v15 }
 0x1c7   : > { %1575 = vst.msk [vmem:[#allocation3 + $0x58] sm:$0xff] %vm822_vm10, %v1557_v16  ;;  %1560 = vrot.lane.b32.xlu1 %v1537_v13, %s2173_s30 }
 0x1c8   : > { %1552 = vrot.lane.b32.xlu0 %v1533_v14, %s2173_s30 }
 0x1c9   : > { %v860_v56 = vpop.permute.xlu1 %859 }
 0x1ca   : > { %v852_v58 = vpop.permute.xlu0 %851  ;;  %878 = vst.msk [vmem:[#allocation3 + $0x60] sm:$0xff] %vm871_vm11, %v860_v56 }
 0x1cb   : > { %874 = vst.msk [vmem:[#allocation3 + $0x20] sm:$0xff] %vm871_vm11, %v852_v58  ;;  %1058 = vrot.lane.b32.xlu1 %v1035_v45, %s2179_s9 }
 0x1cc   : > { %1050 = vrot.lane.b32.xlu0 %v1031_v17, %s2179_s9 }
 0x1cd   : > { %v1055_v18 = vpop.permute.xlu1 %1054 }
 0x1ce   : > { %v1047_v19 = vpop.permute.xlu0 %1046  ;;  %1074 = vst.msk [vmem:[#allocation3 + $0x50] sm:$0xff] %vm1068_vm15, %v1055_v18 }
 0x1cf   : > { %1070 = vst.msk [vmem:[#allocation3 + $0x10] sm:$0xff] %vm1068_vm15, %v1047_v19  ;;  %1608 = vrot.lane.b32.xlu1 %v1585_v6, %s2174_s5 }
 0x1d0   : > { %1600 = vrot.lane.b32.xlu0 %v1581_v30, %s2174_s5 }
 0x1d1   : > { %v1223_v21 = vpop.permute.xlu1 %1222 }
 0x1d2   : > { %v1215_v52 = vpop.permute.xlu0 %1214  ;;  %1239 = vst.msk [vmem:[#allocation3 + $0x78] sm:$0xff] %vm476_vm3, %v1223_v21 }
 0x1d3   : > { %1235 = vst.msk [vmem:[#allocation3 + $0x38] sm:$0xff] %vm476_vm3, %v1215_v52  ;;  %1108 = vrot.lane.b32.xlu1 %v1085_v0, %s2180_s22 }
 0x1d4   : > { %1100 = vrot.lane.b32.xlu0 %v1081_v20, %s2180_s22 }
 0x1d5   : > { %v1414_v22 = vpop.permute.xlu1 %1413 }
 0x1d6   : > { %v1406_v23 = vpop.permute.xlu0 %1405  ;;  %1431 = vst.msk [vmem:[#allocation3 + $0x68] sm:$0xff] %vm674_vm7, %v1414_v22 }
 0x1d7   : > { %1427 = vst.msk [vmem:[#allocation3 + $0x28] sm:$0xff] %vm674_vm7, %v1406_v23 }
 0x1d9   : > { %v1605_v24 = vpop.permute.xlu1 %1604 }
 0x1da   : > { %v1597_v25 = vpop.permute.xlu0 %1596  ;;  %1623 = vst.msk [vmem:[#allocation3 + $0x58] sm:$0xff] %vm871_vm11, %v1605_v24 }
 0x1db   : > { %1619 = vst.msk [vmem:[#allocation3 + $0x18] sm:$0xff] %vm871_vm11, %v1597_v25 }
 0x1dd   : > { %v714_v26 = vpop.permute.xlu1 %713 }
 0x1de   : > { %v706_v28 = vpop.permute.xlu0 %705  ;;  %731 = vst.msk [vmem:[#allocation3 + $0x70] sm:$0xff] %vm723_vm8, %v714_v26 }
 0x1df   : > { %727 = vst.msk [vmem:[#allocation3 + $0x30] sm:$0xff] %vm723_vm8, %v706_v28 }
 0x1e1   : > { %v909_v29 = vpop.permute.xlu1 %908  ;;  %v1637_v32 = vld [vmem:[#allocation3 + $0x58] sm:$0xff] }
 0x1e2   : > { %v901_v47 = vpop.permute.xlu0 %900  ;;  %v1629_v31 = vld [vmem:[#allocation3 + $0x18] sm:$0xff]  ;;  %927 = vst.msk [vmem:[#allocation3 + $0x60] sm:$0xff] %vm920_vm12, %v909_v29  ;;  %1986 = vmatprep.mubr.msk.f32.mxu1 %vm1669_vm1, %v1637_v32  ;;  %v1989_v29 = vld [vmem:[%s3178_s2] ss:$0 sm:$0xff] }
 0x1e3   : > { %923 = vst.msk [vmem:[#allocation3 + $0x20] sm:$0xff] %vm920_vm12, %v901_v47  ;;  %1982 = vmatprep.mubr.msk.f32.mxu0 %vm1669_vm1, %v1629_v31  ;;  %v1990_v31 = vld [vmem:[%s3179_s3] ss:$0 sm:$0xff] }
 0x1e5   : > { %v1105_v53 = vpop.permute.xlu1 %1104 }
 0x1e6   : > { %v1097_v27 = vpop.permute.xlu0 %1096  ;;  %1124 = vst.msk [vmem:[#allocation3 + $0x50] sm:$0xff] %vm1118_vm0, %v1105_v53 }
 0x1e7   : > { %1120 = vst.msk [vmem:[#allocation3 + $0x10] sm:$0xff] %vm1118_vm0, %v1097_v27 }
 0x1e9   : > { %v1271_v33 = vpop.permute.xlu1 %1270 }
 0x1ea   : > { %v1263_v34 = vpop.permute.xlu0 %1262  ;;  %1287 = vst.msk [vmem:[#allocation3 + $0x78] sm:$0xff] %vm526_vm4, %v1271_v33 }
 0x1eb   : > { %1283 = vst.msk [vmem:[#allocation3 + $0x38] sm:$0xff] %vm526_vm4, %v1263_v34  ;;  %vm3183_vm4 = vmmov %vm3182_vm2 }
 0x1ed   : > { %v1462_v35 = vpop.permute.xlu1 %1461  ;;  %v1636_v38 = vld [vmem:[#allocation3 + $0x50] sm:$0xff] }
 0x1ee   : > { %v1454_v36 = vpop.permute.xlu0 %1453  ;;  %v1628_v37 = vld [vmem:[#allocation3 + $0x10] sm:$0xff]  ;;  %1479 = vst.msk [vmem:[#allocation3 + $0x68] sm:$0xff] %vm723_vm8, %v1462_v35  ;;  %1784 = vmatmul.mubr.f32.gmra.mrb[2].mxu1 %v1636_v38 }
 0x1ef   : > { %1475 = vst.msk [vmem:[#allocation3 + $0x28] sm:$0xff] %vm723_vm8, %v1454_v36  ;;  %1764 = vmatmul.mubr.f32.gmra.mrb[2].mxu0 %v1628_v37 }
 0x1f1   : > { %v763_v39 = vpop.permute.xlu1 %762 }
 0x1f2   : > { %v755_v40 = vpop.permute.xlu0 %754  ;;  %780 = vst.msk [vmem:[#allocation3 + $0x70] sm:$0xff] %vm772_vm9, %v763_v39 }
 0x1f3   : > { %776 = vst.msk [vmem:[#allocation3 + $0x30] sm:$0xff] %vm772_vm9, %v755_v40 }
 0x1f5   : > { %v959_v41 = vpop.permute.xlu1 %958 }
 0x1f6   : > { %v951_v42 = vpop.permute.xlu0 %950  ;;  %977 = vst.msk [vmem:[#allocation3 + $0x60] sm:$0xff] %vm970_vm13, %v959_v41 }
 0x1f7   : > { %973 = vst.msk [vmem:[#allocation3 + $0x20] sm:$0xff] %vm970_vm13, %v951_v42 }
 0x1f9   : > { %v1319_v43 = vpop.permute.xlu1 %1318 }
 0x1fa   : > { %v1311_v44 = vpop.permute.xlu0 %1310  ;;  %1335 = vst.msk [vmem:[#allocation3 + $0x78] sm:$0xff] %vm575_vm5, %v1319_v43 }
 0x1fb   : > { %1331 = vst.msk [vmem:[#allocation3 + $0x38] sm:$0xff] %vm575_vm5, %v1311_v44 }
 0x1fd   : > { %v1511_v46 = vpop.permute.xlu1 %1510 }
 0x1fe   : > { %v1503_v49 = vpop.permute.xlu0 %1502  ;;  %1528 = vst.msk [vmem:[#allocation3 + $0x68] sm:$0xff] %vm772_vm9, %v1511_v46 }
 0x1ff   : > { %1524 = vst.msk [vmem:[#allocation3 + $0x28] sm:$0xff] %vm772_vm9, %v1503_v49 }
 0x201   : > { %v813_v50 = vpop.permute.xlu1 %812 }
 0x202   : > { %v805_v61 = vpop.permute.xlu0 %804  ;;  %830 = vst.msk [vmem:[#allocation3 + $0x70] sm:$0xff] %vm822_vm10, %v813_v50 }
 0x203   : > { %826 = vst.msk [vmem:[#allocation3 + $0x30] sm:$0xff] %vm822_vm10, %v805_v61 }
 0x205   : > { %v1008_v1 = vpop.permute.xlu1 %1007 }
 0x206   : > { %v1000_v48 = vpop.permute.xlu0 %999  ;;  %1026 = vst.msk [vmem:[#allocation3 + $0x60] sm:$0xff] %vm1019_vm14, %v1008_v1 }
 0x207   : > { %1022 = vst.msk [vmem:[#allocation3 + $0x20] sm:$0xff] %vm1019_vm14, %v1000_v48 }
 0x209   : > { %v1368_v57 = vpop.permute.xlu1 %1367 }
 0x20a   : > { %v1360_v60 = vpop.permute.xlu0 %1359  ;;  %1384 = vst.msk [vmem:[#allocation3 + $0x78] sm:$0xff] %vm624_vm6, %v1368_v57 }
 0x20b   : > { %1380 = vst.msk [vmem:[#allocation3 + $0x38] sm:$0xff] %vm624_vm6, %v1360_v60 }
 0x20d   : > { %v1559_v51 = vpop.permute.xlu1 %1558 }
 0x20e   : > { %v1551_v62 = vpop.permute.xlu0 %1550  ;;  %1576 = vst.msk [vmem:[#allocation3 + $0x68] sm:$0xff] %vm822_vm10, %v1559_v51 }
 0x20f   : > { %1572 = vst.msk [vmem:[#allocation3 + $0x28] sm:$0xff] %vm822_vm10, %v1551_v62 }
 0x211   : > { %v862_v63 = vpop.permute.xlu1 %861 }
 0x212   : > { %v854_v2 = vpop.permute.xlu0 %853  ;;  %879 = vst.msk [vmem:[#allocation3 + $0x70] sm:$0xff] %vm871_vm11, %v862_v63 }
 0x213   : > { %875 = vst.msk [vmem:[#allocation3 + $0x30] sm:$0xff] %vm871_vm11, %v854_v2 }
 0x215   : > { %v1057_v54 = vpop.permute.xlu1 %1056 }
 0x216   : > { %v1049_v55 = vpop.permute.xlu0 %1048  ;;  %1075 = vst.msk [vmem:[#allocation3 + $0x60] sm:$0xff] %vm1068_vm15, %v1057_v54 }
 0x217   : > { %1071 = vst.msk [vmem:[#allocation3 + $0x20] sm:$0xff] %vm1068_vm15, %v1049_v55 }
 0x219   : > { %v1416_v3 = vpop.permute.xlu1 %1415 }
 0x21a   : > { %v1408_v59 = vpop.permute.xlu0 %1407  ;;  %1432 = vst.msk [vmem:[#allocation3 + $0x78] sm:$0xff] %vm674_vm7, %v1416_v3 }
 0x21b   : > { %1428 = vst.msk [vmem:[#allocation3 + $0x38] sm:$0xff] %vm674_vm7, %v1408_v59  ;;  %vm3184_vm7 = vmmov %vm3182_vm2 }
 0x21d   : > { %v1607_v4 = vpop.permute.xlu1 %1606 }
 0x21e   : > { %v1599_v7 = vpop.permute.xlu0 %1598  ;;  %1624 = vst.msk [vmem:[#allocation3 + $0x68] sm:$0xff] %vm871_vm11, %v1607_v4 }
 0x21f   : > { %1620 = vst.msk [vmem:[#allocation3 + $0x28] sm:$0xff] %vm871_vm11, %v1599_v7 }
 0x221   : > { %v911_v8 = vpop.permute.xlu1 %910 }
 0x222   : > { %v903_v9 = vpop.permute.xlu0 %902  ;;  %928 = vst.msk [vmem:[#allocation3 + $0x70] sm:$0xff] %vm920_vm12, %v911_v8 }
 0x223   : > { %924 = vst.msk [vmem:[#allocation3 + $0x30] sm:$0xff] %vm920_vm12, %v903_v9  ;;  %vm3187_vm12 = vmmov %vm3182_vm2 }
 0x225   : > { %v1107_v10 = vpop.permute.xlu1 %1106  ;;  %v1639_v12 = vld [vmem:[#allocation3 + $0x68] sm:$0xff] }
 0x226   : > { %v1099_v11 = vpop.permute.xlu0 %1098  ;;  %v1631_v5 = vld [vmem:[#allocation3 + $0x28] sm:$0xff]  ;;  %1125 = vst.msk [vmem:[#allocation3 + $0x60] sm:$0xff] %vm1118_vm0, %v1107_v10  ;;  %1987 = vmatprep.mubr.msk.f32.mxu1 %vm1669_vm1, %v1639_v12 }
 0x227   : > { %1121 = vst.msk [vmem:[#allocation3 + $0x20] sm:$0xff] %vm1118_vm0, %v1099_v11  ;;  %1983 = vmatprep.mubr.msk.f32.mxu0 %vm1669_vm1, %v1631_v5 }
 0x229   : > { %v1464_v13 = vpop.permute.xlu1 %1463 }
 0x22a   : > { %v1456_v14 = vpop.permute.xlu0 %1455  ;;  %1480 = vst.msk [vmem:[#allocation3 + $0x78] sm:$0xff] %vm723_vm8, %v1464_v13 }
 0x22b   : > { %1476 = vst.msk [vmem:[#allocation3 + $0x38] sm:$0xff] %vm723_vm8, %v1456_v14  ;;  %vm3185_vm8 = vmmov %vm3182_vm2 }
 0x22d   : > { %v961_v15 = vpop.permute.xlu1 %960  ;;  %v1638_v17 = vld [vmem:[#allocation3 + $0x60] sm:$0xff] }
 0x22e   : > { %v953_v16 = vpop.permute.xlu0 %952  ;;  %v1630_v45 = vld [vmem:[#allocation3 + $0x20] sm:$0xff]  ;;  %978 = vst.msk [vmem:[#allocation3 + $0x70] sm:$0xff] %vm970_vm13, %v961_v15  ;;  %1789 = vmatmul.mubr.f32.gmra.mrb[4].mxu1 %v1638_v17 }
 0x22f   : > { %974 = vst.msk [vmem:[#allocation3 + $0x30] sm:$0xff] %vm970_vm13, %v953_v16  ;;  %1769 = vmatmul.mubr.f32.gmra.mrb[4].mxu0 %v1630_v45 }
 0x231   : > { %v1513_v56 = vpop.permute.xlu1 %1512 }
 0x232   : > { %v1505_v58 = vpop.permute.xlu0 %1504  ;;  %1529 = vst.msk [vmem:[#allocation3 + $0x78] sm:$0xff] %vm772_vm9, %v1513_v56 }
 0x233   : > { %1525 = vst.msk [vmem:[#allocation3 + $0x38] sm:$0xff] %vm772_vm9, %v1505_v58 }
 0x235   : > { %v1010_v6 = vpop.permute.xlu1 %1009 }
 0x236   : > { %v1002_v30 = vpop.permute.xlu0 %1001  ;;  %1027 = vst.msk [vmem:[#allocation3 + $0x70] sm:$0xff] %vm1019_vm14, %v1010_v6 }
 0x237   : > { %1023 = vst.msk [vmem:[#allocation3 + $0x30] sm:$0xff] %vm1019_vm14, %v1002_v30 }
 0x239   : > { %v1561_v18 = vpop.permute.xlu1 %1560 }
 0x23a   : > { %v1553_v19 = vpop.permute.xlu0 %1552  ;;  %1577 = vst.msk [vmem:[#allocation3 + $0x78] sm:$0xff] %vm822_vm10, %v1561_v18 }
 0x23b   : > { %1573 = vst.msk [vmem:[#allocation3 + $0x38] sm:$0xff] %vm822_vm10, %v1553_v19 }
 0x23d   : > { %v1059_v0 = vpop.permute.xlu1 %1058 }
 0x23e   : > { %v1051_v20 = vpop.permute.xlu0 %1050  ;;  %1076 = vst.msk [vmem:[#allocation3 + $0x70] sm:$0xff] %vm1068_vm15, %v1059_v0 }
 0x23f   : > { %1072 = vst.msk [vmem:[#allocation3 + $0x30] sm:$0xff] %vm1068_vm15, %v1051_v20  ;;  %vm3188_vm15 = vmmov %vm3182_vm2 }
 0x241   : > { %v1609_v21 = vpop.permute.xlu1 %1608 }
 0x242   : > { %v1601_v52 = vpop.permute.xlu0 %1600  ;;  %1625 = vst.msk [vmem:[#allocation3 + $0x78] sm:$0xff] %vm871_vm11, %v1609_v21 }
 0x243   : > { %1621 = vst.msk [vmem:[#allocation3 + $0x38] sm:$0xff] %vm871_vm11, %v1601_v52  ;;  %vm3186_vm11 = vmmov %vm3182_vm2 }
 0x245   : > { %v1109_v22 = vpop.permute.xlu1 %1108 }
 0x246   : > { %v1101_v23 = vpop.permute.xlu0 %1100  ;;  %1126 = vst.msk [vmem:[#allocation3 + $0x70] sm:$0xff] %vm1118_vm0, %v1109_v22 }
 0x247   : > { %1122 = vst.msk [vmem:[#allocation3 + $0x30] sm:$0xff] %vm1118_vm0, %v1101_v23 }
 0x249   : > { %v1641_v25 = vld [vmem:[#allocation3 + $0x78] sm:$0xff] }
 0x24a   : > { %v1633_v24 = vld [vmem:[#allocation3 + $0x38] sm:$0xff]  ;;  %1988 = vmatprep.mubr.msk.f32.mxu1 %vm1669_vm1, %v1641_v25 }
 0x24b   : > { %1984 = vmatprep.mubr.msk.f32.mxu0 %vm1669_vm1, %v1633_v24  ;;  %vm3189_vm1 = vmmov %vm3182_vm2 }
 0x24d   : > { %v1640_v28 = vld [vmem:[#allocation3 + $0x70] sm:$0xff] }
 0x24e   : > { %v1632_v26 = vld [vmem:[#allocation3 + $0x30] sm:$0xff]  ;;  %1794 = vmatmul.mubr.f32.gmra.mrb[6].mxu1 %v1640_v28 }
 0x24f   : > { %1774 = vmatmul.mubr.f32.gmra.mrb[6].mxu0 %v1632_v26 }
 0x271   : > { %v1760_v47 = vpop.f32.mrb[0].mxu0 }
 0x272   : > { %v1806_v32 = vmul.f32 %v1989_v29, %v1760_v47  ;;  %v1762_v53 = vpop.f32.mrb[1].mxu0 }
 0x274   : > { %v1821_v27 = vadd.f32 %v1990_v31, %v1806_v32 }
 0x276   : > { %v1780_v33 = vpop.f32.mrb[0].mxu1  ;;  %vm1829_vm0 = vcmp.ge.f32.partialorder %v1821_v27, 0.0  ;;  %v1837_v34 = vmul.f32 0.01, %v1821_v27 }
 0x277   : > { %v1810_v35 = vmul.f32 %v1989_v29, %v1780_v33  ;;  %v1782_v36 = vpop.f32.mrb[1].mxu1 }
 0x278   : > { %v1845_v37 = vsel %vm1829_vm0, %v1821_v27, %v1837_v34 }
 0x279   : > { %v1825_v38 = vadd.f32 %v1990_v31, %v1810_v35  ;;  %1853 = vst.msk [vmem:[%s2377_s8] sm:$0xff] %vm3182_vm2, %v1845_v37 }
 0x27b   : > { %vm1833_vm3 = vcmp.ge.f32.partialorder %v1825_v38, 0.0  ;;  %v1841_v39 = vmul.f32 0.01, %v1825_v38 }
 0x27d   : > { %v1849_v40 = vsel %vm1833_vm3, %v1825_v38, %v1841_v39 }
 0x27e   : > { %1857 = vst.msk [vmem:[%s2377_s8 + $0x20] sm:$0xff] %vm3183_vm4, %v1849_v40 }
 0x2c1   : > { %v1785_v42 = vpop.f32.mrb[2].mxu1 }
 0x2c2   : > { %v1765_v41 = vpop.f32.mrb[2].mxu0  ;;  %v1811_v44 = vmul.f32 %v1989_v29, %v1785_v42  ;;  %v1787_v49 = vpop.f32.mrb[3].mxu1 }
 0x2c3   : > { %v1807_v43 = vmul.f32 %v1989_v29, %v1765_v41  ;;  %v1767_v46 = vpop.f32.mrb[3].mxu0 }
 0x2c4   : > { %v1826_v61 = vadd.f32 %v1990_v31, %v1811_v44 }
 0x2c5   : > { %v1822_v50 = vadd.f32 %v1990_v31, %v1807_v43 }
 0x2c6   : > { %vm1834_vm6 = vcmp.ge.f32.partialorder %v1826_v61, 0.0  ;;  %v1842_v48 = vmul.f32 0.01, %v1826_v61 }
 0x2c7   : > { %vm1830_vm5 = vcmp.ge.f32.partialorder %v1822_v50, 0.0  ;;  %v1838_v1 = vmul.f32 0.01, %v1822_v50 }
 0x2c8   : > { %v1850_v60 = vsel %vm1834_vm6, %v1826_v61, %v1842_v48 }
 0x2c9   : > { %v1846_v57 = vsel %vm1830_vm5, %v1822_v50, %v1838_v1  ;;  %1858 = vst.msk [vmem:[%s2377_s8 + $0x28] sm:$0xff] %vm3185_vm8, %v1850_v60 }
 0x2ca   : > { %1854 = vst.msk [vmem:[%s2377_s8 + $0x8] sm:$0xff] %vm3184_vm7, %v1846_v57 }
 0x301   : > { %v1790_v62 = vpop.f32.mrb[4].mxu1 }
 0x302   : > { %v1770_v51 = vpop.f32.mrb[4].mxu0  ;;  %v1812_v2 = vmul.f32 %v1989_v29, %v1790_v62  ;;  %v1792_v55 = vpop.f32.mrb[5].mxu1 }
 0x303   : > { %v1808_v63 = vmul.f32 %v1989_v29, %v1770_v51  ;;  %v1772_v54 = vpop.f32.mrb[5].mxu0 }
 0x304   : > { %v1827_v59 = vadd.f32 %v1990_v31, %v1812_v2 }
 0x305   : > { %v1823_v3 = vadd.f32 %v1990_v31, %v1808_v63 }
 0x306   : > { %vm1835_vm10 = vcmp.ge.f32.partialorder %v1827_v59, 0.0  ;;  %v1843_v7 = vmul.f32 0.01, %v1827_v59 }
 0x307   : > { %vm1831_vm9 = vcmp.ge.f32.partialorder %v1823_v3, 0.0  ;;  %v1839_v4 = vmul.f32 0.01, %v1823_v3 }
 0x308   : > { %v1851_v9 = vsel %vm1835_vm10, %v1827_v59, %v1843_v7 }
 0x309   : > { %v1847_v8 = vsel %vm1831_vm9, %v1823_v3, %v1839_v4  ;;  %1859 = vst.msk [vmem:[%s2377_s8 + $0x30] sm:$0xff] %vm3187_vm12, %v1851_v9 }
 0x30a   : > { %1855 = vst.msk [vmem:[%s2377_s8 + $0x10] sm:$0xff] %vm3186_vm11, %v1847_v8 }
 0x321   : > { %v1795_v11 = vpop.f32.mrb[6].mxu1 }
 0x322   : > { %v1775_v10 = vpop.f32.mrb[6].mxu0  ;;  %v1813_v12 = vmul.f32 %v1989_v29, %v1795_v11  ;;  %v1797_v14 = vpop.f32.mrb[7].mxu1 }
 0x323   : > { %v1809_v5 = vmul.f32 %v1989_v29, %v1775_v10  ;;  %v1777_v13 = vpop.f32.mrb[7].mxu0 }
 0x324   : > { %v1828_v16 = vadd.f32 %v1990_v31, %v1813_v12 }
 0x325   : > { %v1824_v15 = vadd.f32 %v1990_v31, %v1809_v5 }
 0x326   : > { %vm1836_vm14 = vcmp.ge.f32.partialorder %v1828_v16, 0.0  ;;  %v1844_v17 = vmul.f32 0.01, %v1828_v16 }
 0x327   : > { %vm1832_vm13 = vcmp.ge.f32.partialorder %v1824_v15, 0.0  ;;  %v1840_v45 = vmul.f32 0.01, %v1824_v15 }
 0x328   : > { %v1852_v58 = vsel %vm1836_vm14, %v1828_v16, %v1844_v17 }
 0x329   : > { %v1848_v56 = vsel %vm1832_vm13, %v1824_v15, %v1840_v45  ;;  %1860 = vst.msk [vmem:[%s2377_s8 + $0x38] sm:$0xff] %vm3189_vm1, %v1852_v58 }
 0x32a   : > { %1856 = vst.msk [vmem:[%s2377_s8 + $0x18] sm:$0xff] %vm3188_vm15, %v1848_v56 }
 0x32b PF: > { %s14_s19 = sadd.s32 1, %s2162_s19   ;;  %s3190_s15 = smov %s2154_s17 }
 0x32c   : > { %p11_p7 = scmp.ge.s32.totalorder %s14_s19, 18   ;;  %s3191_s16 = smov %s2158_s18 }
 0x32d   : > { %s3192_s17 = smov %s3195_s20  ;;  %s3193_s18 = smov %s3199_s21 }
 0x32e   :  { %13 = sbr.rel (!%p11_p7) target bundleno = 3 (0x3), region = 92 }

</bundles_post_ra>
